<compile_context>
chip_gen: v6e
topology: v6e:2x2x1
jax: 0.10.0
libtpu: 0.0.40
codegen_flags: <defaults>
</compile_context>

<pallas_src>
import jax
import jax.numpy as jnp
from jax.experimental import pallas as pl
from jax.experimental.pallas import tpu as pltpu


# --------------------------------------------------------------------------
# in-kernel helpers
# --------------------------------------------------------------------------

def _bn_relu_haloed(xc_ref, xt_ref, xb_ref, scale_ref, shift_ref,
                    hb, th, w, c, n_h):
    """relu(bn(x)) on a row tile plus its two halo rows.

    Halo rows that fall outside the image (first / last row tile) are zeroed
    with a scalar gate so the conv's zero padding is applied *after* BN+ReLU.
    Returns a float32 (TH+2, W, C) tile (rows = [top halo, center, bottom halo]).
    """
    scale = scale_ref[...].reshape(1, 1, c)
    shift = shift_ref[...].reshape(1, 1, c)

    def bn_relu(v):
        return jnp.maximum(v.astype(jnp.float32) * scale + shift, 0.0)

    top_gate = (hb > 0).astype(jnp.float32)
    bot_gate = (hb < n_h - 1).astype(jnp.float32)
    a_top = bn_relu(xt_ref[0]) * top_gate            # (1,  W, C)
    a_mid = bn_relu(xc_ref[0])                       # (TH, W, C)
    a_bot = bn_relu(xb_ref[0]) * bot_gate            # (1,  W, C)
    return jnp.concatenate([a_top, a_mid, a_bot], axis=0)


def _conv3x3(act, w_ref, th, w, cin, cout):
    """3x3 / stride-1 conv of a row-haloed (TH+2, W, Cin) activation tile.

    Column padding is two in-register zero columns; the 3 dx taps are folded
    channel-wise into a single K=3*Cin operand (one bf16 cast) so the conv is
    3 accumulated MXU matmuls.  Weights are indexed per dy from the ref.
    """
    zcol = jnp.zeros((th + 2, 1, cin), act.dtype)
    hp = jnp.concatenate([zcol, act, zcol], axis=1)              # (TH+2, W+2, C)
    im3 = jnp.concatenate(
        [hp[:, 0:w, :], hp[:, 1:w + 1, :], hp[:, 2:w + 2, :]], axis=-1
    ).astype(jnp.bfloat16)                                       # (TH+2, W, 3C)
    acc = jnp.zeros((th * w, cout), jnp.float32)
    for dy in range(3):
        a = im3[dy:dy + th].reshape(th * w, 3 * cin)
        acc = acc + jnp.dot(a, w_ref[dy], preferred_element_type=jnp.float32)
    return acc.reshape(th, w, cout)


# --------------------------------------------------------------------------
# Pallas kernels
# --------------------------------------------------------------------------

def _make_stage_kernel(th, w, cin, cout, n_h, out_dtype):
    """Fused BN + ReLU + 3x3 conv; also emits per-tile partial BN statistics
    (sum, sum-of-squares) of its own output so the next stage's BatchNorm
    never re-reads the intermediate from HBM."""

    def kernel(xc_ref, xt_ref, xb_ref, scale_ref, shift_ref, w_ref,
               out_ref, stats_ref):
        hb = pl.program_id(1)
        act = _bn_relu_haloed(xc_ref, xt_ref, xb_ref, scale_ref, shift_ref,
                              hb, th, w, cin, n_h)
        out = _conv3x3(act, w_ref, th, w, cin, cout)
        stats_ref[...] = jnp.stack(
            [jnp.sum(out, axis=(0, 1)), jnp.sum(out * out, axis=(0, 1))]
        ).reshape(1, 1, 2, cout)
        out_ref[...] = out.reshape(1, th, w, cout).astype(out_dtype)

    return kernel


def _make_final_kernel(th, w, cin, c1, c2, ctot, n_h, has_ds):
    """Fused BN3+ReLU+conv3  +  concat(out1,out2,out3)  +  residual add, with
    the (optional) BN4+ReLU+1x1 downsample branch fused into the epilogue."""

    def kernel(x2c_ref, x2t_ref, x2b_ref, s3_ref, b3_ref, w3_ref,
               o1_ref, x_ref, *rest):
        if has_ds:
            s4_ref, b4_ref, wd_ref, out_ref = rest
        else:
            (out_ref,) = rest

        hb = pl.program_id(1)
        act = _bn_relu_haloed(x2c_ref, x2t_ref, x2b_ref, s3_ref, b3_ref,
                              hb, th, w, c2, n_h)
        out3 = _conv3x3(act, w3_ref, th, w, c2, c2)

        # residual branch
        if has_ds:
            a4 = jnp.maximum(
                x_ref[0] * s4_ref[...].reshape(1, 1, cin)
                + b4_ref[...].reshape(1, 1, cin), 0.0)
            res = jnp.dot(a4.reshape(th * w, cin).astype(jnp.bfloat16),
                          wd_ref[...],
                          preferred_element_type=jnp.float32).reshape(th, w, ctot)
        else:
            res = x_ref[0]

        out1 = o1_ref[0].astype(jnp.float32)
        out2 = x2c_ref[0].astype(jnp.float32)   # center of the haloed tile == out2
        full = jnp.concatenate([out1, out2, out3], axis=-1) + res
        out_ref[...] = full.reshape(1, th, w, ctot)

    return kernel


# --------------------------------------------------------------------------
# host-side glue
# --------------------------------------------------------------------------

def _vmem_budget_bytes():
    try:
        vmem = int(pltpu.get_tpu_info().vmem_capacity_bytes)
    except Exception:
        vmem = 64 << 20          # conservative: v7x per-TensorCore VMEM
    # Stay well under the default scoped-VMEM limit on every generation so
    # double buffering survives without a vmem_limit_bytes override.
    return min(vmem // 8, 12 << 20)


def _pick_row_tile(n, h, w, c_max):
    """Largest divisor-of-H row tile whose per-step working set fits a
    conservative VMEM budget; prefer >= 4 grid steps (keeps both v7x
    TensorCores busy with the fully parallel grid)."""
    budget = _vmem_budget_bytes()

    def per_step(th):
        # ~ double-buffered input/output tiles + in-kernel f32 temporaries
        return (th + 2) * (w + 2) * c_max * 4 * 6

    divs = [d for d in range(1, h + 1) if h % d == 0 and per_step(d) <= budget]
    if not divs:
        return 1
    pref = [d for d in divs if n * (h // d) >= 4]
    return max(pref) if pref else max(divs)


def _conv_weight_slab(w_oihw):
    # (Cout, Cin, 3, 3) -> (3, 3*Cin, Cout): per-dy slab, rows ordered dx-major
    # to match the channel-wise fold of the three dx taps.
    w_hwio = jnp.transpose(w_oihw, (2, 3, 1, 0))
    kh, kw, cin, cout = w_hwio.shape
    return w_hwio.reshape(kh, kw * cin, cout).astype(jnp.bfloat16)


def _bn_scale_shift_from_sums(s, ss, count, gamma, beta, eps=1e-5):
    mean = s / count
    var = jnp.maximum(ss / count - mean * mean, 0.0)       # biased variance
    scale = gamma * jax.lax.rsqrt(var + eps)
    shift = beta - mean * scale
    return (scale.reshape(1, -1).astype(jnp.float32),
            shift.reshape(1, -1).astype(jnp.float32))


def _halo_specs(th, w, c, h):
    """Center row tile + two single-row halo BlockSpecs (index clamped at the
    image border; the clamped rows are zero-gated inside the kernel)."""
    center = pl.BlockSpec((1, th, w, c), lambda b, hb: (b, hb, 0, 0))
    top = pl.BlockSpec((1, 1, w, c),
                       lambda b, hb: (b, jnp.maximum(hb * th - 1, 0), 0, 0))
    bot = pl.BlockSpec((1, 1, w, c),
                       lambda b, hb: (b, jnp.minimum(hb * th + th, h - 1), 0, 0))
    return center, top, bot


def _fused_bn_relu_conv3x3(x_nhwc, scale, shift, w_oihw, th):
    n, h, w, cin = x_nhwc.shape
    cout = w_oihw.shape[0]
    n_h = h // th
    wslab = _conv_weight_slab(w_oihw)
    center, top, bot = _halo_specs(th, w, cin, h)
    kernel = _make_stage_kernel(th, w, cin, cout, n_h, jnp.bfloat16)

    out, stats = pl.pallas_call(
        kernel,
        out_shape=(jax.ShapeDtypeStruct((n, h, w, cout), jnp.bfloat16),
                   jax.ShapeDtypeStruct((n, n_h, 2, cout), jnp.float32)),
        grid=(n, n_h),
        in_specs=[center, top, bot,
                  pl.BlockSpec((1, cin), lambda b, hb: (0, 0)),
                  pl.BlockSpec((1, cin), lambda b, hb: (0, 0)),
                  pl.BlockSpec((3, 3 * cin, cout), lambda b, hb: (0, 0, 0))],
        out_specs=(pl.BlockSpec((1, th, w, cout), lambda b, hb: (b, hb, 0, 0)),
                   pl.BlockSpec((1, 1, 2, cout), lambda b, hb: (b, hb, 0, 0))),
        compiler_params=pltpu.CompilerParams(
            dimension_semantics=("parallel", "parallel")),
    )(x_nhwc, x_nhwc, x_nhwc, scale, shift, wslab)
    return out, stats


def _fused_final_stage(out2, s3, b3, w3_oihw, out1, x_nhwc, params, th, s4, b4):
    n, h, w, c2 = out2.shape
    c1 = out1.shape[-1]
    cin = x_nhwc.shape[-1]
    has_ds = params.get("w_ds") is not None
    ctot = int(params["w_ds"].shape[0]) if has_ds else cin
    n_h = h // th

    w3 = _conv_weight_slab(w3_oihw)
    center2, top2, bot2 = _halo_specs(th, w, c2, h)
    center1 = pl.BlockSpec((1, th, w, c1), lambda b, hb: (b, hb, 0, 0))
    centerx = pl.BlockSpec((1, th, w, cin), lambda b, hb: (b, hb, 0, 0))

    ins = [out2, out2, out2, s3, b3, w3, out1, x_nhwc]
    in_specs = [center2, top2, bot2,
                pl.BlockSpec((1, c2), lambda b, hb: (0, 0)),
                pl.BlockSpec((1, c2), lambda b, hb: (0, 0)),
                pl.BlockSpec((3, 3 * c2, c2), lambda b, hb: (0, 0, 0)),
                center1, centerx]
    if has_ds:
        wd = jnp.transpose(params["w_ds"].reshape(ctot, cin),
                           (1, 0)).astype(jnp.bfloat16)          # (Cin, Ctot)
        ins += [s4, b4, wd]
        in_specs += [pl.BlockSpec((1, cin), lambda b, hb: (0, 0)),
                     pl.BlockSpec((1, cin), lambda b, hb: (0, 0)),
                     pl.BlockSpec((cin, ctot), lambda b, hb: (0, 0))]

    kernel = _make_final_kernel(th, w, cin, c1, c2, ctot, n_h, has_ds)
    return pl.pallas_call(
        kernel,
        out_shape=jax.ShapeDtypeStruct((n, h, w, ctot), jnp.float32),
        grid=(n, n_h),
        in_specs=in_specs,
        out_specs=pl.BlockSpec((1, th, w, ctot), lambda b, hb: (b, hb, 0, 0)),
        compiler_params=pltpu.CompilerParams(
            dimension_semantics=("parallel", "parallel")),
    )(*ins)


def conv_block_forward(x_nchw, params):
    x = jnp.transpose(x_nchw, (0, 2, 3, 1)).astype(jnp.float32)     # NHWC
    n, h, w, cin = x.shape
    c1 = params["w1"].shape[0]
    c2 = params["w2"].shape[0]
    ctot = int(params["w_ds"].shape[0]) if params.get("w_ds") is not None else cin
    th = _pick_row_tile(n, h, w, max(cin, c1, c2, ctot))
    count = float(n * h * w)

    # bn1 / bn4 statistics: one shared pass over x (training-mode BN).
    xs = jnp.sum(x, axis=(0, 1, 2))
    xss = jnp.sum(x * x, axis=(0, 1, 2))
    s1, b1 = _bn_scale_shift_from_sums(xs, xss, count,
                                       params["bn1_g"], params["bn1_b"])

    out1, st1 = _fused_bn_relu_conv3x3(x, s1, b1, params["w1"], th)
    s2, b2 = _bn_scale_shift_from_sums(st1[:, :, 0, :].sum(axis=(0, 1)),
                                       st1[:, :, 1, :].sum(axis=(0, 1)),
                                       count, params["bn2_g"], params["bn2_b"])

    out2, st2 = _fused_bn_relu_conv3x3(out1, s2, b2, params["w2"], th)
    s3, b3 = _bn_scale_shift_from_sums(st2[:, :, 0, :].sum(axis=(0, 1)),
                                       st2[:, :, 1, :].sum(axis=(0, 1)),
                                       count, params["bn3_g"], params["bn3_b"])

    if params.get("w_ds") is not None:
        s4, b4 = _bn_scale_shift_from_sums(xs, xss, count,
                                           params["bn4_g"], params["bn4_b"])
    else:
        s4 = b4 = None

    out = _fused_final_stage(out2, s3, b3, params["w3"], out1, x, params, th,
                             s4, b4)
    return jnp.transpose(out, (0, 3, 1, 2))                         # NCHW


# --------------------------------------------------------------------------
# deterministic parameters + pure-JAX reference (sanity check)
# --------------------------------------------------------------------------

def init_params(key, in_planes, out_planes):
    c1 = out_planes // 2
    c2 = out_planes // 4
    ks = jax.random.split(key, 12)

    def conv_w(k, cout, cin, kh, kw):
        fan_in = cin * kh * kw
        bound = 1.0 / jnp.sqrt(jnp.float32(fan_in))
        return jax.random.uniform(k, (cout, cin, kh, kw), jnp.float32,
                                  -bound, bound)

    p = {
        "w1": conv_w(ks[0], c1, in_planes, 3, 3),
        "w2": conv_w(ks[1], c2, c1, 3, 3),
        "w3": conv_w(ks[2], c2, c2, 3, 3),
        "bn1_g": 1.0 + 0.1 * jax.random.normal(ks[3], (in_planes,), jnp.float32),
        "bn1_b": 0.1 * jax.random.normal(ks[4], (in_planes,), jnp.float32),
        "bn2_g": 1.0 + 0.1 * jax.random.normal(ks[5], (c1,), jnp.float32),
        "bn2_b": 0.1 * jax.random.normal(ks[6], (c1,), jnp.float32),
        "bn3_g": 1.0 + 0.1 * jax.random.normal(ks[7], (c2,), jnp.float32),
        "bn3_b": 0.1 * jax.random.normal(ks[8], (c2,), jnp.float32),
    }
    if in_planes != out_planes:
        p["w_ds"] = conv_w(ks[9], out_planes, in_planes, 1, 1)
        p["bn4_g"] = 1.0 + 0.1 * jax.random.normal(ks[10], (in_planes,), jnp.float32)
        p["bn4_b"] = 0.1 * jax.random.normal(ks[11], (in_planes,), jnp.float32)
    else:
        p["w_ds"] = None
    return p


def _reference_forward(x_nchw, params):
    x = jnp.transpose(x_nchw, (0, 2, 3, 1))

    def bn_relu(v, g, b):
        mean = jnp.mean(v, axis=(0, 1, 2))
        var = jnp.var(v, axis=(0, 1, 2))
        return jnp.maximum((v - mean) * (g * jax.lax.rsqrt(var + 1e-5)) + b, 0.0)

    def conv(v, w_oihw, pad):
        return jax.lax.conv_general_dilated(
            v, jnp.transpose(w_oihw, (2, 3, 1, 0)), (1, 1), pad,
            dimension_numbers=("NHWC", "HWIO", "NHWC"))

    o1 = conv(bn_relu(x, params["bn1_g"], params["bn1_b"]), params["w1"],
              ((1, 1), (1, 1)))
    o2 = conv(bn_relu(o1, params["bn2_g"], params["bn2_b"]), params["w2"],
              ((1, 1), (1, 1)))
    o3 = conv(bn_relu(o2, params["bn3_g"], params["bn3_b"]), params["w3"],
              ((1, 1), (1, 1)))
    cat = jnp.concatenate([o1, o2, o3], axis=-1)
    if params.get("w_ds") is not None:
        res = conv(bn_relu(x, params["bn4_g"], params["bn4_b"]),
                   params["w_ds"], ((0, 0), (0, 0)))
    else:
        res = x
    return jnp.transpose(cat + res, (0, 3, 1, 2))


if __name__ == "__main__":
    key = jax.random.PRNGKey(0)
    k1, k2, k3, k4 = jax.random.split(key, 4)

    fwd = jax.jit(conv_block_forward)

    # case 1: channel-expanding block (BN4 + 1x1 downsample residual branch)
    in_planes, out_planes = 4, 16
    x = jax.random.normal(k1, (2, in_planes, 16, 16), jnp.float32)
    params = init_params(k2, in_planes, out_planes)
    out = fwd(x, params)
    jax.block_until_ready(out)
    assert out.shape == (2, out_planes, 16, 16), out.shape
    assert out.dtype == jnp.float32
    ref = _reference_forward(x, params)
    err = float(jnp.max(jnp.abs(out - ref)))
    # loose tolerance: bf16 MXU operands + bf16 inter-stage activations
    assert err < 0.15, f"max abs error vs reference (downsample case): {err}"

    # case 2: identity-residual block (in_planes == out_planes)
    in_planes = out_planes = 16
    x2 = jax.random.normal(k3, (2, in_planes, 16, 16), jnp.float32)
    params2 = init_params(k4, in_planes, out_planes)
    out2 = fwd(x2, params2)
    jax.block_until_ready(out2)
    assert out2.shape == (2, out_planes, 16, 16), out2.shape
    ref2 = _reference_forward(x2, params2)
    err2 = float(jnp.max(jnp.abs(out2 - ref2)))
    assert err2 < 0.15, f"max abs error vs reference (identity case): {err2}"

    print("KERNEL_OK")
</pallas_src>

<mosaic_0001>
module attributes {stable_mosaic.version = 11 : i64} {
  func.func @kernel(%arg0: i32, %arg1: i32, %arg2: memref<1x8x16x8xbf16, #tpu.memory_space<vmem>>, %arg3: memref<1x1x16x8xbf16, #tpu.memory_space<vmem>>, %arg4: memref<1x1x16x8xbf16, #tpu.memory_space<vmem>>, %arg5: memref<1x8xf32, #tpu.memory_space<vmem>>, %arg6: memref<1x8xf32, #tpu.memory_space<vmem>>, %arg7: memref<3x24x4xbf16, #tpu.memory_space<vmem>>, %arg8: memref<1x8x16x4xbf16, #tpu.memory_space<vmem>>, %arg9: memref<1x1x2x4xf32, #tpu.memory_space<vmem>>) attributes {dimension_semantics = [#tpu.dimension_semantics<parallel>, #tpu.dimension_semantics<parallel>], iteration_bounds = array<i64: 2, 2>, scalar_prefetch = 0 : i64, scratch_operands = 0 : i64, tpu.core_type = #tpu.core_type<tc>, window_params = [{transform_indices = @transform_0, window_bounds = array<i64: 1, 8, 16, 8>}, {transform_indices = @transform_1, window_bounds = array<i64: 1, 1, 16, 8>}, {transform_indices = @transform_2, window_bounds = array<i64: 1, 1, 16, 8>}, {pipeline_mode = #tpu.pipeline_mode<synchronous>, transform_indices = @transform_3, window_bounds = array<i64: 1, 8>}, {pipeline_mode = #tpu.pipeline_mode<synchronous>, transform_indices = @transform_4, window_bounds = array<i64: 1, 8>}, {pipeline_mode = #tpu.pipeline_mode<synchronous>, transform_indices = @transform_5, window_bounds = array<i64: 3, 24, 4>}, {transform_indices = @transform_6, window_bounds = array<i64: 1, 8, 16, 4>}, {transform_indices = @transform_7, window_bounds = array<i64: 1, 1, 2, 4>}]} {
    %c0 = arith.constant 0 : index
    %c0_0 = arith.constant 0 : index
    %0 = vector.load %arg5[%c0, %c0_0] : memref<1x8xf32, #tpu.memory_space<vmem>>, vector<1x8xf32>
    %1 = vector.shape_cast %0 : vector<1x8xf32> to vector<1x1x8xf32>
    %c0_1 = arith.constant 0 : index
    %c0_2 = arith.constant 0 : index
    %2 = vector.load %arg6[%c0_1, %c0_2] : memref<1x8xf32, #tpu.memory_space<vmem>>, vector<1x8xf32>
    %3 = vector.shape_cast %2 : vector<1x8xf32> to vector<1x1x8xf32>
    %c0_i32 = arith.constant 0 : i32
    %4 = arith.cmpi sgt, %arg1, %c0_i32 : i32
    %5 = arith.extui %4 : i1 to i32
    %6 = arith.sitofp %5 : i32 to f32
    %c1_i32 = arith.constant 1 : i32
    %7 = arith.cmpi slt, %arg1, %c1_i32 : i32
    %8 = arith.extui %7 : i1 to i32
    %9 = arith.sitofp %8 : i32 to f32
    %c0_3 = arith.constant 0 : index
    %c0_4 = arith.constant 0 : index
    %c0_5 = arith.constant 0 : index
    %c0_6 = arith.constant 0 : index
    %10 = vector.load %arg3[%c0_3, %c0_4, %c0_5, %c0_6] : memref<1x1x16x8xbf16, #tpu.memory_space<vmem>>, vector<1x1x16x8xbf16>
    %11 = vector.shape_cast %10 : vector<1x1x16x8xbf16> to vector<1x16x8xbf16>
    %12 = arith.extf %11 : vector<1x16x8xbf16> to vector<1x16x8xf32>
    %13 = vector.broadcast %1 : vector<1x1x8xf32> to vector<1x16x8xf32>
    %14 = arith.mulf %12, %13 : vector<1x16x8xf32>
    %15 = vector.broadcast %3 : vector<1x1x8xf32> to vector<1x16x8xf32>
    %16 = arith.addf %14, %15 : vector<1x16x8xf32>
    %cst = arith.constant 0.000000e+00 : f32
    %17 = vector.broadcast %cst : f32 to vector<1x16x8xf32>
    %18 = arith.maximumf %16, %17 : vector<1x16x8xf32>
    %19 = vector.broadcast %6 : f32 to vector<1x16x8xf32>
    %20 = arith.mulf %18, %19 : vector<1x16x8xf32>
    %c0_7 = arith.constant 0 : index
    %c0_8 = arith.constant 0 : index
    %c0_9 = arith.constant 0 : index
    %c0_10 = arith.constant 0 : index
    %21 = vector.load %arg2[%c0_7, %c0_8, %c0_9, %c0_10] : memref<1x8x16x8xbf16, #tpu.memory_space<vmem>>, vector<1x8x16x8xbf16>
    %22 = vector.shape_cast %21 : vector<1x8x16x8xbf16> to vector<8x16x8xbf16>
    %23 = arith.extf %22 : vector<8x16x8xbf16> to vector<8x16x8xf32>
    %24 = vector.broadcast %1 : vector<1x1x8xf32> to vector<8x16x8xf32>
    %25 = arith.mulf %23, %24 : vector<8x16x8xf32>
    %26 = vector.broadcast %3 : vector<1x1x8xf32> to vector<8x16x8xf32>
    %27 = arith.addf %25, %26 : vector<8x16x8xf32>
    %cst_11 = arith.constant 0.000000e+00 : f32
    %28 = vector.broadcast %cst_11 : f32 to vector<8x16x8xf32>
    %29 = arith.maximumf %27, %28 : vector<8x16x8xf32>
    %c0_12 = arith.constant 0 : index
    %c0_13 = arith.constant 0 : index
    %c0_14 = arith.constant 0 : index
    %c0_15 = arith.constant 0 : index
    %30 = vector.load %arg4[%c0_12, %c0_13, %c0_14, %c0_15] : memref<1x1x16x8xbf16, #tpu.memory_space<vmem>>, vector<1x1x16x8xbf16>
    %31 = vector.shape_cast %30 : vector<1x1x16x8xbf16> to vector<1x16x8xbf16>
    %32 = arith.extf %31 : vector<1x16x8xbf16> to vector<1x16x8xf32>
    %33 = vector.broadcast %1 : vector<1x1x8xf32> to vector<1x16x8xf32>
    %34 = arith.mulf %32, %33 : vector<1x16x8xf32>
    %35 = vector.broadcast %3 : vector<1x1x8xf32> to vector<1x16x8xf32>
    %36 = arith.addf %34, %35 : vector<1x16x8xf32>
    %cst_16 = arith.constant 0.000000e+00 : f32
    %37 = vector.broadcast %cst_16 : f32 to vector<1x16x8xf32>
    %38 = arith.maximumf %36, %37 : vector<1x16x8xf32>
    %39 = vector.broadcast %9 : f32 to vector<1x16x8xf32>
    %40 = arith.mulf %38, %39 : vector<1x16x8xf32>
    %41 = tpu.concatenate %20, %29, %40 in 0 : vector<1x16x8xf32>, vector<8x16x8xf32>, vector<1x16x8xf32> -> vector<10x16x8xf32>
    %cst_17 = arith.constant 0.000000e+00 : f32
    %42 = vector.broadcast %cst_17 : f32 to vector<10x1x8xf32>
    %43 = tpu.concatenate %42, %41, %42 in 1 : vector<10x1x8xf32>, vector<10x16x8xf32>, vector<10x1x8xf32> -> vector<10x18x8xf32>
    %44 = vector.extract_strided_slice %43 {offsets = [0, 0, 0], sizes = [10, 16, 8], strides = [1, 1, 1]} : vector<10x18x8xf32> to vector<10x16x8xf32>
    %45 = vector.extract_strided_slice %43 {offsets = [0, 1, 0], sizes = [10, 16, 8], strides = [1, 1, 1]} : vector<10x18x8xf32> to vector<10x16x8xf32>
    %46 = vector.extract_strided_slice %43 {offsets = [0, 2, 0], sizes = [10, 16, 8], strides = [1, 1, 1]} : vector<10x18x8xf32> to vector<10x16x8xf32>
    %47 = tpu.concatenate %44, %45, %46 in 2 : vector<10x16x8xf32>, vector<10x16x8xf32>, vector<10x16x8xf32> -> vector<10x16x24xf32>
    %48 = arith.truncf %47 : vector<10x16x24xf32> to vector<10x16x24xbf16>
    %cst_18 = arith.constant 0.000000e+00 : f32
    %49 = vector.broadcast %cst_18 : f32 to vector<128x4xf32>
    %50 = vector.extract_strided_slice %48 {offsets = [0, 0, 0], sizes = [8, 16, 24], strides = [1, 1, 1]} : vector<10x16x24xbf16> to vector<8x16x24xbf16>
    %51 = vector.shape_cast %50 : vector<8x16x24xbf16> to vector<128x24xbf16>
    %c0_19 = arith.constant 0 : index
    %c0_20 = arith.constant 0 : index
    %c0_21 = arith.constant 0 : index
    %52 = vector.load %arg7[%c0_19, %c0_20, %c0_21] : memref<3x24x4xbf16, #tpu.memory_space<vmem>>, vector<1x24x4xbf16>
    %53 = vector.shape_cast %52 : vector<1x24x4xbf16> to vector<24x4xbf16>
    %cst_22 = arith.constant dense<0.000000e+00> : vector<128x4xf32>
    %54 = tpu.matmul %51, %53, %cst_22 {dimension_numbers = #tpu.dot_dimension_numbers<[1], [0], [0], [1], [0, 0, 1, 1], [], []>} : vector<128x24xbf16>, vector<24x4xbf16>, vector<128x4xf32> -> vector<128x4xf32>
    %55 = arith.addf %49, %54 : vector<128x4xf32>
    %56 = vector.extract_strided_slice %48 {offsets = [1, 0, 0], sizes = [8, 16, 24], strides = [1, 1, 1]} : vector<10x16x24xbf16> to vector<8x16x24xbf16>
    %57 = vector.shape_cast %56 : vector<8x16x24xbf16> to vector<128x24xbf16>
    %c1 = arith.constant 1 : index
    %c0_23 = arith.constant 0 : index
    %c0_24 = arith.constant 0 : index
    %58 = vector.load %arg7[%c1, %c0_23, %c0_24] : memref<3x24x4xbf16, #tpu.memory_space<vmem>>, vector<1x24x4xbf16>
    %59 = vector.shape_cast %58 : vector<1x24x4xbf16> to vector<24x4xbf16>
    %cst_25 = arith.constant dense<0.000000e+00> : vector<128x4xf32>
    %60 = tpu.matmul %57, %59, %cst_25 {dimension_numbers = #tpu.dot_dimension_numbers<[1], [0], [0], [1], [0, 0, 1, 1], [], []>} : vector<128x24xbf16>, vector<24x4xbf16>, vector<128x4xf32> -> vector<128x4xf32>
    %61 = arith.addf %55, %60 : vector<128x4xf32>
    %62 = vector.extract_strided_slice %48 {offsets = [2, 0, 0], sizes = [8, 16, 24], strides = [1, 1, 1]} : vector<10x16x24xbf16> to vector<8x16x24xbf16>
    %63 = vector.shape_cast %62 : vector<8x16x24xbf16> to vector<128x24xbf16>
    %c2 = arith.constant 2 : index
    %c0_26 = arith.constant 0 : index
    %c0_27 = arith.constant 0 : index
    %64 = vector.load %arg7[%c2, %c0_26, %c0_27] : memref<3x24x4xbf16, #tpu.memory_space<vmem>>, vector<1x24x4xbf16>
    %65 = vector.shape_cast %64 : vector<1x24x4xbf16> to vector<24x4xbf16>
    %cst_28 = arith.constant dense<0.000000e+00> : vector<128x4xf32>
    %66 = tpu.matmul %63, %65, %cst_28 {dimension_numbers = #tpu.dot_dimension_numbers<[1], [0], [0], [1], [0, 0, 1, 1], [], []>} : vector<128x24xbf16>, vector<24x4xbf16>, vector<128x4xf32> -> vector<128x4xf32>
    %67 = arith.addf %61, %66 : vector<128x4xf32>
    %68 = vector.shape_cast %67 : vector<128x4xf32> to vector<8x16x4xf32>
    %cst_29 = arith.constant dense<0.000000e+00> : vector<4xf32>
    %69 = vector.multi_reduction <add>, %68, %cst_29 [0, 1] : vector<8x16x4xf32> to vector<4xf32>
    %70 = arith.mulf %68, %68 : vector<8x16x4xf32>
    %cst_30 = arith.constant dense<0.000000e+00> : vector<4xf32>
    %71 = vector.multi_reduction <add>, %70, %cst_30 [0, 1] : vector<8x16x4xf32> to vector<4xf32>
    %72 = vector.shape_cast %69 : vector<4xf32> to vector<1x4xf32>
    %73 = vector.shape_cast %71 : vector<4xf32> to vector<1x4xf32>
    %74 = tpu.concatenate %72, %73 in 0 : vector<1x4xf32>, vector<1x4xf32> -> vector<2x4xf32>
    %75 = vector.shape_cast %74 : vector<2x4xf32> to vector<1x1x2x4xf32>
    %c0_31 = arith.constant 0 : index
    %c0_32 = arith.constant 0 : index
    %c0_33 = arith.constant 0 : index
    %c0_34 = arith.constant 0 : index
    %76 = vector.load %arg9[%c0_31, %c0_32, %c0_33, %c0_34] : memref<1x1x2x4xf32, #tpu.memory_space<vmem>>, vector<1x1x2x4xf32>
    tpu.vector_store %arg9[%c0_31, %c0_32, %c0_33, %c0_34], %75 {strides = array<i32>} : memref<1x1x2x4xf32, #tpu.memory_space<vmem>>, vector<1x1x2x4xf32>,
    %77 = vector.shape_cast %68 : vector<8x16x4xf32> to vector<1x8x16x4xf32>
    %78 = arith.truncf %77 : vector<1x8x16x4xf32> to vector<1x8x16x4xbf16>
    %c0_35 = arith.constant 0 : index
    %c0_36 = arith.constant 0 : index
    %c0_37 = arith.constant 0 : index
    %c0_38 = arith.constant 0 : index
    %79 = vector.load %arg8[%c0_35, %c0_36, %c0_37, %c0_38] : memref<1x8x16x4xbf16, #tpu.memory_space<vmem>>, vector<1x8x16x4xbf16>
    tpu.vector_store %arg8[%c0_35, %c0_36, %c0_37, %c0_38], %78 {strides = array<i32>} : memref<1x8x16x4xbf16, #tpu.memory_space<vmem>>, vector<1x8x16x4xbf16>,
    return
  }
  func.func @transform_0(%arg0: i32, %arg1: i32) -> (i32, i32, i32, i32) {
    %c0_i32 = arith.constant 0 : i32
    %c0_i32_0 = arith.constant 0 : i32
    %c0_i32_1 = arith.constant 0 : i32
    return %arg0, %arg1, %c0_i32, %c0_i32_0 : i32, i32, i32, i32
  }
  func.func @transform_1(%arg0: i32, %arg1: i32) -> (i32, i32, i32, i32) {
    %c8_i32 = arith.constant 8 : i32
    %0 = arith.muli %arg1, %c8_i32 : i32
    %c1_i32 = arith.constant 1 : i32
    %1 = arith.subi %0, %c1_i32 : i32
    %c0_i32 = arith.constant 0 : i32
    %2 = arith.maxsi %1, %c0_i32 : i32
    %c0_i32_0 = arith.constant 0 : i32
    %c0_i32_1 = arith.constant 0 : i32
    %c0_i32_2 = arith.constant 0 : i32
    return %arg0, %2, %c0_i32_0, %c0_i32_1 : i32, i32, i32, i32
  }
  func.func @transform_2(%arg0: i32, %arg1: i32) -> (i32, i32, i32, i32) {
    %c8_i32 = arith.constant 8 : i32
    %0 = arith.muli %arg1, %c8_i32 : i32
    %c8_i32_0 = arith.constant 8 : i32
    %1 = arith.addi %0, %c8_i32_0 : i32
    %c15_i32 = arith.constant 15 : i32
    %2 = arith.minsi %1, %c15_i32 : i32
    %c0_i32 = arith.constant 0 : i32
    %c0_i32_1 = arith.constant 0 : i32
    %c0_i32_2 = arith.constant 0 : i32
    return %arg0, %2, %c0_i32, %c0_i32_1 : i32, i32, i32, i32
  }
  func.func @transform_3(%arg0: i32, %arg1: i32) -> (i32, i32) {
    %c0_i32 = arith.constant 0 : i32
    %c0_i32_0 = arith.constant 0 : i32
    %c0_i32_1 = arith.constant 0 : i32
    return %c0_i32, %c0_i32_0 : i32, i32
  }
  func.func @transform_4(%arg0: i32, %arg1: i32) -> (i32, i32) {
    %c0_i32 = arith.constant 0 : i32
    %c0_i32_0 = arith.constant 0 : i32
    %c0_i32_1 = arith.constant 0 : i32
    return %c0_i32, %c0_i32_0 : i32, i32
  }
  func.func @transform_5(%arg0: i32, %arg1: i32) -> (i32, i32, i32) {
    %c0_i32 = arith.constant 0 : i32
    %c0_i32_0 = arith.constant 0 : i32
    %c0_i32_1 = arith.constant 0 : i32
    %c0_i32_2 = arith.constant 0 : i32
    return %c0_i32, %c0_i32_0, %c0_i32_1 : i32, i32, i32
  }
  func.func @transform_6(%arg0: i32, %arg1: i32) -> (i32, i32, i32, i32) {
    %c0_i32 = arith.constant 0 : i32
    %c0_i32_0 = arith.constant 0 : i32
    %c0_i32_1 = arith.constant 0 : i32
    return %arg0, %arg1, %c0_i32, %c0_i32_0 : i32, i32, i32, i32
  }
  func.func @transform_7(%arg0: i32, %arg1: i32) -> (i32, i32, i32, i32) {
    %c0_i32 = arith.constant 0 : i32
    %c0_i32_0 = arith.constant 0 : i32
    %c0_i32_1 = arith.constant 0 : i32
    return %arg0, %arg1, %c0_i32, %c0_i32_0 : i32, i32, i32, i32
  }
}

module attributes {stable_mosaic.version = 11 : i64} {
  func.func @kernel(%arg0: i32, %arg1: i32, %arg2: memref<1x8x16x4xf32, #tpu.memory_space<vmem>>, %arg3: memref<1x1x16x4xf32, #tpu.memory_space<vmem>>, %arg4: memref<1x1x16x4xf32, #tpu.memory_space<vmem>>, %arg5: memref<1x4xf32, #tpu.memory_space<vmem>>, %arg6: memref<1x4xf32, #tpu.memory_space<vmem>>, %arg7: memref<3x12x8xbf16, #tpu.memory_space<vmem>>, %arg8: memref<1x8x16x8xbf16, #tpu.memory_space<vmem>>, %arg9: memref<1x1x2x8xf32, #tpu.memory_space<vmem>>) attributes {dimension_semantics = [#tpu.dimension_semantics<parallel>, #tpu.dimension_semantics<parallel>], iteration_bounds = array<i64: 2, 2>, scalar_prefetch = 0 : i64, scratch_operands = 0 : i64, tpu.core_type = #tpu.core_type<tc>, window_params = [{transform_indices = @transform_0, window_bounds = array<i64: 1, 8, 16, 4>}, {transform_indices = @transform_1, window_bounds = array<i64: 1, 1, 16, 4>}, {transform_indices = @transform_2, window_bounds = array<i64: 1, 1, 16, 4>}, {pipeline_mode = #tpu.pipeline_mode<synchronous>, transform_indices = @transform_3, window_bounds = array<i64: 1, 4>}, {pipeline_mode = #tpu.pipeline_mode<synchronous>, transform_indices = @transform_4, window_bounds = array<i64: 1, 4>}, {pipeline_mode = #tpu.pipeline_mode<synchronous>, transform_indices = @transform_5, window_bounds = array<i64: 3, 12, 8>}, {transform_indices = @transform_6, window_bounds = array<i64: 1, 8, 16, 8>}, {transform_indices = @transform_7, window_bounds = array<i64: 1, 1, 2, 8>}]} {
    %c0 = arith.constant 0 : index
    %c0_0 = arith.constant 0 : index
    %0 = vector.load %arg5[%c0, %c0_0] : memref<1x4xf32, #tpu.memory_space<vmem>>, vector<1x4xf32>
    %1 = vector.shape_cast %0 : vector<1x4xf32> to vector<1x1x4xf32>
    %c0_1 = arith.constant 0 : index
    %c0_2 = arith.constant 0 : index
    %2 = vector.load %arg6[%c0_1, %c0_2] : memref<1x4xf32, #tpu.memory_space<vmem>>, vector<1x4xf32>
    %3 = vector.shape_cast %2 : vector<1x4xf32> to vector<1x1x4xf32>
    %c0_i32 = arith.constant 0 : i32
    %4 = arith.cmpi sgt, %arg1, %c0_i32 : i32
    %5 = arith.extui %4 : i1 to i32
    %6 = arith.sitofp %5 : i32 to f32
    %c1_i32 = arith.constant 1 : i32
    %7 = arith.cmpi slt, %arg1, %c1_i32 : i32
    %8 = arith.extui %7 : i1 to i32
    %9 = arith.sitofp %8 : i32 to f32
    %c0_3 = arith.constant 0 : index
    %c0_4 = arith.constant 0 : index
    %c0_5 = arith.constant 0 : index
    %c0_6 = arith.constant 0 : index
    %10 = vector.load %arg3[%c0_3, %c0_4, %c0_5, %c0_6] : memref<1x1x16x4xf32, #tpu.memory_space<vmem>>, vector<1x1x16x4xf32>
    %11 = vector.shape_cast %10 : vector<1x1x16x4xf32> to vector<1x16x4xf32>
    %12 = vector.broadcast %1 : vector<1x1x4xf32> to vector<1x16x4xf32>
    %13 = arith.mulf %11, %12 : vector<1x16x4xf32>
    %14 = vector.broadcast %3 : vector<1x1x4xf32> to vector<1x16x4xf32>
    %15 = arith.addf %13, %14 : vector<1x16x4xf32>
    %cst = arith.constant 0.000000e+00 : f32
    %16 = vector.broadcast %cst : f32 to vector<1x16x4xf32>
    %17 = arith.maximumf %15, %16 : vector<1x16x4xf32>
    %18 = vector.broadcast %6 : f32 to vector<1x16x4xf32>
    %19 = arith.mulf %17, %18 : vector<1x16x4xf32>
    %c0_7 = arith.constant 0 : index
    %c0_8 = arith.constant 0 : index
    %c0_9 = arith.constant 0 : index
    %c0_10 = arith.constant 0 : index
    %20 = vector.load %arg2[%c0_7, %c0_8, %c0_9, %c0_10] : memref<1x8x16x4xf32, #tpu.memory_space<vmem>>, vector<1x8x16x4xf32>
    %21 = vector.shape_cast %20 : vector<1x8x16x4xf32> to vector<8x16x4xf32>
    %22 = vector.broadcast %1 : vector<1x1x4xf32> to vector<8x16x4xf32>
    %23 = arith.mulf %21, %22 : vector<8x16x4xf32>
    %24 = vector.broadcast %3 : vector<1x1x4xf32> to vector<8x16x4xf32>
    %25 = arith.addf %23, %24 : vector<8x16x4xf32>
    %cst_11 = arith.constant 0.000000e+00 : f32
    %26 = vector.broadcast %cst_11 : f32 to vector<8x16x4xf32>
    %27 = arith.maximumf %25, %26 : vector<8x16x4xf32>
    %c0_12 = arith.constant 0 : index
    %c0_13 = arith.constant 0 : index
    %c0_14 = arith.constant 0 : index
    %c0_15 = arith.constant 0 : index
    %28 = vector.load %arg4[%c0_12, %c0_13, %c0_14, %c0_15] : memref<1x1x16x4xf32, #tpu.memory_space<vmem>>, vector<1x1x16x4xf32>
    %29 = vector.shape_cast %28 : vector<1x1x16x4xf32> to vector<1x16x4xf32>
    %30 = vector.broadcast %1 : vector<1x1x4xf32> to vector<1x16x4xf32>
    %31 = arith.mulf %29, %30 : vector<1x16x4xf32>
    %32 = vector.broadcast %3 : vector<1x1x4xf32> to vector<1x16x4xf32>
    %33 = arith.addf %31, %32 : vector<1x16x4xf32>
    %cst_16 = arith.constant 0.000000e+00 : f32
    %34 = vector.broadcast %cst_16 : f32 to vector<1x16x4xf32>
    %35 = arith.maximumf %33, %34 : vector<1x16x4xf32>
    %36 = vector.broadcast %9 : f32 to vector<1x16x4xf32>
    %37 = arith.mulf %35, %36 : vector<1x16x4xf32>
    %38 = tpu.concatenate %19, %27, %37 in 0 : vector<1x16x4xf32>, vector<8x16x4xf32>, vector<1x16x4xf32> -> vector<10x16x4xf32>
    %cst_17 = arith.constant 0.000000e+00 : f32
    %39 = vector.broadcast %cst_17 : f32 to vector<10x1x4xf32>
    %40 = tpu.concatenate %39, %38, %39 in 1 : vector<10x1x4xf32>, vector<10x16x4xf32>, vector<10x1x4xf32> -> vector<10x18x4xf32>
    %41 = vector.extract_strided_slice %40 {offsets = [0, 0, 0], sizes = [10, 16, 4], strides = [1, 1, 1]} : vector<10x18x4xf32> to vector<10x16x4xf32>
    %42 = vector.extract_strided_slice %40 {offsets = [0, 1, 0], sizes = [10, 16, 4], strides = [1, 1, 1]} : vector<10x18x4xf32> to vector<10x16x4xf32>
    %43 = vector.extract_strided_slice %40 {offsets = [0, 2, 0], sizes = [10, 16, 4], strides = [1, 1, 1]} : vector<10x18x4xf32> to vector<10x16x4xf32>
    %44 = tpu.concatenate %41, %42, %43 in 2 : vector<10x16x4xf32>, vector<10x16x4xf32>, vector<10x16x4xf32> -> vector<10x16x12xf32>
    %45 = arith.truncf %44 : vector<10x16x12xf32> to vector<10x16x12xbf16>
    %cst_18 = arith.constant 0.000000e+00 : f32
    %46 = vector.broadcast %cst_18 : f32 to vector<128x8xf32>
    %47 = vector.extract_strided_slice %45 {offsets = [0, 0, 0], sizes = [8, 16, 12], strides = [1, 1, 1]} : vector<10x16x12xbf16> to vector<8x16x12xbf16>
    %48 = vector.shape_cast %47 : vector<8x16x12xbf16> to vector<128x12xbf16>
    %c0_19 = arith.constant 0 : index
    %c0_20 = arith.constant 0 : index
    %c0_21 = arith.constant 0 : index
    %49 = vector.load %arg7[%c0_19, %c0_20, %c0_21] : memref<3x12x8xbf16, #tpu.memory_space<vmem>>, vector<1x12x8xbf16>
    %50 = vector.shape_cast %49 : vector<1x12x8xbf16> to vector<12x8xbf16>
    %cst_22 = arith.constant dense<0.000000e+00> : vector<128x8xf32>
    %51 = tpu.matmul %48, %50, %cst_22 {dimension_numbers = #tpu.dot_dimension_numbers<[1], [0], [0], [1], [0, 0, 1, 1], [], []>} : vector<128x12xbf16>, vector<12x8xbf16>, vector<128x8xf32> -> vector<128x8xf32>
    %52 = arith.addf %46, %51 : vector<128x8xf32>
    %53 = vector.extract_strided_slice %45 {offsets = [1, 0, 0], sizes = [8, 16, 12], strides = [1, 1, 1]} : vector<10x16x12xbf16> to vector<8x16x12xbf16>
    %54 = vector.shape_cast %53 : vector<8x16x12xbf16> to vector<128x12xbf16>
    %c1 = arith.constant 1 : index
    %c0_23 = arith.constant 0 : index
    %c0_24 = arith.constant 0 : index
    %55 = vector.load %arg7[%c1, %c0_23, %c0_24] : memref<3x12x8xbf16, #tpu.memory_space<vmem>>, vector<1x12x8xbf16>
    %56 = vector.shape_cast %55 : vector<1x12x8xbf16> to vector<12x8xbf16>
    %cst_25 = arith.constant dense<0.000000e+00> : vector<128x8xf32>
    %57 = tpu.matmul %54, %56, %cst_25 {dimension_numbers = #tpu.dot_dimension_numbers<[1], [0], [0], [1], [0, 0, 1, 1], [], []>} : vector<128x12xbf16>, vector<12x8xbf16>, vector<128x8xf32> -> vector<128x8xf32>
    %58 = arith.addf %52, %57 : vector<128x8xf32>
    %59 = vector.extract_strided_slice %45 {offsets = [2, 0, 0], sizes = [8, 16, 12], strides = [1, 1, 1]} : vector<10x16x12xbf16> to vector<8x16x12xbf16>
    %60 = vector.shape_cast %59 : vector<8x16x12xbf16> to vector<128x12xbf16>
    %c2 = arith.constant 2 : index
    %c0_26 = arith.constant 0 : index
    %c0_27 = arith.constant 0 : index
    %61 = vector.load %arg7[%c2, %c0_26, %c0_27] : memref<3x12x8xbf16, #tpu.memory_space<vmem>>, vector<1x12x8xbf16>
    %62 = vector.shape_cast %61 : vector<1x12x8xbf16> to vector<12x8xbf16>
    %cst_28 = arith.constant dense<0.000000e+00> : vector<128x8xf32>
    %63 = tpu.matmul %60, %62, %cst_28 {dimension_numbers = #tpu.dot_dimension_numbers<[1], [0], [0], [1], [0, 0, 1, 1], [], []>} : vector<128x12xbf16>, vector<12x8xbf16>, vector<128x8xf32> -> vector<128x8xf32>
    %64 = arith.addf %58, %63 : vector<128x8xf32>
    %65 = vector.shape_cast %64 : vector<128x8xf32> to vector<8x16x8xf32>
    %cst_29 = arith.constant dense<0.000000e+00> : vector<8xf32>
    %66 = vector.multi_reduction <add>, %65, %cst_29 [0, 1] : vector<8x16x8xf32> to vector<8xf32>
    %67 = arith.mulf %65, %65 : vector<8x16x8xf32>
    %cst_30 = arith.constant dense<0.000000e+00> : vector<8xf32>
    %68 = vector.multi_reduction <add>, %67, %cst_30 [0, 1] : vector<8x16x8xf32> to vector<8xf32>
    %69 = vector.shape_cast %66 : vector<8xf32> to vector<1x8xf32>
    %70 = vector.shape_cast %68 : vector<8xf32> to vector<1x8xf32>
    %71 = tpu.concatenate %69, %70 in 0 : vector<1x8xf32>, vector<1x8xf32> -> vector<2x8xf32>
    %72 = vector.shape_cast %71 : vector<2x8xf32> to vector<1x1x2x8xf32>
    %c0_31 = arith.constant 0 : index
    %c0_32 = arith.constant 0 : index
    %c0_33 = arith.constant 0 : index
    %c0_34 = arith.constant 0 : index
    %73 = vector.load %arg9[%c0_31, %c0_32, %c0_33, %c0_34] : memref<1x1x2x8xf32, #tpu.memory_space<vmem>>, vector<1x1x2x8xf32>
    tpu.vector_store %arg9[%c0_31, %c0_32, %c0_33, %c0_34], %72 {strides = array<i32>} : memref<1x1x2x8xf32, #tpu.memory_space<vmem>>, vector<1x1x2x8xf32>,
    %74 = vector.shape_cast %65 : vector<8x16x8xf32> to vector<1x8x16x8xf32>
    %75 = arith.truncf %74 : vector<1x8x16x8xf32> to vector<1x8x16x8xbf16>
    %c0_35 = arith.constant 0 : index
    %c0_36 = arith.constant 0 : index
    %c0_37 = arith.constant 0 : index
    %c0_38 = arith.constant 0 : index
    %76 = vector.load %arg8[%c0_35, %c0_36, %c0_37, %c0_38] : memref<1x8x16x8xbf16, #tpu.memory_space<vmem>>, vector<1x8x16x8xbf16>
    tpu.vector_store %arg8[%c0_35, %c0_36, %c0_37, %c0_38], %75 {strides = array<i32>} : memref<1x8x16x8xbf16, #tpu.memory_space<vmem>>, vector<1x8x16x8xbf16>,
    return
  }
  func.func @transform_0(%arg0: i32, %arg1: i32) -> (i32, i32, i32, i32) {
    %c0_i32 = arith.constant 0 : i32
    %c0_i32_0 = arith.constant 0 : i32
    %c0_i32_1 = arith.constant 0 : i32
    return %arg0, %arg1, %c0_i32, %c0_i32_0 : i32, i32, i32, i32
  }
  func.func @transform_1(%arg0: i32, %arg1: i32) -> (i32, i32, i32, i32) {
    %c8_i32 = arith.constant 8 : i32
    %0 = arith.muli %arg1, %c8_i32 : i32
    %c1_i32 = arith.constant 1 : i32
    %1 = arith.subi %0, %c1_i32 : i32
    %c0_i32 = arith.constant 0 : i32
    %2 = arith.maxsi %1, %c0_i32 : i32
    %c0_i32_0 = arith.constant 0 : i32
    %c0_i32_1 = arith.constant 0 : i32
    %c0_i32_2 = arith.constant 0 : i32
    return %arg0, %2, %c0_i32_0, %c0_i32_1 : i32, i32, i32, i32
  }
  func.func @transform_2(%arg0: i32, %arg1: i32) -> (i32, i32, i32, i32) {
    %c8_i32 = arith.constant 8 : i32
    %0 = arith.muli %arg1, %c8_i32 : i32
    %c8_i32_0 = arith.constant 8 : i32
    %1 = arith.addi %0, %c8_i32_0 : i32
    %c15_i32 = arith.constant 15 : i32
    %2 = arith.minsi %1, %c15_i32 : i32
    %c0_i32 = arith.constant 0 : i32
    %c0_i32_1 = arith.constant 0 : i32
    %c0_i32_2 = arith.constant 0 : i32
    return %arg0, %2, %c0_i32, %c0_i32_1 : i32, i32, i32, i32
  }
  func.func @transform_3(%arg0: i32, %arg1: i32) -> (i32, i32) {
    %c0_i32 = arith.constant 0 : i32
    %c0_i32_0 = arith.constant 0 : i32
    %c0_i32_1 = arith.constant 0 : i32
    return %c0_i32, %c0_i32_0 : i32, i32
  }
  func.func @transform_4(%arg0: i32, %arg1: i32) -> (i32, i32) {
    %c0_i32 = arith.constant 0 : i32
    %c0_i32_0 = arith.constant 0 : i32
    %c0_i32_1 = arith.constant 0 : i32
    return %c0_i32, %c0_i32_0 : i32, i32
  }
  func.func @transform_5(%arg0: i32, %arg1: i32) -> (i32, i32, i32) {
    %c0_i32 = arith.constant 0 : i32
    %c0_i32_0 = arith.constant 0 : i32
    %c0_i32_1 = arith.constant 0 : i32
    %c0_i32_2 = arith.constant 0 : i32
    return %c0_i32, %c0_i32_0, %c0_i32_1 : i32, i32, i32
  }
  func.func @transform_6(%arg0: i32, %arg1: i32) -> (i32, i32, i32, i32) {
    %c0_i32 = arith.constant 0 : i32
    %c0_i32_0 = arith.constant 0 : i32
    %c0_i32_1 = arith.constant 0 : i32
    return %arg0, %arg1, %c0_i32, %c0_i32_0 : i32, i32, i32, i32
  }
  func.func @transform_7(%arg0: i32, %arg1: i32) -> (i32, i32, i32, i32) {
    %c0_i32 = arith.constant 0 : i32
    %c0_i32_0 = arith.constant 0 : i32
    %c0_i32_1 = arith.constant 0 : i32
    return %arg0, %arg1, %c0_i32, %c0_i32_0 : i32, i32, i32, i32
  }
}

module attributes {stable_mosaic.version = 11 : i64} {
  func.func @kernel(%arg0: i32, %arg1: i32, %arg2: memref<1x8x16x4xbf16, #tpu.memory_space<vmem>>, %arg3: memref<1x1x16x4xbf16, #tpu.memory_space<vmem>>, %arg4: memref<1x1x16x4xbf16, #tpu.memory_space<vmem>>, %arg5: memref<1x4xf32, #tpu.memory_space<vmem>>, %arg6: memref<1x4xf32, #tpu.memory_space<vmem>>, %arg7: memref<3x12x4xbf16, #tpu.memory_space<vmem>>, %arg8: memref<1x8x16x8xbf16, #tpu.memory_space<vmem>>, %arg9: memref<1x8x16x4xf32, #tpu.memory_space<vmem>>, %arg10: memref<1x4xf32, #tpu.memory_space<vmem>>, %arg11: memref<1x4xf32, #tpu.memory_space<vmem>>, %arg12: memref<4x16xbf16, #tpu.memory_space<vmem>>, %arg13: memref<1x8x16x16xf32, #tpu.memory_space<vmem>>) attributes {dimension_semantics = [#tpu.dimension_semantics<parallel>, #tpu.dimension_semantics<parallel>], iteration_bounds = array<i64: 2, 2>, scalar_prefetch = 0 : i64, scratch_operands = 0 : i64, tpu.core_type = #tpu.core_type<tc>, window_params = [{transform_indices = @transform_0, window_bounds = array<i64: 1, 8, 16, 4>}, {transform_indices = @transform_1, window_bounds = array<i64: 1, 1, 16, 4>}, {transform_indices = @transform_2, window_bounds = array<i64: 1, 1, 16, 4>}, {pipeline_mode = #tpu.pipeline_mode<synchronous>, transform_indices = @transform_3, window_bounds = array<i64: 1, 4>}, {pipeline_mode = #tpu.pipeline_mode<synchronous>, transform_indices = @transform_4, window_bounds = array<i64: 1, 4>}, {pipeline_mode = #tpu.pipeline_mode<synchronous>, transform_indices = @transform_5, window_bounds = array<i64: 3, 12, 4>}, {transform_indices = @transform_6, window_bounds = array<i64: 1, 8, 16, 8>}, {transform_indices = @transform_7, window_bounds = array<i64: 1, 8, 16, 4>}, {pipeline_mode = #tpu.pipeline_mode<synchronous>, transform_indices = @transform_8, window_bounds = array<i64: 1, 4>}, {pipeline_mode = #tpu.pipeline_mode<synchronous>, transform_indices = @transform_9, window_bounds = array<i64: 1, 4>}, {pipeline_mode = #tpu.pipeline_mode<synchronous>, transform_indices = @transform_10, window_bounds = array<i64: 4, 16>}, {transform_indices = @transform_11, window_bounds = array<i64: 1, 8, 16, 16>}]} {
    %c0 = arith.constant 0 : index
    %c0_0 = arith.constant 0 : index
    %0 = vector.load %arg5[%c0, %c0_0] : memref<1x4xf32, #tpu.memory_space<vmem>>, vector<1x4xf32>
    %1 = vector.shape_cast %0 : vector<1x4xf32> to vector<1x1x4xf32>
    %c0_1 = arith.constant 0 : index
    %c0_2 = arith.constant 0 : index
    %2 = vector.load %arg6[%c0_1, %c0_2] : memref<1x4xf32, #tpu.memory_space<vmem>>, vector<1x4xf32>
    %3 = vector.shape_cast %2 : vector<1x4xf32> to vector<1x1x4xf32>
    %c0_i32 = arith.constant 0 : i32
    %4 = arith.cmpi sgt, %arg1, %c0_i32 : i32
    %5 = arith.extui %4 : i1 to i32
    %6 = arith.sitofp %5 : i32 to f32
    %c1_i32 = arith.constant 1 : i32
    %7 = arith.cmpi slt, %arg1, %c1_i32 : i32
    %8 = arith.extui %7 : i1 to i32
    %9 = arith.sitofp %8 : i32 to f32
    %c0_3 = arith.constant 0 : index
    %c0_4 = arith.constant 0 : index
    %c0_5 = arith.constant 0 : index
    %c0_6 = arith.constant 0 : index
    %10 = vector.load %arg3[%c0_3, %c0_4, %c0_5, %c0_6] : memref<1x1x16x4xbf16, #tpu.memory_space<vmem>>, vector<1x1x16x4xbf16>
    %11 = vector.shape_cast %10 : vector<1x1x16x4xbf16> to vector<1x16x4xbf16>
    %12 = arith.extf %11 : vector<1x16x4xbf16> to vector<1x16x4xf32>
    %13 = vector.broadcast %1 : vector<1x1x4xf32> to vector<1x16x4xf32>
    %14 = arith.mulf %12, %13 : vector<1x16x4xf32>
    %15 = vector.broadcast %3 : vector<1x1x4xf32> to vector<1x16x4xf32>
    %16 = arith.addf %14, %15 : vector<1x16x4xf32>
    %cst = arith.constant 0.000000e+00 : f32
    %17 = vector.broadcast %cst : f32 to vector<1x16x4xf32>
    %18 = arith.maximumf %16, %17 : vector<1x16x4xf32>
    %19 = vector.broadcast %6 : f32 to vector<1x16x4xf32>
    %20 = arith.mulf %18, %19 : vector<1x16x4xf32>
    %c0_7 = arith.constant 0 : index
    %c0_8 = arith.constant 0 : index
    %c0_9 = arith.constant 0 : index
    %c0_10 = arith.constant 0 : index
    %21 = vector.load %arg2[%c0_7, %c0_8, %c0_9, %c0_10] : memref<1x8x16x4xbf16, #tpu.memory_space<vmem>>, vector<1x8x16x4xbf16>
    %22 = vector.shape_cast %21 : vector<1x8x16x4xbf16> to vector<8x16x4xbf16>
    %23 = arith.extf %22 : vector<8x16x4xbf16> to vector<8x16x4xf32>
    %24 = vector.broadcast %1 : vector<1x1x4xf32> to vector<8x16x4xf32>
    %25 = arith.mulf %23, %24 : vector<8x16x4xf32>
    %26 = vector.broadcast %3 : vector<1x1x4xf32> to vector<8x16x4xf32>
    %27 = arith.addf %25, %26 : vector<8x16x4xf32>
    %cst_11 = arith.constant 0.000000e+00 : f32
    %28 = vector.broadcast %cst_11 : f32 to vector<8x16x4xf32>
    %29 = arith.maximumf %27, %28 : vector<8x16x4xf32>
    %c0_12 = arith.constant 0 : index
    %c0_13 = arith.constant 0 : index
    %c0_14 = arith.constant 0 : index
    %c0_15 = arith.constant 0 : index
    %30 = vector.load %arg4[%c0_12, %c0_13, %c0_14, %c0_15] : memref<1x1x16x4xbf16, #tpu.memory_space<vmem>>, vector<1x1x16x4xbf16>
    %31 = vector.shape_cast %30 : vector<1x1x16x4xbf16> to vector<1x16x4xbf16>
    %32 = arith.extf %31 : vector<1x16x4xbf16> to vector<1x16x4xf32>
    %33 = vector.broadcast %1 : vector<1x1x4xf32> to vector<1x16x4xf32>
    %34 = arith.mulf %32, %33 : vector<1x16x4xf32>
    %35 = vector.broadcast %3 : vector<1x1x4xf32> to vector<1x16x4xf32>
    %36 = arith.addf %34, %35 : vector<1x16x4xf32>
    %cst_16 = arith.constant 0.000000e+00 : f32
    %37 = vector.broadcast %cst_16 : f32 to vector<1x16x4xf32>
    %38 = arith.maximumf %36, %37 : vector<1x16x4xf32>
    %39 = vector.broadcast %9 : f32 to vector<1x16x4xf32>
    %40 = arith.mulf %38, %39 : vector<1x16x4xf32>
    %41 = tpu.concatenate %20, %29, %40 in 0 : vector<1x16x4xf32>, vector<8x16x4xf32>, vector<1x16x4xf32> -> vector<10x16x4xf32>
    %cst_17 = arith.constant 0.000000e+00 : f32
    %42 = vector.broadcast %cst_17 : f32 to vector<10x1x4xf32>
    %43 = tpu.concatenate %42, %41, %42 in 1 : vector<10x1x4xf32>, vector<10x16x4xf32>, vector<10x1x4xf32> -> vector<10x18x4xf32>
    %44 = vector.extract_strided_slice %43 {offsets = [0, 0, 0], sizes = [10, 16, 4], strides = [1, 1, 1]} : vector<10x18x4xf32> to vector<10x16x4xf32>
    %45 = vector.extract_strided_slice %43 {offsets = [0, 1, 0], sizes = [10, 16, 4], strides = [1, 1, 1]} : vector<10x18x4xf32> to vector<10x16x4xf32>
    %46 = vector.extract_strided_slice %43 {offsets = [0, 2, 0], sizes = [10, 16, 4], strides = [1, 1, 1]} : vector<10x18x4xf32> to vector<10x16x4xf32>
    %47 = tpu.concatenate %44, %45, %46 in 2 : vector<10x16x4xf32>, vector<10x16x4xf32>, vector<10x16x4xf32> -> vector<10x16x12xf32>
    %48 = arith.truncf %47 : vector<10x16x12xf32> to vector<10x16x12xbf16>
    %cst_18 = arith.constant 0.000000e+00 : f32
    %49 = vector.broadcast %cst_18 : f32 to vector<128x4xf32>
    %50 = vector.extract_strided_slice %48 {offsets = [0, 0, 0], sizes = [8, 16, 12], strides = [1, 1, 1]} : vector<10x16x12xbf16> to vector<8x16x12xbf16>
    %51 = vector.shape_cast %50 : vector<8x16x12xbf16> to vector<128x12xbf16>
    %c0_19 = arith.constant 0 : index
    %c0_20 = arith.constant 0 : index
    %c0_21 = arith.constant 0 : index
    %52 = vector.load %arg7[%c0_19, %c0_20, %c0_21] : memref<3x12x4xbf16, #tpu.memory_space<vmem>>, vector<1x12x4xbf16>
    %53 = vector.shape_cast %52 : vector<1x12x4xbf16> to vector<12x4xbf16>
    %cst_22 = arith.constant dense<0.000000e+00> : vector<128x4xf32>
    %54 = tpu.matmul %51, %53, %cst_22 {dimension_numbers = #tpu.dot_dimension_numbers<[1], [0], [0], [1], [0, 0, 1, 1], [], []>} : vector<128x12xbf16>, vector<12x4xbf16>, vector<128x4xf32> -> vector<128x4xf32>
    %55 = arith.addf %49, %54 : vector<128x4xf32>
    %56 = vector.extract_strided_slice %48 {offsets = [1, 0, 0], sizes = [8, 16, 12], strides = [1, 1, 1]} : vector<10x16x12xbf16> to vector<8x16x12xbf16>
    %57 = vector.shape_cast %56 : vector<8x16x12xbf16> to vector<128x12xbf16>
    %c1 = arith.constant 1 : index
    %c0_23 = arith.constant 0 : index
    %c0_24 = arith.constant 0 : index
    %58 = vector.load %arg7[%c1, %c0_23, %c0_24] : memref<3x12x4xbf16, #tpu.memory_space<vmem>>, vector<1x12x4xbf16>
    %59 = vector.shape_cast %58 : vector<1x12x4xbf16> to vector<12x4xbf16>
    %cst_25 = arith.constant dense<0.000000e+00> : vector<128x4xf32>
    %60 = tpu.matmul %57, %59, %cst_25 {dimension_numbers = #tpu.dot_dimension_numbers<[1], [0], [0], [1], [0, 0, 1, 1], [], []>} : vector<128x12xbf16>, vector<12x4xbf16>, vector<128x4xf32> -> vector<128x4xf32>
    %61 = arith.addf %55, %60 : vector<128x4xf32>
    %62 = vector.extract_strided_slice %48 {offsets = [2, 0, 0], sizes = [8, 16, 12], strides = [1, 1, 1]} : vector<10x16x12xbf16> to vector<8x16x12xbf16>
    %63 = vector.shape_cast %62 : vector<8x16x12xbf16> to vector<128x12xbf16>
    %c2 = arith.constant 2 : index
    %c0_26 = arith.constant 0 : index
    %c0_27 = arith.constant 0 : index
    %64 = vector.load %arg7[%c2, %c0_26, %c0_27] : memref<3x12x4xbf16, #tpu.memory_space<vmem>>, vector<1x12x4xbf16>
    %65 = vector.shape_cast %64 : vector<1x12x4xbf16> to vector<12x4xbf16>
    %cst_28 = arith.constant dense<0.000000e+00> : vector<128x4xf32>
    %66 = tpu.matmul %63, %65, %cst_28 {dimension_numbers = #tpu.dot_dimension_numbers<[1], [0], [0], [1], [0, 0, 1, 1], [], []>} : vector<128x12xbf16>, vector<12x4xbf16>, vector<128x4xf32> -> vector<128x4xf32>
    %67 = arith.addf %61, %66 : vector<128x4xf32>
    %68 = vector.shape_cast %67 : vector<128x4xf32> to vector<8x16x4xf32>
    %c0_29 = arith.constant 0 : index
    %c0_30 = arith.constant 0 : index
    %c0_31 = arith.constant 0 : index
    %c0_32 = arith.constant 0 : index
    %69 = vector.load %arg9[%c0_29, %c0_30, %c0_31, %c0_32] : memref<1x8x16x4xf32, #tpu.memory_space<vmem>>, vector<1x8x16x4xf32>
    %70 = vector.shape_cast %69 : vector<1x8x16x4xf32> to vector<8x16x4xf32>
    %c0_33 = arith.constant 0 : index
    %c0_34 = arith.constant 0 : index
    %71 = vector.load %arg10[%c0_33, %c0_34] : memref<1x4xf32, #tpu.memory_space<vmem>>, vector<1x4xf32>
    %72 = vector.shape_cast %71 : vector<1x4xf32> to vector<1x1x4xf32>
    %73 = vector.broadcast %72 : vector<1x1x4xf32> to vector<8x16x4xf32>
    %74 = arith.mulf %70, %73 : vector<8x16x4xf32>
    %c0_35 = arith.constant 0 : index
    %c0_36 = arith.constant 0 : index
    %75 = vector.load %arg11[%c0_35, %c0_36] : memref<1x4xf32, #tpu.memory_space<vmem>>, vector<1x4xf32>
    %76 = vector.shape_cast %75 : vector<1x4xf32> to vector<1x1x4xf32>
    %77 = vector.broadcast %76 : vector<1x1x4xf32> to vector<8x16x4xf32>
    %78 = arith.addf %74, %77 : vector<8x16x4xf32>
    %cst_37 = arith.constant 0.000000e+00 : f32
    %79 = vector.broadcast %cst_37 : f32 to vector<8x16x4xf32>
    %80 = arith.maximumf %78, %79 : vector<8x16x4xf32>
    %81 = vector.shape_cast %80 : vector<8x16x4xf32> to vector<128x4xf32>
    %82 = arith.truncf %81 : vector<128x4xf32> to vector<128x4xbf16>
    %c0_38 = arith.constant 0 : index
    %c0_39 = arith.constant 0 : index
    %83 = vector.load %arg12[%c0_38, %c0_39] : memref<4x16xbf16, #tpu.memory_space<vmem>>, vector<4x16xbf16>
    %cst_40 = arith.constant dense<0.000000e+00> : vector<128x16xf32>
    %84 = tpu.matmul %82, %83, %cst_40 {dimension_numbers = #tpu.dot_dimension_numbers<[1], [0], [0], [1], [0, 0, 1, 1], [], []>} : vector<128x4xbf16>, vector<4x16xbf16>, vector<128x16xf32> -> vector<128x16xf32>
    %85 = vector.shape_cast %84 : vector<128x16xf32> to vector<8x16x16xf32>
    %c0_41 = arith.constant 0 : index
    %c0_42 = arith.constant 0 : index
    %c0_43 = arith.constant 0 : index
    %c0_44 = arith.constant 0 : index
    %86 = vector.load %arg8[%c0_41, %c0_42, %c0_43, %c0_44] : memref<1x8x16x8xbf16, #tpu.memory_space<vmem>>, vector<1x8x16x8xbf16>
    %87 = vector.shape_cast %86 : vector<1x8x16x8xbf16> to vector<8x16x8xbf16>
    %88 = arith.extf %87 : vector<8x16x8xbf16> to vector<8x16x8xf32>
    %c0_45 = arith.constant 0 : index
    %c0_46 = arith.constant 0 : index
    %c0_47 = arith.constant 0 : index
    %c0_48 = arith.constant 0 : index
    %89 = vector.load %arg2[%c0_45, %c0_46, %c0_47, %c0_48] : memref<1x8x16x4xbf16, #tpu.memory_space<vmem>>, vector<1x8x16x4xbf16>
    %90 = vector.shape_cast %89 : vector<1x8x16x4xbf16> to vector<8x16x4xbf16>
    %91 = arith.extf %90 : vector<8x16x4xbf16> to vector<8x16x4xf32>
    %92 = tpu.concatenate %88, %91, %68 in 2 : vector<8x16x8xf32>, vector<8x16x4xf32>, vector<8x16x4xf32> -> vector<8x16x16xf32>
    %93 = arith.addf %92, %85 : vector<8x16x16xf32>
    %94 = vector.shape_cast %93 : vector<8x16x16xf32> to vector<1x8x16x16xf32>
    %c0_49 = arith.constant 0 : index
    %c0_50 = arith.constant 0 : index
    %c0_51 = arith.constant 0 : index
    %c0_52 = arith.constant 0 : index
    %95 = vector.load %arg13[%c0_49, %c0_50, %c0_51, %c0_52] : memref<1x8x16x16xf32, #tpu.memory_space<vmem>>, vector<1x8x16x16xf32>
    tpu.vector_store %arg13[%c0_49, %c0_50, %c0_51, %c0_52], %94 {strides = array<i32>} : memref<1x8x16x16xf32, #tpu.memory_space<vmem>>, vector<1x8x16x16xf32>,
    return
  }
  func.func @transform_0(%arg0: i32, %arg1: i32) -> (i32, i32, i32, i32) {
    %c0_i32 = arith.constant 0 : i32
    %c0_i32_0 = arith.constant 0 : i32
    %c0_i32_1 = arith.constant 0 : i32
    return %arg0, %arg1, %c0_i32, %c0_i32_0 : i32, i32, i32, i32
  }
  func.func @transform_1(%arg0: i32, %arg1: i32) -> (i32, i32, i32, i32) {
    %c8_i32 = arith.constant 8 : i32
    %0 = arith.muli %arg1, %c8_i32 : i32
    %c1_i32 = arith.constant 1 : i32
    %1 = arith.subi %0, %c1_i32 : i32
    %c0_i32 = arith.constant 0 : i32
    %2 = arith.maxsi %1, %c0_i32 : i32
    %c0_i32_0 = arith.constant 0 : i32
    %c0_i32_1 = arith.constant 0 : i32
    %c0_i32_2 = arith.constant 0 : i32
    return %arg0, %2, %c0_i32_0, %c0_i32_1 : i32, i32, i32, i32
  }
  func.func @transform_2(%arg0: i32, %arg1: i32) -> (i32, i32, i32, i32) {
    %c8_i32 = arith.constant 8 : i32
    %0 = arith.muli %arg1, %c8_i32 : i32
    %c8_i32_0 = arith.constant 8 : i32
    %1 = arith.addi %0, %c8_i32_0 : i32
    %c15_i32 = arith.constant 15 : i32
    %2 = arith.minsi %1, %c15_i32 : i32
    %c0_i32 = arith.constant 0 : i32
    %c0_i32_1 = arith.constant 0 : i32
    %c0_i32_2 = arith.constant 0 : i32
    return %arg0, %2, %c0_i32, %c0_i32_1 : i32, i32, i32, i32
  }
  func.func @transform_3(%arg0: i32, %arg1: i32) -> (i32, i32) {
    %c0_i32 = arith.constant 0 : i32
    %c0_i32_0 = arith.constant 0 : i32
    %c0_i32_1 = arith.constant 0 : i32
    return %c0_i32, %c0_i32_0 : i32, i32
  }
  func.func @transform_4(%arg0: i32, %arg1: i32) -> (i32, i32) {
    %c0_i32 = arith.constant 0 : i32
    %c0_i32_0 = arith.constant 0 : i32
    %c0_i32_1 = arith.constant 0 : i32
    return %c0_i32, %c0_i32_0 : i32, i32
  }
  func.func @transform_5(%arg0: i32, %arg1: i32) -> (i32, i32, i32) {
    %c0_i32 = arith.constant 0 : i32
    %c0_i32_0 = arith.constant 0 : i32
    %c0_i32_1 = arith.constant 0 : i32
    %c0_i32_2 = arith.constant 0 : i32
    return %c0_i32, %c0_i32_0, %c0_i32_1 : i32, i32, i32
  }
  func.func @transform_6(%arg0: i32, %arg1: i32) -> (i32, i32, i32, i32) {
    %c0_i32 = arith.constant 0 : i32
    %c0_i32_0 = arith.constant 0 : i32
    %c0_i32_1 = arith.constant 0 : i32
    return %arg0, %arg1, %c0_i32, %c0_i32_0 : i32, i32, i32, i32
  }
  func.func @transform_7(%arg0: i32, %arg1: i32) -> (i32, i32, i32, i32) {
    %c0_i32 = arith.constant 0 : i32
    %c0_i32_0 = arith.constant 0 : i32
    %c0_i32_1 = arith.constant 0 : i32
    return %arg0, %arg1, %c0_i32, %c0_i32_0 : i32, i32, i32, i32
  }
  func.func @transform_8(%arg0: i32, %arg1: i32) -> (i32, i32) {
    %c0_i32 = arith.constant 0 : i32
    %c0_i32_0 = arith.constant 0 : i32
    %c0_i32_1 = arith.constant 0 : i32
    return %c0_i32, %c0_i32_0 : i32, i32
  }
  func.func @transform_9(%arg0: i32, %arg1: i32) -> (i32, i32) {
    %c0_i32 = arith.constant 0 : i32
    %c0_i32_0 = arith.constant 0 : i32
    %c0_i32_1 = arith.constant 0 : i32
    return %c0_i32, %c0_i32_0 : i32, i32
  }
  func.func @transform_10(%arg0: i32, %arg1: i32) -> (i32, i32) {
    %c0_i32 = arith.constant 0 : i32
    %c0_i32_0 = arith.constant 0 : i32
    %c0_i32_1 = arith.constant 0 : i32
    return %c0_i32, %c0_i32_0 : i32, i32
  }
  func.func @transform_11(%arg0: i32, %arg1: i32) -> (i32, i32, i32, i32) {
    %c0_i32 = arith.constant 0 : i32
    %c0_i32_0 = arith.constant 0 : i32
    %c0_i32_1 = arith.constant 0 : i32
    return %arg0, %arg1, %c0_i32, %c0_i32_0 : i32, i32, i32, i32
  }
}

</mosaic_0001>

<bundles_post_ra>
// kernel: conv_block_forward.3
= control target key start
LH: loop header
LB: loop body
LE: loop exit
PB: predicated region body
PF: predicated region fallthrough
CT: control target
= control target key end

     0   :  { %s2123_s24 = smov 0   ;;  %s2125_s25 = smov 0   ;;  %s2723_s0 = inlined_call_operand.vmem [shape: f32[2,16,16,4], index: 0, kind: input, shape index: {}, may-alias: {0,1,2}]   ;;  %s2724_s1 = inlined_call_operand.vmem [shape: f32[2,16,16,4], index: 1, kind: input, shape index: {}, may-alias: {0,1,2}]   ;;  %s2725_s2 = inlined_call_operand.vmem [shape: f32[2,16,16,4], index: 2, kind: input, shape index: {}, may-alias: {0,1,2}]   ;;  %s2726_s3 = inlined_call_operand.vmem [shape: f32[1,4], index: 3, kind: input, shape index: {}]   ;;  %s2727_s4 = inlined_call_operand.vmem [shape: f32[1,4], index: 4, kind: input, shape index: {}]   ;;  %s2728_s5 = inlined_call_operand.vmem [shape: bf16[3,12,8], index: 5, kind: input, shape index: {}]   ;;  %s2729_s6 = inlined_call_operand.vmem [shape: bf16[2,16,16,8], index: 6, kind: output, shape index: {0}]   ;;  %s2730_s7 = inlined_call_operand.vmem [shape: f32[2,2,2,8], index: 7, kind: output, shape index: {1}]  }
   0x1   :  { %s2127_s26 = smov 0   ;;  %s2129_s27 = smov 0  }
   0x2   :  { %s2131_s28 = smov 0  }
   0x3 LB: > { %s27_s29 = sadd.s32 1, %s2071_s26  ;;  %s30_s30 = sadd.s32 1, %s2075_s27  ;;  %s2079_s28 = sphi %s2131_s28, %s18_s28   ;;  %s2075_s27 = sphi %s2129_s27, %s2735_s27   ;;  %s2071_s26 = sphi %s2127_s26, %s2734_s26   ;;  %s2067_s25 = sphi %s2125_s25, %s2733_s25   ;;  %s2063_s24 = sphi %s2123_s24, %s2732_s24  }
   0x4   : > { %p28_p0 = scmp.ge.s32.totalorder %s27_s29, 2  ;;  %p1712_p1 = scmp.ge.s32.totalorder %s2079_s28, 1 }
   0x5   : > { %p328_p2 = scmp.lt.s32.totalorder %s2079_s28, 5 }
   0x6   : > { %s2737_s29 = smov (%p28_p0, %s27_s29), 0  ;;  %s2739_s30 = smov (!%p28_p0, %s30_s30), %s2075_s27 }
   0x7   : > { %p329_p3 = pnand %p1712_p1, %p328_p2  ;;  %p32_p4 = scmp.ge.s32.totalorder %s2739_s30, 2 }
   0x8   : > { %s2156_s8 = sshll.u32 (!%p329_p3), %s2063_s24, 3  ;;  %p405_p5 = scmp.lt.s32.totalorder (!%p329_p3), %s2067_s25, 1 }
   0x9   : > { %s2741_s30 = smov (%p32_p4, %s2739_s30), 0  ;;  %332 = sbr.rel (%p329_p3) target bundleno = 453 (0x1c5), region = 44 }
   0xa   : > { %p407_p6 = scmp.lt.s32.totalorder (!%p329_p3), %s2156_s8, 15  ;;  %p462_p7 = scmp.lt.s32.totalorder (!%p329_p3), %s2063_s24, 1 }
   0xb   : > { %s2082_s14 = smov (!%p329_p3), 4   ;;  %s433_s15 = sadd.s32 (!%p329_p3), 8, %s2156_s8 }
   0xc   : > { %p2300_p10 = scmp.lt.s32.totalorder (!%p329_p3), %s433_s15, 15  ;;  %p471_p11 = scmp.gt.s32.totalorder (!%p329_p3), %s2063_s24, 0 }
   0xe   : > { %s2743_s25 = smov (!%p405_p5, %s2067_s25), 1  ;;  %v2172_v0 = vld [vmem:[%s2726_s3] ss:$0 sm:$0xff]  ;;  %vm595_vm0 = vcmask 1040384   ;;  %vm807_vm1 = vcmask 1045504   ;;  %vm696_vm2 = vcmask 1046528  }
   0xf   : > { %s408_s9 = scalar_select %p407_p6, %s2156_s8, 15  ;;  %v2182_v1 = vld [vmem:[%s2727_s4] ss:$0 sm:$0xff]  ;;  %vm918_vm3 = vcmask 31744   ;;  %vm939_vm4 = vcmask 64512   ;;  %vm980_vm5 = vcmask 97280  }
  0x10   : > { %s2163_s10 = sshll.u32 %s2743_s25, 5  ;;  %s1738_s21 = sshll.u32 %s2743_s25, 1  ;;  %vm1497_vm6 = vcmask 60416   ;;  %vm1431_vm7 = vcmask 58368  }
  0x11   : > { %s1714_s11 = sshll.u32 %s408_s9, 1  ;;  %s2247_s25 = sadd.s32 4294967295, %s2156_s8 }
  0x12   : > { %s2166_s12 = sadd.s32 %s2163_s10, %s1714_s11  ;;  %s2081_s9 = smov 8  }
  0x13   : > { %s1716_s13 = sshll.u32 %s2166_s12, 3  ;;  %p417_p8 = scmp.gt.s32.totalorder %s2247_s25, 0 }
  0x14   : > { %s2177_s18 = scalar_lea.vmem %s2723_s0, %s1716_s13  ;;  %p1719_p9 = scmp.lt.s32.totalorder %s2247_s25, 15 }
  0x15   : > { %v508_v2 = vld [vmem:[%s2177_s18 + $0x40] sm:$0xff]  ;;  %v509_v3 = vld [vmem:[%s2177_s18 + $0x48] sm:$0xff]  ;;  %v510_v4 = vld [vmem:[%s2177_s18 + $0x50] sm:$0xff]  ;;  %s463_s22 = scalar_select %p462_p7, %s2063_s24, 1 }
  0x16   : > { %v524_v5 = vmul.f32 %v2172_v0, %v508_v2  ;;  %v525_v6 = vmul.f32 %v2172_v0, %v509_v3  ;;  %v511_v7 = vld [vmem:[%s2177_s18 + $0x58] sm:$0xff]  ;;  %v526_v8 = vmul.f32 %v2172_v0, %v510_v4  ;;  %v500_v9 = vld [vmem:[%s2177_s18] sm:$0xff]  ;;  %v501_v10 = vld [vmem:[%s2177_s18 + $0x8] sm:$0xff]  ;;  %s418_s16 = scalar_select %p417_p8, %s2247_s25, 0 }
  0x17   : > { %v527_v11 = vmul.f32 %v2172_v0, %v511_v7  ;;  %v516_v12 = vmul.f32 %v2172_v0, %v500_v9  ;;  %v517_v13 = vmul.f32 %v2172_v0, %v501_v10  ;;  %v502_v14 = vld [vmem:[%s2177_s18 + $0x10] sm:$0xff]  ;;  %v503_v15 = vld [vmem:[%s2177_s18 + $0x18] sm:$0xff]  ;;  %s2235_s23 = sadd.s32 %s1738_s21, %s463_s22  ;;  %s2747_s15 = smov (!%p2300_p10, %s433_s15), 15 }
  0x18   : > { %v540_v16 = vadd.f32 %v2182_v1, %v524_v5  ;;  %v541_v17 = vadd.f32 %v2182_v1, %v525_v6  ;;  %v542_v18 = vadd.f32 %v2182_v1, %v526_v8  ;;  %v518_v19 = vmul.f32 %v2172_v0, %v502_v14  ;;  %v2257_v6 = vld [vmem:[%s2728_s5 + $0x8] sm:$0x3f]   ;;  %s2745_s16 = smov (!%p1719_p9, %s418_s16), 15  ;;  %s2749_s15 = smov (!%p2300_p10, %s2747_s15), 15 }
  0x19   : > { %v543_v20 = vadd.f32 %v2182_v1, %v527_v11  ;;  %v532_v21 = vadd.f32 %v2182_v1, %v516_v12  ;;  %v533_v22 = vadd.f32 %v2182_v1, %v517_v13  ;;  %v519_v23 = vmul.f32 %v2172_v0, %v503_v15  ;;  %1893 = vmatprep.subr.msk.bf16.mxu1 %vm807_vm1, %v2257_v6  ;;  %s1724_s8 = sshll.u32 %s2745_s16, 1  ;;  %s2371_s19 = sshll.u32 %s2749_s15, 1 }
  0x1a   : > { %v556_v24 = vmax.f32 %v540_v16, 0.0  ;;  %v557_v25 = vmax.f32 %v541_v17, 0.0  ;;  %v558_v26 = vmax.f32 %v542_v18, 0.0  ;;  %v534_v27 = vadd.f32 %v2182_v1, %v518_v19  ;;  %1892 = vmatprep.subr.msk.bf16.mxu0 %vm807_vm1, %v2257_v6  ;;  %s442_s21 = sadd.s32 %s2371_s19, %s2163_s10 }
  0x1b   : > { %v559_v28 = vmax.f32 %v543_v20, 0.0  ;;  %v548_v29 = vmax.f32 %v532_v21, 0.0  ;;  %v549_v30 = vmax.f32 %v533_v22, 0.0  ;;  %v535_v31 = vadd.f32 %v2182_v1, %v519_v23  ;;  %v512_v23 = vld [vmem:[%s2177_s18 + $0x60] sm:$0xff]  ;;  %s1733_s13 = sshll.u32 %s442_s21, 3 }
  0x1c   : > { %v611_v32 = vrot.slane %v556_v24, 7  ;;  %v612_v33 = vrot.slane %v557_v25, 7  ;;  %v614_v34 = vrot.slane %v558_v26, 7  ;;  %v550_v35 = vmax.f32 %v534_v27, 0.0 }
  0x1d   : > { %v615_v36 = vrot.slane %v559_v28, 7  ;;  %v599_v37 = vrot.slane %v548_v29, 7  ;;  %v600_v38 = vrot.slane %v549_v30, 7  ;;  %v551_v39 = vmax.f32 %v535_v31, 0.0  ;;  %v513_v28 = vld [vmem:[%s2177_s18 + $0x68] sm:$0xff]  ;;  %v514_v29 = vld [vmem:[%s2177_s18 + $0x70] sm:$0xff] }
  0x1e   : > { %v2210_v40 = vsel %vm595_vm0, %v611_v32, %v612_v33  ;;  %v2213_v41 = vsel %vm595_vm0, 0.0, %v611_v32  ;;  %v671_v42 = vsel %vm595_vm0, %v612_v33, 0.0  ;;  %v2217_v43 = vsel %vm595_vm0, 0.0, %v614_v34 }
  0x1f   : > { %v833_v44 = vrot.slane %v2213_v41, 2  ;;  %v834_v45 = vrot.slane %v2210_v40, 2  ;;  %v836_v46 = vrot.slane %v671_v42, 2  ;;  %v722_v47 = vrot.slane %v2213_v41, 1 }
  0x20   : > { %v723_v48 = vrot.slane %v2210_v40, 1  ;;  %v725_v49 = vrot.slane %v671_v42, 1  ;;  %v2228_v50 = vsel %vm595_vm0, %v614_v34, %v615_v36  ;;  %v672_v51 = vsel %vm595_vm0, %v615_v36, 0.0 }
  0x21   : > { %v835_v52 = vsel %vm807_vm1, %v833_v44, %v834_v45  ;;  %v837_v53 = vsel %vm807_vm1, %v834_v45, %v836_v46  ;;  %v727_v54 = vrot.slane %v2217_v43, 1  ;;  %v728_v55 = vrot.slane %v2228_v50, 1  ;;  %v504_v46 = vld [vmem:[%s2177_s18 + $0x20] sm:$0xff] }
  0x22   : > { %v1948_v56 = vpack.i.bf16 %v837_v53, %v835_v52  ;;  %v724_v57 = vsel %vm696_vm2, %v722_v47, %v723_v48  ;;  %v726_v58 = vsel %vm696_vm2, %v723_v48, %v725_v49  ;;  %v730_v59 = vrot.slane %v672_v51, 1  ;;  %v505_v47 = vld [vmem:[%s2177_s18 + $0x28] sm:$0xff]  ;;  %v506_v48 = vld [vmem:[%s2177_s18 + $0x30] sm:$0xff] }
  0x23   : > { %v1938_v60 = vpack.i.bf16 %v726_v58, %v724_v57  ;;  %v729_v61 = vsel %vm696_vm2, %v727_v54, %v728_v55  ;;  %v2241_v62 = vsel %vm595_vm0, %v599_v37, %v600_v38  ;;  %v2244_v63 = vsel %vm595_vm0, 0.0, %v599_v37  ;;  %v507_v54 = vld [vmem:[%s2177_s18 + $0x38] sm:$0xff] }
  0x24   : > { %1949 = vrot.lane.b32.xlu1 %v1948_v56, %s2081_s9  ;;  %v731_v2 = vsel %vm696_vm2, %v728_v55, %v730_v59  ;;  %v667_v3 = vsel %vm595_vm0, %v600_v38, 0.0  ;;  %v702_v4 = vrot.slane %v2244_v63, 1  ;;  %v703_v5 = vrot.slane %v2241_v62, 1  ;;  %v515_v38 = vld [vmem:[%s2177_s18 + $0x78] sm:$0xff]  ;;  %s2360_s18 = sadd.s32 %s1724_s8, %s2163_s10  ;;  %s444_s8 = scalar_lea.vmem %s2725_s2, %s1733_s13 }
  0x25   : > { %1939 = vrot.lane.b32.xlu0 %v1938_v60, %s2082_s14  ;;  %v1943_v7 = vpack.i.bf16 %v731_v2, %v729_v61  ;;  %v705_v8 = vrot.slane %v667_v3, 1  ;;  %v838_v9 = vrot.slane %v2217_v43, 2  ;;  %v839_v10 = vrot.slane %v2228_v50, 2  ;;  %s1726_s20 = sshll.u32 %s2360_s18, 3 }
  0x26   : > { %v704_v11 = vsel %vm696_vm2, %v702_v4, %v703_v5  ;;  %v841_v12 = vrot.slane %v672_v51, 2  ;;  %v602_v13 = vrot.slane %v550_v35, 7  ;;  %v603_v14 = vrot.slane %v551_v39, 7  ;;  %s427_s11 = scalar_lea.vmem %s2724_s1, %s1726_s20 }
  0x27   : > { %v706_v15 = vsel %vm696_vm2, %v703_v5, %v705_v8  ;;  %v840_v16 = vsel %vm807_vm1, %v838_v9, %v839_v10  ;;  %v813_v17 = vrot.slane %v2244_v63, 2  ;;  %v814_v18 = vrot.slane %v2241_v62, 2  ;;  %s2400_s10 = scalar_select %p471_p11, 1, 0 }
  0x28   : > { %v1953_v19 = vpack.i.bf16 %v706_v15, %v704_v11  ;;  %v842_v20 = vsel %vm807_vm1, %v839_v10, %v841_v12  ;;  %v2274_v21 = vsel %vm595_vm0, %v602_v13, %v603_v14  ;;  %v2277_v22 = vsel %vm595_vm0, 0.0, %v602_v13  ;;  %s2433_s18 = scalar_select %p462_p7, 1, 0 }
  0x29   : > { %1944 = vrot.lane.b32.xlu0 %v1943_v7, %s2082_s14  ;;  %v1958_v24 = vpack.i.bf16 %v842_v20, %v840_v16  ;;  %v668_v25 = vsel %vm595_vm0, %v603_v14, 0.0  ;;  %v707_v26 = vrot.slane %v2277_v22, 1  ;;  %v708_v27 = vrot.slane %v2274_v21, 1  ;;  %s473_s15 = scvt.s32.f32 %s2400_s10 }
  0x2a   : > { %1954 = vrot.lane.b32.xlu1 %v1953_v19, %s2082_s14  ;;  %v710_v30 = vrot.slane %v668_v25, 1  ;;  %v815_v31 = vsel %vm807_vm1, %v813_v17, %v814_v18  ;;  %v816_v32 = vrot.slane %v667_v3, 2  ;;  %v818_v33 = vrot.slane %v2277_v22, 2  ;;  %s476_s22 = scvt.s32.f32 %s2433_s18 }
  0x2b   : > { %v709_v34 = vsel %vm696_vm2, %v707_v26, %v708_v27  ;;  %v819_v35 = vrot.slane %v2274_v21, 2  ;;  %v821_v36 = vrot.slane %v668_v25, 2  ;;  %v528_v37 = vmul.f32 %v2172_v0, %v512_v23 }
  0x2c   : > { %v711_v39 = vsel %vm696_vm2, %v708_v27, %v710_v30  ;;  %v817_v42 = vsel %vm807_vm1, %v814_v18, %v816_v32  ;;  %v529_v44 = vmul.f32 %v2172_v0, %v513_v28  ;;  %v530_v45 = vmul.f32 %v2172_v0, %v514_v29 }
  0x2d   : > { %1959 = vrot.lane.b32.xlu0 %v1958_v24, %s2081_s9  ;;  %v1963_v49 = vpack.i.bf16 %v711_v39, %v709_v34  ;;  %v1968_v51 = vpack.i.bf16 %v817_v42, %v815_v31  ;;  %v820_v52 = vsel %vm807_vm1, %v818_v33, %v819_v35  ;;  %v822_v53 = vsel %vm807_vm1, %v819_v35, %v821_v36 }
  0x2e   : > { %v1973_v55 = vpack.i.bf16 %v822_v53, %v820_v52  ;;  %v544_v56 = vadd.f32 %v2182_v1, %v528_v37  ;;  %v545_v57 = vadd.f32 %v2182_v1, %v529_v44  ;;  %v531_v58 = vmul.f32 %v2172_v0, %v515_v38 }
  0x2f   : > { %1964 = vrot.lane.b32.xlu1 %v1963_v49, %s2082_s14  ;;  %v546_v59 = vadd.f32 %v2182_v1, %v530_v45  ;;  %v520_v60 = vmul.f32 %v2172_v0, %v504_v46  ;;  %v521_v61 = vmul.f32 %v2172_v0, %v505_v47  ;;  %v522_v2 = vmul.f32 %v2172_v0, %v506_v48 }
  0x30   : > { %v560_v3 = vmax.f32 %v544_v56, 0.0  ;;  %v561_v4 = vmax.f32 %v545_v57, 0.0  ;;  %v547_v5 = vadd.f32 %v2182_v1, %v531_v58  ;;  %v523_v7 = vmul.f32 %v2172_v0, %v507_v54 }
  0x31   : > { %1969 = vrot.lane.b32.xlu0 %v1968_v51, %s2081_s9  ;;  %v562_v8 = vmax.f32 %v546_v59, 0.0  ;;  %v536_v9 = vadd.f32 %v2182_v1, %v520_v60  ;;  %v537_v10 = vadd.f32 %v2182_v1, %v521_v61  ;;  %v538_v11 = vadd.f32 %v2182_v1, %v522_v2 }
  0x32   : > { %v617_v12 = vrot.slane %v560_v3, 7  ;;  %v618_v13 = vrot.slane %v561_v4, 7  ;;  %v563_v14 = vmax.f32 %v547_v5, 0.0  ;;  %v2340_v15 = vadd.f32 %v2182_v1, %v523_v7 }
  0x33   : > { %1974 = vrot.lane.b32.xlu1 %v1973_v55, %s2081_s9  ;;  %v620_v16 = vrot.slane %v562_v8, 7  ;;  %v552_v17 = vmax.f32 %v536_v9, 0.0  ;;  %v553_v18 = vmax.f32 %v537_v10, 0.0  ;;  %v554_v19 = vmax.f32 %v538_v11, 0.0  ;;  %v477_v11 = vld [vmem:[%s427_s11] sm:$0xff] }
  0x34   : > { %v2348_v20 = vsel %vm595_vm0, %v617_v12, %v618_v13  ;;  %v2351_v23 = vsel %vm595_vm0, 0.0, %v617_v12  ;;  %v673_v24 = vsel %vm595_vm0, %v618_v13, 0.0  ;;  %v621_v25 = vrot.slane %v563_v14, 7  ;;  %v478_v12 = vld [vmem:[%s427_s11 + $0x8] sm:$0xff] }
  0x35   : > { %v732_v26 = vrot.slane %v2351_v23, 1  ;;  %v733_v27 = vrot.slane %v2348_v20, 1  ;;  %v735_v28 = vrot.slane %v673_v24, 1  ;;  %v2357_v29 = vsel %vm595_vm0, 0.0, %v620_v16 }
  0x36   : > { %v2363_v30 = vsel %vm595_vm0, %v620_v16, %v621_v25  ;;  %v674_v31 = vsel %vm595_vm0, %v621_v25, 0.0  ;;  %v737_v32 = vrot.slane %v2357_v29, 1  ;;  %v843_v33 = vrot.slane %v2351_v23, 2 }
  0x37   : > { %v734_v34 = vsel %vm696_vm2, %v732_v26, %v733_v27  ;;  %v736_v35 = vsel %vm696_vm2, %v733_v27, %v735_v28  ;;  %v738_v36 = vrot.slane %v2363_v30, 1  ;;  %v740_v37 = vrot.slane %v674_v31, 1 }
  0x38   : > { %v1978_v38 = vpack.i.bf16 %v736_v35, %v734_v34  ;;  %v844_v39 = vrot.slane %v2348_v20, 2  ;;  %v846_v42 = vrot.slane %v673_v24, 2  ;;  %v605_v44 = vrot.slane %v552_v17, 7 }
  0x39   : > { %v739_v45 = vsel %vm696_vm2, %v737_v32, %v738_v36  ;;  %v741_v46 = vsel %vm696_vm2, %v738_v36, %v740_v37  ;;  %v606_v47 = vrot.slane %v553_v18, 7  ;;  %v848_v48 = vrot.slane %v2357_v29, 2 }
  0x3a   : > { %1979 = vrot.lane.b32.xlu0 %v1978_v38, %s2082_s14  ;;  %v1983_v49 = vpack.i.bf16 %v741_v46, %v739_v45  ;;  %v845_v51 = vsel %vm807_vm1, %v843_v33, %v844_v39  ;;  %v847_v52 = vsel %vm807_vm1, %v844_v39, %v846_v42  ;;  %v2383_v53 = vsel %vm595_vm0, 0.0, %v605_v44  ;;  %v564_v39 = vld [vmem:[%s444_s8] sm:$0xff]  ;;  %v565_v42 = vld [vmem:[%s444_s8 + $0x8] sm:$0xff] }
  0x3b   : > { %v1988_v54 = vpack.i.bf16 %v847_v52, %v845_v51  ;;  %v2388_v55 = vsel %vm595_vm0, %v605_v44, %v606_v47  ;;  %v669_v56 = vsel %vm595_vm0, %v606_v47, 0.0  ;;  %v712_v57 = vrot.slane %v2383_v53, 1 }
  0x3c   : > { %1984 = vrot.lane.b32.xlu1 %v1983_v49, %s2082_s14  ;;  %v713_v58 = vrot.slane %v2388_v55, 1  ;;  %v715_v59 = vrot.slane %v669_v56, 1  ;;  %v849_v60 = vrot.slane %v2363_v30, 2  ;;  %v851_v61 = vrot.slane %v674_v31, 2 }
  0x3d   : > { %v555_v2 = vmax.f32 %v2340_v15, 0.0  ;;  %v608_v3 = vrot.slane %v554_v19, 7  ;;  %v823_v4 = vrot.slane %v2383_v53, 2  ;;  %v824_v5 = vrot.slane %v2388_v55, 2 }
  0x3e   : > { %1989 = vrot.lane.b32.xlu0 %v1988_v54, %s2081_s9  ;;  %v714_v7 = vsel %vm696_vm2, %v712_v57, %v713_v58  ;;  %v716_v8 = vsel %vm696_vm2, %v713_v58, %v715_v59  ;;  %v850_v9 = vsel %vm807_vm1, %v848_v48, %v849_v60  ;;  %v852_v10 = vsel %vm807_vm1, %v849_v60, %v851_v61  ;;  %v2039_v48 = vld [vmem:[%s2728_s5] sm:$0x3f]  }
  0x3f   : > { %v1993_v13 = vpack.i.bf16 %v716_v8, %v714_v7  ;;  %v1998_v14 = vpack.i.bf16 %v852_v10, %v850_v9  ;;  %v609_v15 = vrot.slane %v555_v2, 7  ;;  %v2411_v16 = vsel %vm595_vm0, 0.0, %v608_v3 }
  0x40   : > { %v717_v17 = vrot.slane %v2411_v16, 1  ;;  %v825_v18 = vsel %vm807_vm1, %v823_v4, %v824_v5  ;;  %v826_v19 = vrot.slane %v669_v56, 2  ;;  %v828_v24 = vrot.slane %v2411_v16, 2  ;;  %v2040_v56 = vld [vmem:[%s2728_s5 + $0x10] sm:$0x3f]  }
  0x41   : > { %1994 = vrot.lane.b32.xlu1 %v1993_v13, %s2082_s14  ;;  %v2422_v25 = vsel %vm595_vm0, %v608_v3, %v609_v15  ;;  %v670_v26 = vsel %vm595_vm0, %v609_v15, 0.0  ;;  %v485_v27 = vmul.f32 %v2172_v0, %v477_v11  ;;  %v486_v28 = vmul.f32 %v2172_v0, %v478_v12 }
  0x42   : > { %1999 = vrot.lane.b32.xlu0 %v1998_v14, %s2081_s9  ;;  %v718_v31 = vrot.slane %v2422_v25, 1  ;;  %v720_v32 = vrot.slane %v670_v26, 1  ;;  %v827_v33 = vsel %vm807_vm1, %v824_v5, %v826_v19  ;;  %v829_v34 = vrot.slane %v2422_v25, 2 }
  0x43   : > { %v2008_v35 = vpack.i.bf16 %v827_v33, %v825_v18  ;;  %v831_v36 = vrot.slane %v670_v26, 2  ;;  %v493_v37 = vadd.f32 %v2182_v1, %v485_v27  ;;  %v494_v38 = vadd.f32 %v2182_v1, %v486_v28 }
  0x44   : > { %v719_v44 = vsel %vm696_vm2, %v717_v17, %v718_v31  ;;  %v721_v45 = vsel %vm696_vm2, %v718_v31, %v720_v32  ;;  %v830_v46 = vsel %vm807_vm1, %v828_v24, %v829_v34  ;;  %v497_v47 = vstv %s473_s15 }
  0x45   : > { %v2003_v49 = vpack.i.bf16 %v721_v45, %v719_v44  ;;  %v832_v51 = vsel %vm807_vm1, %v829_v34, %v831_v36  ;;  %v495_v52 = vmax.f32 %v493_v37, 0.0  ;;  %v496_v54 = vmax.f32 %v494_v38, 0.0 }
  0x46   : > { %2009 = vrot.lane.b32.xlu0 %v2008_v35, %s2081_s9  ;;  %v566_v57 = vmul.f32 %v2172_v0, %v564_v39  ;;  %v567_v58 = vmul.f32 %v2172_v0, %v565_v42  ;;  %v2013_v59 = vpack.i.bf16 %v832_v51, %v830_v46  ;;  %v1006_v4 = vsel %vm807_vm1, %v2257_v6, 0 }
  0x47   : > { %2004 = vrot.lane.b32.xlu1 %v2003_v49, %s2082_s14  ;;  %v498_v60 = vmul.f32 %v497_v47, %v495_v52  ;;  %v499_v61 = vmul.f32 %v497_v47, %v496_v54  ;;  %v2457_v5 = vsel %vm807_vm1, %v2039_v48, 0  ;;  %1891 = vmatpush3.bf16.msra.mxu1 %v1006_v4  ;;  %v2460_v0 = vsel %vm807_vm1, %v2040_v56, 0 }
  0x48   : > { %v568_v2 = vadd.f32 %v2182_v1, %v566_v57  ;;  %v569_v3 = vadd.f32 %v2182_v1, %v567_v58  ;;  %1837 = vmatpush3.bf16.msra.mxu0 %v1006_v4  ;;  %v572_v11 = vstv %s476_s22  ;;  %1894 = vmatprep.subr.msk.bf16.mxu1 %vm807_vm1, %v2039_v48 }
  0x49   : > { %v596_v7 = vrot.slane %v498_v60, 7  ;;  %v597_v8 = vrot.slane %v499_v61, 7  ;;  %1895 = vmatprep.subr.msk.bf16.mxu0 %vm807_vm1, %v2040_v56 }
  0x4a   : > { %v570_v9 = vmax.f32 %v568_v2, 0.0  ;;  %v571_v10 = vmax.f32 %v569_v3, 0.0 }
  0x4b   : > { %2014 = vrot.lane.b32.xlu1 %v2013_v59, %s2081_s9  ;;  %v2466_v1 = vsel %vm595_vm0, %v596_v7, %v597_v8  ;;  %v2469_v6 = vsel %vm595_vm0, 0.0, %v596_v7  ;;  %v666_v12 = vsel %vm595_vm0, %v597_v8, 0.0 }
  0x4c   : > { %v697_v13 = vrot.slane %v2469_v6, 1  ;;  %v698_v14 = vrot.slane %v2466_v1, 1  ;;  %v700_v15 = vrot.slane %v666_v12, 1  ;;  %v808_v17 = vrot.slane %v2469_v6, 2 }
  0x4d   : > { %v809_v18 = vrot.slane %v2466_v1, 2  ;;  %v811_v19 = vrot.slane %v666_v12, 2  ;;  %v573_v24 = vmul.f32 %v572_v11, %v570_v9  ;;  %v574_v26 = vmul.f32 %v572_v11, %v571_v10 }
  0x4e   : > { %v699_v27 = vsel %vm696_vm2, %v697_v13, %v698_v14  ;;  %v701_v28 = vsel %vm696_vm2, %v698_v14, %v700_v15 }
  0x4f   : > { %v2018_v31 = vpack.i.bf16 %v701_v28, %v699_v27  ;;  %v810_v32 = vsel %vm807_vm1, %v808_v17, %v809_v18  ;;  %v812_v33 = vsel %vm807_vm1, %v809_v18, %v811_v19  ;;  %v623_v34 = vrot.slane %v573_v24, 7 }
  0x50   : > { %v2023_v35 = vpack.i.bf16 %v812_v33, %v810_v32  ;;  %v624_v36 = vrot.slane %v574_v26, 7 }
  0x51   : > { %2019 = vrot.lane.b32.xlu0 %v2018_v31, %s2082_s14  ;;  %v2482_v37 = vsel %vm595_vm0, 0.0, %v623_v34 }
  0x52   : > { %2024 = vrot.lane.b32.xlu1 %v2023_v35, %s2081_s9  ;;  %v2486_v38 = vsel %vm595_vm0, %v623_v34, %v624_v36  ;;  %v675_v39 = vsel %vm595_vm0, %v624_v36, 0.0  ;;  %v742_v42 = vrot.slane %v2482_v37, 1  ;;  %v853_v44 = vrot.slane %v2482_v37, 2 }
  0x53   : > { %v743_v45 = vrot.slane %v2486_v38, 1  ;;  %v745_v46 = vrot.slane %v675_v39, 1  ;;  %v854_v47 = vrot.slane %v2486_v38, 2  ;;  %v856_v48 = vrot.slane %v675_v39, 2 }
  0x55   : > { %v744_v49 = vsel %vm696_vm2, %v742_v42, %v743_v45  ;;  %v746_v51 = vsel %vm696_vm2, %v743_v45, %v745_v46  ;;  %v855_v52 = vsel %vm807_vm1, %v853_v44, %v854_v47  ;;  %v857_v54 = vsel %vm807_vm1, %v854_v47, %v856_v48 }
  0x56   : > { %v2028_v56 = vpack.i.bf16 %v746_v51, %v744_v49  ;;  %v2033_v57 = vpack.i.bf16 %v857_v54, %v855_v52 }
  0x58   : > { %2029 = vrot.lane.b32.xlu0 %v2028_v56, %s2082_s14  ;;  %2034 = vrot.lane.b32.xlu1 %v2033_v57, %s2081_s9  ;;  %s1737_s9 = sshll.u32 %s2166_s12, 2  ;;  %s1739_s12 = sshll.u32 %s2235_s23, 1 }
  0x59   : > { %s2629_s11 = scalar_lea.vmem %s2729_s6, %s1737_s9  ;;  %s467_s15 = scalar_lea.vmem %s2730_s7, %s1739_s12 }
  0x96   : > { %v1950_v58 = vpop.permute.xlu1 %1949 }
  0x97   : > { %v1952_v59 = vunpack.i.h.bf16 %v1950_v58  ;;  %v1951_v60 = vunpack.i.l.bf16 %v1950_v58  ;;  %v1940_v61 = vpop.permute.xlu0 %1939 }
  0x98   : > { %v1942_v2 = vunpack.i.h.bf16 %v1940_v61  ;;  %v1941_v3 = vunpack.i.l.bf16 %v1940_v61 }
  0x9a   : > { %v930_v4 = vsel %vm918_vm3, %v2210_v40, %v1942_v2  ;;  %v929_v7 = vsel %vm918_vm3, %v2213_v41, %v1941_v3 }
  0x9b   : > { %v1945_v8 = vpop.permute.xlu0 %1944  ;;  %v950_v9 = vsel %vm939_vm4, %v929_v7, %v1951_v60  ;;  %v951_v10 = vsel %vm939_vm4, %v930_v4, %v1952_v59 }
  0x9c   : > { %v1955_v11 = vpop.permute.xlu1 %1954  ;;  %v2505_v12 = vpack.c.bf16 %v951_v10, %v950_v9  ;;  %v1947_v13 = vunpack.i.h.bf16 %v1945_v8  ;;  %v1946_v14 = vunpack.i.l.bf16 %v1945_v8 }
  0x9d   : > { %v1957_v19 = vunpack.i.h.bf16 %v1955_v11  ;;  %v1956_v24 = vunpack.i.l.bf16 %v1955_v11 }
  0x9e   : > { %1846 = vmatprep.mubr.msk.bf16.mxu1 %vm980_vm5, %v2505_v12  ;;  %v932_v41 = vsel %vm918_vm3, %v2228_v50, %v1947_v13  ;;  %v931_v18 = vsel %vm918_vm3, %v2217_v43, %v1946_v14 }
  0x9f   : > { %v1960_v15 = vpop.permute.xlu0 %1959  ;;  %v921_v43 = vsel %vm918_vm3, %v2244_v63, %v1956_v24  ;;  %v922_v50 = vsel %vm918_vm3, %v2241_v62, %v1957_v19 }
  0xa0   : > { %v1962_v17 = vunpack.i.h.bf16 %v1960_v15  ;;  %v1961_v40 = vunpack.i.l.bf16 %v1960_v15 }
  0xa1   : > { %v1965_v26 = vpop.permute.xlu1 %1964 }
  0xa2   : > { %v952_v27 = vsel %vm939_vm4, %v931_v18, %v1961_v40  ;;  %v953_v28 = vsel %vm939_vm4, %v932_v41, %v1962_v17  ;;  %v1967_v32 = vunpack.i.h.bf16 %v1965_v26  ;;  %v1966_v33 = vunpack.i.l.bf16 %v1965_v26 }
  0xa3   : > { %v2515_v31 = vpack.c.bf16 %v953_v28, %v952_v27  ;;  %v1970_v34 = vpop.permute.xlu0 %1969 }
  0xa4   : > { %v1972_v35 = vunpack.i.h.bf16 %v1970_v34  ;;  %v1971_v36 = vunpack.i.l.bf16 %v1970_v34  ;;  %v924_v47 = vsel %vm918_vm3, %v2274_v21, %v1967_v32  ;;  %v923_v48 = vsel %vm918_vm3, %v2277_v22, %v1966_v33 }
  0xa5   : > { %v1975_v39 = vpop.permute.xlu1 %1974  ;;  %1847 = vmatmul.mubr.msk.bf16.vlgmr.msra.gmra.mxu1 %vm980_vm5, %v2515_v31 }
  0xa6   : > { %v1977_v42 = vunpack.i.h.bf16 %v1975_v39  ;;  %v1976_v44 = vunpack.i.l.bf16 %v1975_v39  ;;  %v942_v45 = vsel %vm939_vm4, %v921_v43, %v1971_v36  ;;  %v943_v46 = vsel %vm939_vm4, %v922_v50, %v1972_v35  ;;  %1855 = vmatpush3.bf16.msra.mxu1 %v2457_v5 }
  0xa7   : > { %v2530_v49 = vpack.c.bf16 %v943_v46, %v942_v45 }
  0xa8   : > { %v944_v63 = vsel %vm939_vm4, %v923_v48, %v1976_v44  ;;  %v945_v62 = vsel %vm939_vm4, %v924_v47, %v1977_v42 }
  0xa9   : > { %v2534_v51 = vpack.c.bf16 %v945_v62, %v944_v63  ;;  %1838 = vmatprep.mubr.msk.bf16.mxu0 %vm980_vm5, %v2530_v49 }
  0xab   : > { %1839 = vmatmul.mubr.msk.bf16.vlgmr.msra.gmra.mxu0 %vm980_vm5, %v2534_v51 }
  0xac   : > { %v1980_v5 = vpop.permute.xlu0 %1979  ;;  %1873 = vmatpush3.bf16.msra.mxu0 %v2460_v0 }
  0xad   : > { %v1982_v21 = vunpack.i.h.bf16 %v1980_v5  ;;  %v1981_v52 = vunpack.i.l.bf16 %v1980_v5 }
  0xae   : > { %v1985_v22 = vpop.permute.xlu1 %1984 }
  0xaf   : > { %v934_v58 = vsel %vm918_vm3, %v2348_v20, %v1982_v21  ;;  %v933_v59 = vsel %vm918_vm3, %v2351_v23, %v1981_v52  ;;  %v1987_v60 = vunpack.i.h.bf16 %v1985_v22  ;;  %v1986_v61 = vunpack.i.l.bf16 %v1985_v22 }
  0xb0   : > { %v1990_v54 = vpop.permute.xlu0 %1989 }
  0xb1   : > { %v1992_v56 = vunpack.i.h.bf16 %v1990_v54  ;;  %v1991_v57 = vunpack.i.l.bf16 %v1990_v54  ;;  %v936_v10 = vsel %vm918_vm3, %v2363_v30, %v1987_v60  ;;  %v935_v20 = vsel %vm918_vm3, %v2357_v29, %v1986_v61 }
  0xb3   : > { %v954_v2 = vsel %vm939_vm4, %v933_v59, %v1991_v57  ;;  %v955_v3 = vsel %vm939_vm4, %v934_v58, %v1992_v56  ;;  %v1995_v4 = vpop.permute.xlu1 %1994 }
  0xb4   : > { %v2547_v0 = vpack.c.bf16 %v955_v3, %v954_v2  ;;  %v2000_v7 = vpop.permute.xlu0 %1999  ;;  %v1997_v11 = vunpack.i.h.bf16 %v1995_v4  ;;  %v1996_v23 = vunpack.i.l.bf16 %v1995_v4 }
  0xb5   : > { %v2002_v8 = vunpack.i.h.bf16 %v2000_v7  ;;  %v2001_v9 = vunpack.i.l.bf16 %v2000_v7 }
  0xb6   : > { %1850 = vmatprep.mubr.msk.bf16.mxu1 %vm980_vm5, %v2547_v0  ;;  %v926_v30 = vsel %vm918_vm3, %v2388_v55, %v1997_v11  ;;  %v925_v29 = vsel %vm918_vm3, %v2383_v53, %v1996_v23 }
  0xb7   : > { %v956_v13 = vsel %vm939_vm4, %v935_v20, %v2001_v9  ;;  %v957_v14 = vsel %vm939_vm4, %v936_v10, %v2002_v8 }
  0xb8   : > { %v968_v15 = vpack.c.bf16 %v957_v14, %v956_v13  ;;  %v2010_v17 = vpop.permute.xlu0 %2009 }
  0xb9   : > { %v2005_v40 = vpop.permute.xlu1 %2004  ;;  %v2012_v41 = vunpack.i.h.bf16 %v2010_v17  ;;  %v2011_v18 = vunpack.i.l.bf16 %v2010_v17 }
  0xba   : > { %1851 = vmatmul.mubr.msk.bf16.gmra.mxu1 %vm980_vm5, %v968_v15  ;;  %v2007_v19 = vunpack.i.h.bf16 %v2005_v40  ;;  %v2006_v24 = vunpack.i.l.bf16 %v2005_v40 }
  0xbb   : > { %v946_v26 = vsel %vm939_vm4, %v925_v29, %v2011_v18  ;;  %v947_v27 = vsel %vm939_vm4, %v926_v30, %v2012_v41 }
  0xbc   : > { %v963_v28 = vpack.c.bf16 %v947_v27, %v946_v26  ;;  %v928_v55 = vsel %vm918_vm3, %v2422_v25, %v2007_v19  ;;  %v927_v53 = vsel %vm918_vm3, %v2411_v16, %v2006_v24 }
  0xbd   : > { %v2015_v32 = vpop.permute.xlu1 %2014 }
  0xbe   : > { %v2017_v33 = vunpack.i.h.bf16 %v2015_v32  ;;  %v2016_v34 = vunpack.i.l.bf16 %v2015_v32  ;;  %1842 = vmatprep.mubr.msk.bf16.mxu0 %vm980_vm5, %v963_v28 }
  0xc0   : > { %v948_v35 = vsel %vm939_vm4, %v927_v53, %v2016_v34  ;;  %v949_v36 = vsel %vm939_vm4, %v928_v55, %v2017_v33 }
  0xc1   : > { %v964_v39 = vpack.c.bf16 %v949_v36, %v948_v35 }
  0xc3   : > { %v2020_v43 = vpop.permute.xlu0 %2019  ;;  %1843 = vmatmul.mubr.msk.bf16.gmra.mxu0 %vm980_vm5, %v964_v39 }
  0xc4   : > { %v2022_v50 = vunpack.i.h.bf16 %v2020_v43  ;;  %v2021_v42 = vunpack.i.l.bf16 %v2020_v43  ;;  %v2025_v44 = vpop.permute.xlu1 %2024  ;;  %1874 = vmatprep.mubr.msk.bf16.mxu0 %vm980_vm5, %v2534_v51 }
  0xc5   : > { %v2027_v45 = vunpack.i.h.bf16 %v2025_v44  ;;  %v2026_v46 = vunpack.i.l.bf16 %v2025_v44 }
  0xc6   : > { %v920_v25 = vsel %vm918_vm3, %v2466_v1, %v2022_v50  ;;  %v919_v16 = vsel %vm918_vm3, %v2469_v6, %v2021_v42 }
  0xc7   : > { %v941_v47 = vsel %vm939_vm4, %v920_v25, %v2027_v45  ;;  %v940_v48 = vsel %vm939_vm4, %v919_v16, %v2026_v46 }
  0xc8   : > { %v960_v63 = vpack.c.bf16 %v941_v47, %v940_v48 }
  0xca   : > { %1856 = vmatprep.mubr.msk.bf16.mxu1 %vm980_vm5, %v960_v63  ;;  %v2030_v1 = vpop.permute.xlu0 %2029  ;;  %v2035_v62 = vpop.permute.xlu1 %2034 }
  0xcb   : > { %1857 = vmatmul.mubr.msk.bf16.vlgmr.msra.gmra.mxu1 %vm980_vm5, %v2530_v49  ;;  %1875 = vmatmul.mubr.msk.bf16.vlgmr.msra.gmra.mxu0 %vm980_vm5, %v963_v28  ;;  %v2032_v6 = vunpack.i.h.bf16 %v2030_v1  ;;  %v2031_v49 = vunpack.i.l.bf16 %v2030_v1  ;;  %v2037_v5 = vunpack.i.h.bf16 %v2035_v62  ;;  %v2036_v21 = vunpack.i.l.bf16 %v2035_v62 }
  0xcc   : > { %1860 = vmatprep.mubr.msk.bf16.mxu1 %vm980_vm5, %v2534_v51  ;;  %1878 = vmatprep.mubr.msk.bf16.mxu0 %vm980_vm5, %v964_v39 }
  0xcd   : > { %v938_v51 = vsel %vm918_vm3, %v2486_v38, %v2032_v6  ;;  %v937_v52 = vsel %vm918_vm3, %v2482_v37, %v2031_v49 }
  0xce   : > { %v959_v22 = vsel %vm939_vm4, %v938_v51, %v2037_v5  ;;  %v958_v54 = vsel %vm939_vm4, %v937_v52, %v2036_v21 }
  0xcf   : > { %v969_v56 = vpack.c.bf16 %v959_v22, %v958_v54 }
  0xd3   : > { %1861 = vmatmul.mubr.msk.bf16.gmra.mxu1 %vm980_vm5, %v963_v28  ;;  %1879 = vmatmul.mubr.msk.bf16.gmra.mxu0 %vm980_vm5, %v2505_v12 }
  0xd4   : > { %1864 = vmatprep.mubr.msk.bf16.mxu1 %vm980_vm5, %v964_v39  ;;  %1882 = vmatprep.mubr.msk.bf16.mxu0 %vm980_vm5, %v2515_v31 }
  0xdb   : > { %1865 = vmatmul.mubr.msk.bf16.gmra.mxu1 %vm980_vm5, %v2505_v12  ;;  %1883 = vmatmul.mubr.msk.bf16.gmra.mxu0 %vm980_vm5, %v2547_v0 }
  0xdc   : > { %1868 = vmatprep.mubr.msk.bf16.mxu1 %vm980_vm5, %v2515_v31  ;;  %1886 = vmatprep.mubr.msk.bf16.mxu0 %vm980_vm5, %v968_v15 }
  0xe3   : > { %1869 = vmatmul.mubr.msk.bf16.gmra.mxu1 %vm980_vm5, %v2547_v0  ;;  %1887 = vmatmul.mubr.msk.bf16.gmra.mxu0 %vm980_vm5, %v969_v56 }
 0x165   : > { %v2609_v37 = vpop.f32.mrf.mxu1 }
 0x167   : > { %v2611_v38 = vpop.f32.mrf.mxu1 }
 0x169   : > { %v2613_v57 = vpop.f32.mrf.mxu1 }
 0x16b   : > { %v1840_v12 = vpop.f32.mrf.mxu0  ;;  %v2615_v58 = vpop.f32.mrf.mxu1 }
 0x16d   : > { %v1042_v31 = vpop.f32.mrf.mxu0 }
 0x16f   : > { %v1841_v59 = vpop.f32.mrf.mxu0 }
 0x171   : > { %v1045_v61 = vpop.f32.mrf.mxu0 }
 0x17a   : > { %v2617_v60 = vpop.f32.mrf.mxu1 }
 0x17c   : > { %v2619_v2 = vpop.f32.mrf.mxu1 }
 0x17e   : > { %v2621_v4 = vpop.f32.mrf.mxu1 }
 0x180   : > { %v2623_v8 = vpop.f32.mrf.mxu1 }
 0x183   : > { %v1844_v3 = vpop.f32.mrf.mxu0 }
 0x185   : > { %v1058_v0 = vpop.f32.mrf.mxu0 }
 0x187   : > { %v1845_v7 = vpop.f32.mrf.mxu0 }
 0x189   : > { %v1061_v9 = vpop.f32.mrf.mxu0 }
 0x18b   : > { %v1858_v10 = vpop.f32.mrf.mxu1  ;;  %v1876_v20 = vpop.f32.mrf.mxu0 }
 0x18c   : > { %v1159_v11 = vadd.f32 %v1858_v10, %v1840_v12 }
 0x18d   : > { %v1150_v23 = vpop.f32.mrf.mxu1  ;;  %v1261_v13 = vpop.f32.mrf.mxu0 }
 0x18e   : > { %v1151_v14 = vadd.f32 %v1150_v23, %v1042_v31  ;;  %v1326_v15 = vadd.f32 %v1876_v20, %v1159_v11 }
 0x18f   : > { %v1859_v17 = vpop.f32.mrf.mxu1  ;;  %v1877_v40 = vpop.f32.mrf.mxu0 }
 0x190   : > { %v1795_v41 = vpack.c.bf16 %v1326_v15, %v1326_v15  ;;  %v1162_v18 = vadd.f32 %v1859_v17, %v1841_v59  ;;  %v1324_v30 = vadd.f32 %v1261_v13, %v1151_v14  ;;  %v1379_v33 = vmul.f32 %v1326_v15, %v1326_v15 }
 0x191   : > { %v1153_v29 = vpop.f32.mrf.mxu1  ;;  %v1264_v19 = vpop.f32.mrf.mxu0  ;;  %v1343_v48 = vsel %vm939_vm4, %v1326_v15, 0.0 }
 0x192   : > { %1500 = vst.msk [vmem:[%s2629_s11 + $0x8] sm:$0xf] %vm1497_vm6, %v1795_v41  ;;  %v1154_v24 = vadd.f32 %v1153_v29, %v1045_v61  ;;  %v1327_v26 = vadd.f32 %v1877_v40, %v1162_v18  ;;  %v1793_v27 = vpack.c.bf16 %v1324_v30, %v1324_v30  ;;  %v1377_v53 = vmul.f32 %v1324_v30, %v1324_v30 }
 0x193   : > { %v1862_v28 = vpop.f32.mrf.mxu1  ;;  %v1880_v32 = vpop.f32.mrf.mxu0  ;;  %v1340_v43 = vsel %vm939_vm4, %v1324_v30, 0.0  ;;  %v1396_v63 = vsel %vm939_vm4, %v1379_v33, 0.0 }
 0x194   : > { %v1796_v34 = vpack.c.bf16 %v1327_v26, %v1327_v26  ;;  %v1175_v55 = vadd.f32 %v1862_v28, %v1844_v3  ;;  %1498 = vst.msk [vmem:[%s2629_s11] sm:$0xf] %vm1497_vm6, %v1793_v27  ;;  %v1325_v35 = vadd.f32 %v1264_v19, %v1154_v24  ;;  %v1380_v44 = vmul.f32 %v1327_v26, %v1327_v26 }
 0x195   : > { %v1166_v36 = vpop.f32.mrf.mxu1  ;;  %v1277_v39 = vpop.f32.mrf.mxu0  ;;  %v1393_v49 = vsel %vm939_vm4, %v1377_v53, 0.0  ;;  %v1345_v22 = vsel %vm939_vm4, %v1327_v26, 0.0 }
 0x196   : > { %1501 = vst.msk [vmem:[%s2629_s11 + $0xc] sm:$0xf] %vm1497_vm6, %v1796_v34  ;;  %v1167_v50 = vadd.f32 %v1166_v36, %v1058_v0  ;;  %v1330_v42 = vadd.f32 %v1880_v32, %v1175_v55  ;;  %v1341_v45 = vsel %vm939_vm4, %v1325_v35, 0.0  ;;  %v1378_v46 = vmul.f32 %v1325_v35, %v1325_v35 }
 0x197   : > { %v1794_v25 = vpack.c.bf16 %v1325_v35, %v1325_v35  ;;  %v1863_v16 = vpop.f32.mrf.mxu1  ;;  %v1881_v47 = vpop.f32.mrf.mxu0  ;;  %v1342_v1 = vadd.f32 %v1341_v45, %v1340_v43  ;;  %v1398_v31 = vsel %vm939_vm4, %v1380_v44, 0.0 }
 0x198   : > { %v1799_v6 = vpack.c.bf16 %v1330_v42, %v1330_v42  ;;  %v1394_v62 = vsel %vm939_vm4, %v1378_v46, 0.0  ;;  %v1178_v5 = vadd.f32 %v1863_v16, %v1845_v7  ;;  %v1328_v21 = vadd.f32 %v1277_v39, %v1167_v50 }
 0x199   : > { %1499 = vst.msk [vmem:[%s2629_s11 + $0x4] sm:$0xf] %vm1497_vm6, %v1794_v25  ;;  %v1169_v51 = vpop.f32.mrf.mxu1  ;;  %v1280_v52 = vpop.f32.mrf.mxu0  ;;  %v1344_v54 = vadd.f32 %v1343_v48, %v1342_v1  ;;  %v1395_v56 = vadd.f32 %v1394_v62, %v1393_v49  ;;  %v1383_v13 = vmul.f32 %v1330_v42, %v1330_v42  ;;  %v1351_v53 = vsel %vm939_vm4, %v1330_v42, 0.0 }
 0x19a   : > { %1504 = vst.msk [vmem:[%s2629_s11 + $0x18] sm:$0xf] %vm1497_vm6, %v1799_v6  ;;  %v1170_v12 = vadd.f32 %v1169_v51, %v1061_v9  ;;  %v1381_v59 = vmul.f32 %v1328_v21, %v1328_v21  ;;  %v1797_v61 = vpack.c.bf16 %v1328_v21, %v1328_v21  ;;  %v1331_v3 = vadd.f32 %v1881_v47, %v1178_v5 }
 0x19b   : > { %v1866_v0 = vpop.f32.mrf.mxu1  ;;  %v1884_v10 = vpop.f32.mrf.mxu0  ;;  %v1397_v20 = vadd.f32 %v1396_v63, %v1395_v56  ;;  %v1346_v7 = vadd.f32 %v1345_v22, %v1344_v54  ;;  %v1347_v14 = vsel %vm939_vm4, %v1328_v21, 0.0  ;;  %v1404_v46 = vsel %vm939_vm4, %v1383_v13, 0.0 }
 0x19c   : > { %v1191_v11 = vadd.f32 %v1866_v0, %v2609_v37  ;;  %v1329_v23 = vadd.f32 %v1280_v52, %v1170_v12  ;;  %v1400_v15 = vsel %vm939_vm4, %v1381_v59, 0.0  ;;  %1502 = vst.msk [vmem:[%s2629_s11 + $0x10] sm:$0xf] %vm1497_vm6, %v1797_v61  ;;  %v1800_v9 = vpack.c.bf16 %v1331_v3, %v1331_v3 }
 0x19d   : > { %v1182_v17 = vpop.f32.mrf.mxu1  ;;  %v1293_v40 = vpop.f32.mrf.mxu0  ;;  %v1348_v41 = vadd.f32 %v1347_v14, %v1346_v7  ;;  %v1399_v18 = vadd.f32 %v1398_v31, %v1397_v20  ;;  %v1384_v19 = vmul.f32 %v1331_v3, %v1331_v3  ;;  %v1353_v25 = vsel %vm939_vm4, %v1331_v3, 0.0 }
 0x19e   : > { %v1349_v30 = vsel %vm939_vm4, %v1329_v23, 0.0  ;;  %v1382_v29 = vmul.f32 %v1329_v23, %v1329_v23  ;;  %1505 = vst.msk [vmem:[%s2629_s11 + $0x1c] sm:$0xf] %vm1497_vm6, %v1800_v9  ;;  %v1798_v37 = vpack.c.bf16 %v1329_v23, %v1329_v23  ;;  %v1183_v24 = vadd.f32 %v1182_v17, %v2611_v38 }
 0x19f   : > { %v1334_v26 = vadd.f32 %v1884_v10, %v1191_v11  ;;  %v1867_v27 = vpop.f32.mrf.mxu1  ;;  %v1885_v28 = vpop.f32.mrf.mxu0  ;;  %v1401_v32 = vadd.f32 %v1400_v15, %v1399_v18  ;;  %v1350_v33 = vadd.f32 %v1349_v30, %v1348_v41  ;;  %v1406_v48 = vsel %vm939_vm4, %v1384_v19, 0.0 }
 0x1a0   : > { %v1402_v34 = vsel %vm939_vm4, %v1382_v29, 0.0  ;;  %v1194_v55 = vadd.f32 %v1867_v27, %v2613_v57  ;;  %1503 = vst.msk [vmem:[%s2629_s11 + $0x14] sm:$0xf] %vm1497_vm6, %v1798_v37  ;;  %v1332_v36 = vadd.f32 %v1293_v40, %v1183_v24 }
 0x1a1   : > { %v1803_v35 = vpack.c.bf16 %v1334_v26, %v1334_v26  ;;  %v1185_v39 = vpop.f32.mrf.mxu1  ;;  %v1296_v43 = vpop.f32.mrf.mxu0  ;;  %v1352_v50 = vadd.f32 %v1351_v53, %v1350_v33  ;;  %v1403_v38 = vadd.f32 %v1402_v34, %v1401_v32  ;;  %v1387_v1 = vmul.f32 %v1334_v26, %v1334_v26 }
 0x1a2   : > { %v1186_v44 = vadd.f32 %v1185_v39, %v2615_v58  ;;  %v1335_v45 = vadd.f32 %v1885_v28, %v1194_v55  ;;  %v1385_v57 = vmul.f32 %v1332_v36, %v1332_v36  ;;  %v1801_v42 = vpack.c.bf16 %v1332_v36, %v1332_v36 }
 0x1a3   : > { %1508 = vst.msk [vmem:[%s2629_s11 + $0x28] sm:$0xf] %vm1497_vm6, %v1803_v35  ;;  %v1870_v16 = vpop.f32.mrf.mxu1  ;;  %v1888_v47 = vpop.f32.mrf.mxu0  ;;  %v1405_v63 = vadd.f32 %v1404_v46, %v1403_v38  ;;  %v1354_v6 = vadd.f32 %v1353_v25, %v1352_v50  ;;  %v1355_v49 = vsel %vm939_vm4, %v1332_v36, 0.0  ;;  %v1359_v11 = vsel %vm939_vm4, %v1334_v26, 0.0 }
 0x1a4   : > { %1506 = vst.msk [vmem:[%s2629_s11 + $0x20] sm:$0xf] %vm1497_vm6, %v1801_v42  ;;  %v1804_v58 = vpack.c.bf16 %v1335_v45, %v1335_v45  ;;  %v1207_v62 = vadd.f32 %v1870_v16, %v2617_v60  ;;  %v1333_v5 = vadd.f32 %v1296_v43, %v1186_v44  ;;  %v1408_v54 = vsel %vm939_vm4, %v1385_v57, 0.0 }
 0x1a5   : > { %v1198_v21 = vpop.f32.mrf.mxu1  ;;  %v1309_v51 = vpop.f32.mrf.mxu0  ;;  %v1356_v52 = vadd.f32 %v1355_v49, %v1354_v6  ;;  %v1407_v22 = vadd.f32 %v1406_v48, %v1405_v63  ;;  %v1388_v23 = vmul.f32 %v1335_v45, %v1335_v45  ;;  %v1412_v15 = vsel %vm939_vm4, %v1387_v1, 0.0 }
 0x1a6   : > { %v1199_v56 = vadd.f32 %v1198_v21, %v2619_v2  ;;  %1509 = vst.msk [vmem:[%s2629_s11 + $0x2c] sm:$0xf] %vm1497_vm6, %v1804_v58  ;;  %v1357_v12 = vsel %vm939_vm4, %v1333_v5, 0.0  ;;  %v1386_v31 = vmul.f32 %v1333_v5, %v1333_v5  ;;  %v1802_v59 = vpack.c.bf16 %v1333_v5, %v1333_v5 }
 0x1a7   : > { %v1338_v61 = vadd.f32 %v1888_v47, %v1207_v62  ;;  %v1871_v3 = vpop.f32.mrf.mxu1  ;;  %v1889_v0 = vpop.f32.mrf.mxu0  ;;  %v1409_v60 = vadd.f32 %v1408_v54, %v1407_v22  ;;  %v1358_v10 = vadd.f32 %v1357_v12, %v1356_v52  ;;  %v1361_v9 = vsel %vm939_vm4, %v1335_v45, 0.0 }
 0x1a8   : > { %v1210_v20 = vadd.f32 %v1871_v3, %v2621_v4  ;;  %v1336_v7 = vadd.f32 %v1309_v51, %v1199_v56  ;;  %v1410_v2 = vsel %vm939_vm4, %v1386_v31, 0.0  ;;  %1507 = vst.msk [vmem:[%s2629_s11 + $0x24] sm:$0xf] %vm1497_vm6, %v1802_v59  ;;  %v1414_v24 = vsel %vm939_vm4, %v1388_v23, 0.0 }
 0x1a9   : > { %v1807_v13 = vpack.c.bf16 %v1338_v61, %v1338_v61  ;;  %v1201_v14 = vpop.f32.mrf.mxu1  ;;  %v1360_v17 = vadd.f32 %v1359_v11, %v1358_v10  ;;  %v1411_v40 = vadd.f32 %v1410_v2, %v1409_v60  ;;  %v1312_v41 = vpop.f32.mrf.mxu0  ;;  %v1391_v32 = vmul.f32 %v1338_v61, %v1338_v61 }
 0x1aa   : > { %v1389_v4 = vmul.f32 %v1336_v7, %v1336_v7  ;;  %v1805_v18 = vpack.c.bf16 %v1336_v7, %v1336_v7  ;;  %v1202_v30 = vadd.f32 %v1201_v14, %v2623_v8  ;;  %v1339_v29 = vadd.f32 %v1889_v0, %v1210_v20 }
 0x1ab   : > { %1512 = vst.msk [vmem:[%s2629_s11 + $0x38] sm:$0xf] %vm1497_vm6, %v1807_v13  ;;  %v1413_v19 = vadd.f32 %v1412_v15, %v1411_v40  ;;  %v1362_v37 = vadd.f32 %v1361_v9, %v1360_v17  ;;  %v1363_v26 = vsel %vm939_vm4, %v1336_v7, 0.0  ;;  %v1367_v43 = vsel %vm939_vm4, %v1338_v61, 0.0 }
 0x1ac   : > { %1510 = vst.msk [vmem:[%s2629_s11 + $0x30] sm:$0xf] %vm1497_vm6, %v1805_v18  ;;  %v1808_v27 = vpack.c.bf16 %v1339_v29, %v1339_v29  ;;  %v1337_v28 = vadd.f32 %v1312_v41, %v1202_v30  ;;  %v1416_v55 = vsel %vm939_vm4, %v1389_v4, 0.0  ;;  %v1392_v50 = vmul.f32 %v1339_v29, %v1339_v29 }
 0x1ad   : > { %v1364_v33 = vadd.f32 %v1363_v26, %v1362_v37  ;;  %v1415_v34 = vadd.f32 %v1414_v24, %v1413_v19  ;;  %v1420_v46 = vsel %vm939_vm4, %v1391_v32, 0.0  ;;  %v1369_v25 = vsel %vm939_vm4, %v1339_v29, 0.0 }
 0x1ae   : > { %1513 = vst.msk [vmem:[%s2629_s11 + $0x3c] sm:$0xf] %vm1497_vm6, %v1808_v27  ;;  %v1365_v8 = vsel %vm939_vm4, %v1337_v28, 0.0  ;;  %v1390_v53 = vmul.f32 %v1337_v28, %v1337_v28  ;;  %v1806_v35 = vpack.c.bf16 %v1337_v28, %v1337_v28  ;;  %v1422_v16 = vsel %vm939_vm4, %v1392_v50, 0.0 }
 0x1af   : > { %v1417_v36 = vadd.f32 %v1416_v55, %v1415_v34  ;;  %v1366_v39 = vadd.f32 %v1365_v8, %v1364_v33 }
 0x1b0   : > { %v1418_v38 = vsel %vm939_vm4, %v1390_v53, 0.0  ;;  %1511 = vst.msk [vmem:[%s2629_s11 + $0x34] sm:$0xf] %vm1497_vm6, %v1806_v35 }
 0x1b1   : > { %v1368_v44 = vadd.f32 %v1367_v43, %v1366_v39  ;;  %v1419_v45 = vadd.f32 %v1418_v38, %v1417_v36 }
 0x1b3   : > { %v1370_v57 = vadd.f32 %v1369_v25, %v1368_v44  ;;  %v1421_v42 = vadd.f32 %v1420_v46, %v1419_v45 }
 0x1b5   : > { %v1371_v47 = vrot.slane %v1370_v57, 4  ;;  %v1423_v48 = vadd.f32 %v1422_v16, %v1421_v42 }
 0x1b7   : > { %v1372_v63 = vadd.f32 %v1371_v47, %v1370_v57  ;;  %v1424_v1 = vrot.slane %v1423_v48, 4 }
 0x1b9   : > { %v1373_v6 = vrot.slane %v1372_v63, 2  ;;  %v1425_v49 = vadd.f32 %v1424_v1, %v1423_v48 }
 0x1bb   : > { %v1374_v58 = vadd.f32 %v1373_v6, %v1372_v63  ;;  %v1426_v62 = vrot.slane %v1425_v49, 2 }
 0x1bd   : > { %v1375_v5 = vrot.slane %v1374_v58, 1  ;;  %v1427_v21 = vadd.f32 %v1426_v62, %v1425_v49 }
 0x1bf   : > { %v1428_v51 = vrot.slane %v1427_v21, 1  ;;  %v1376_v52 = vadd.f32 %v1375_v5, %v1374_v58 }
 0x1c1   : > { %v1429_v22 = vadd.f32 %v1428_v51, %v1427_v21 }
 0x1c3   : > { %v1430_v54 = vsel %vm595_vm0, %v1376_v52, %v1429_v22 }
 0x1c4   : > { %1432 = vst.msk [vmem:[%s467_s15] sm:$0x3] %vm1431_vm7, %v1430_v54 }
 0x1c5 PF: > { %s18_s28 = sadd.s32 1, %s2079_s28   ;;  %s2732_s24 = smov %s2071_s26 }
 0x1c6   : > { %p15_p12 = scmp.ge.s32.totalorder %s18_s28, 6   ;;  %s2733_s25 = smov %s2075_s27 }
 0x1c7   : > { %s2734_s26 = smov %s2737_s29  ;;  %s2735_s27 = smov %s2741_s30 }
 0x1c8   :  { %17 = sbr.rel (!%p15_p12) target bundleno = 3 (0x3), region = 94 }

// kernel: conv_block_forward.5
= control target key start
LH: loop header
LB: loop body
LE: loop exit
PB: predicated region body
PF: predicated region fallthrough
CT: control target
= control target key end

     0   :  { %s2723_s17 = smov 0   ;;  %s2725_s18 = smov 0   ;;  %s3548_s0 = inlined_call_operand.vmem [shape: bf16[2,16,16,4], index: 0, kind: input, shape index: {}, may-alias: {0,1,2}]   ;;  %s3549_s1 = inlined_call_operand.vmem [shape: bf16[2,16,16,4], index: 1, kind: input, shape index: {}, may-alias: {0,1,2}]   ;;  %s3550_s2 = inlined_call_operand.vmem [shape: bf16[2,16,16,4], index: 2, kind: input, shape index: {}, may-alias: {0,1,2}]   ;;  %s3551_s3 = inlined_call_operand.vmem [shape: f32[1,4], index: 3, kind: input, shape index: {}]   ;;  %s3552_s4 = inlined_call_operand.vmem [shape: f32[1,4], index: 4, kind: input, shape index: {}]   ;;  %s3553_s5 = inlined_call_operand.vmem [shape: bf16[3,12,4], index: 5, kind: input, shape index: {}]   ;;  %s3554_s6 = inlined_call_operand.vmem [shape: bf16[2,16,16,8], index: 6, kind: input, shape index: {}]   ;;  %s3555_s7 = inlined_call_operand.vmem [shape: f32[2,16,16,4], index: 7, kind: input, shape index: {}]   ;;  %s3556_s8 = inlined_call_operand.vmem [shape: f32[1,4], index: 8, kind: input, shape index: {}]   ;;  %s3557_s9 = inlined_call_operand.vmem [shape: f32[1,4], index: 9, kind: input, shape index: {}]   ;;  %s3558_s10 = inlined_call_operand.vmem [shape: bf16[4,16], index: 10, kind: input, shape index: {}]   ;;  %s3559_s11 = inlined_call_operand.vmem [shape: f32[2,16,16,16], index: 11, kind: output, shape index: {}]  }
   0x1   :  { %s2727_s19 = smov 0   ;;  %s2729_s20 = smov 0  }
   0x2   :  { %s2731_s21 = smov 0  }
   0x3 LB: > { %s30_s22 = sadd.s32 1, %s2650_s19  ;;  %s33_s23 = sadd.s32 1, %s2654_s20  ;;  %s2658_s21 = sphi %s2731_s21, %s21_s21   ;;  %s2654_s20 = sphi %s2729_s20, %s3564_s20   ;;  %s2650_s19 = sphi %s2727_s19, %s3563_s19   ;;  %s2646_s18 = sphi %s2725_s18, %s3562_s18   ;;  %s2642_s17 = sphi %s2723_s17, %s3561_s17  }
   0x4   : > { %p31_p0 = scmp.ge.s32.totalorder %s30_s22, 2  ;;  %p2155_p1 = scmp.ge.s32.totalorder %s2658_s21, 1 }
   0x5   : > { %p459_p2 = scmp.lt.s32.totalorder %s2658_s21, 5 }
   0x6   : > { %s3566_s22 = smov (%p31_p0, %s30_s22), 0  ;;  %s3568_s23 = smov (!%p31_p0, %s33_s23), %s2654_s20 }
   0x7   : > { %p460_p3 = pnand %p2155_p1, %p459_p2  ;;  %p35_p4 = scmp.ge.s32.totalorder %s3568_s23, 2 }
   0x8   : > { %s2756_s24 = sshll.u32 (!%p460_p3), %s2642_s17, 3  ;;  %p556_p5 = scmp.lt.s32.totalorder (!%p460_p3), %s2646_s18, 1 }
   0x9   : > { %s3570_s23 = smov (%p35_p4, %s3568_s23), 0  ;;  %463 = sbr.rel (%p460_p3) target bundleno = 559 (0x22f), region = 64 }
   0xa   : > { %p558_p6 = scmp.lt.s32.totalorder (!%p460_p3), %s2756_s24, 15  ;;  %s2867_s30 = sadd.s32 (!%p460_p3), 4294967295, %s2756_s24 }
   0xb   : > { %s2660_s12 = smov (!%p460_p3), 8   ;;  %s2661_s14 = smov (!%p460_p3), 4  }
   0xc   : > { %p568_p7 = scmp.gt.s32.totalorder (!%p460_p3), %s2867_s30, 0  ;;  %s584_s15 = sadd.s32 (!%p460_p3), 8, %s2756_s24 }
   0xd   : > { %p2162_p8 = scmp.lt.s32.totalorder (!%p460_p3), %s2867_s30, 15  ;;  %p2922_p9 = scmp.lt.s32.totalorder (!%p460_p3), %s584_s15, 15 }
   0xe   : > { %s3572_s18 = smov (!%p556_p5, %s2646_s18), 1  ;;  %v2776_v0 = vld [vmem:[%s3551_s3] ss:$0 sm:$0xff]  ;;  %vm780_vm0 = vcmask 1040384   ;;  %vm992_vm1 = vcmask 1045504   ;;  %vm881_vm2 = vcmask 1046528  }
   0xf   : > { %s559_s25 = scalar_select %p558_p6, %s2756_s24, 15  ;;  %v2797_v9 = vld [vmem:[%s3552_s4] ss:$0 sm:$0xff]  ;;  %v2848_v50 = vld [vmem:[%s3553_s5 + $0x8] sm:$0x3f]   ;;  %vm1636_vm3 = vcmask 1041408  }
  0x10   : > { %s2760_s26 = sshll.u32 %s3572_s18, 5  ;;  %2430 = vmatprep.subr.msk.bf16.mxu0 %vm992_vm1, %v2848_v50  ;;  %s3576_s15 = smov (!%p2922_p9, %s584_s15), 15  ;;  %vm1103_vm4 = vcmask 31744   ;;  %vm1124_vm5 = vcmask 64512   ;;  %vm1165_vm6 = vcmask 97280   ;;  %vm1945_vm7 = vcmask 130048  }
  0x11   : > { %s2157_s27 = sshll.u32 %s559_s25, 1  ;;  %s3578_s15 = smov (!%p2922_p9, %s3576_s15), 15 }
  0x12   : > { %s2763_s28 = sadd.s32 %s2760_s26, %s2157_s27  ;;  %s3003_s25 = sshll.u32 %s3578_s15, 1 }
  0x13   : > { %s2159_s29 = sshll.u32 %s2763_s28, 2  ;;  %p636_p10 = scmp.gt.s32.totalorder %s2642_s17, 0 }
  0x14   : > { %s2771_s13 = scalar_lea.vmem %s3548_s0, %s2159_s29  ;;  %p639_p11 = scmp.lt.s32.totalorder %s2642_s17, 1 }
  0x15   : > { %v2779_v1 = vld [vmem:[%s2771_s13] sm:$0xff]   ;;  %v2782_v2 = vld [vmem:[%s2771_s13 + $0x8] sm:$0xff]   ;;  %v2785_v3 = vld [vmem:[%s2771_s13 + $0x18] sm:$0xff]   ;;  %s569_s16 = scalar_select %p568_p7, %s2867_s30, 0 }
  0x16   : > { %v2242_v4 = vunpack.c.l.bf16 %v2779_v1  ;;  %v2243_v5 = vunpack.c.h.bf16 %v2779_v1  ;;  %v2246_v6 = vunpack.c.l.bf16 %v2782_v2  ;;  %v2247_v7 = vunpack.c.h.bf16 %v2782_v2  ;;  %v2792_v8 = vld [vmem:[%s2771_s13 + $0x10] sm:$0xff]   ;;  %s593_s30 = sadd.s32 %s3003_s25, %s2760_s26 }
  0x17   : > { %v2254_v10 = vunpack.c.l.bf16 %v2785_v3  ;;  %v2255_v11 = vunpack.c.h.bf16 %v2785_v3  ;;  %v2250_v12 = vunpack.c.l.bf16 %v2792_v8  ;;  %v2251_v13 = vunpack.c.h.bf16 %v2792_v8  ;;  %s3574_s16 = smov (!%p2162_p8, %s569_s16), 15 }
  0x18   : > { %v699_v14 = vmul.f32 %v2242_v4, %v2776_v0  ;;  %v700_v15 = vmul.f32 %v2243_v5, %v2776_v0  ;;  %v701_v16 = vmul.f32 %v2246_v6, %v2776_v0  ;;  %v702_v17 = vmul.f32 %v2247_v7, %v2776_v0  ;;  %s2167_s24 = sshll.u32 %s3574_s16, 1 }
  0x19   : > { %v705_v18 = vmul.f32 %v2254_v10, %v2776_v0  ;;  %v706_v19 = vmul.f32 %v2255_v11, %v2776_v0  ;;  %v703_v20 = vmul.f32 %v2250_v12, %v2776_v0  ;;  %v704_v21 = vmul.f32 %v2251_v13, %v2776_v0 }
  0x1a   : > { %v715_v22 = vadd.f32 %v2797_v9, %v699_v14  ;;  %v716_v23 = vadd.f32 %v2797_v9, %v700_v15  ;;  %v717_v24 = vadd.f32 %v2797_v9, %v701_v16  ;;  %v718_v25 = vadd.f32 %v2797_v9, %v702_v17 }
  0x1b   : > { %v721_v26 = vadd.f32 %v2797_v9, %v705_v18  ;;  %v722_v27 = vadd.f32 %v2797_v9, %v706_v19  ;;  %v719_v28 = vadd.f32 %v2797_v9, %v703_v20  ;;  %v720_v29 = vadd.f32 %v2797_v9, %v704_v21 }
  0x1c   : > { %v731_v30 = vmax.f32 %v715_v22, 0.0  ;;  %v732_v31 = vmax.f32 %v716_v23, 0.0  ;;  %v733_v32 = vmax.f32 %v717_v24, 0.0  ;;  %v734_v33 = vmax.f32 %v718_v25, 0.0 }
  0x1d   : > { %v737_v34 = vmax.f32 %v721_v26, 0.0  ;;  %v738_v35 = vmax.f32 %v722_v27, 0.0  ;;  %v735_v36 = vmax.f32 %v719_v28, 0.0  ;;  %v736_v37 = vmax.f32 %v720_v29, 0.0 }
  0x1e   : > { %v784_v38 = vrot.slane %v731_v30, 7  ;;  %v785_v39 = vrot.slane %v732_v31, 7  ;;  %v787_v40 = vrot.slane %v733_v32, 7  ;;  %v788_v41 = vrot.slane %v734_v33, 7 }
  0x1f   : > { %v793_v42 = vrot.slane %v737_v34, 7  ;;  %v794_v43 = vrot.slane %v738_v35, 7  ;;  %v790_v44 = vrot.slane %v735_v36, 7  ;;  %v791_v45 = vrot.slane %v736_v37, 7 }
  0x20   : > { %v2836_v46 = vsel %vm780_vm0, %v784_v38, %v785_v39  ;;  %v2839_v47 = vsel %vm780_vm0, 0.0, %v784_v38  ;;  %v852_v48 = vsel %vm780_vm0, %v785_v39, 0.0  ;;  %v2843_v49 = vsel %vm780_vm0, %v787_v40, %v788_v41 }
  0x21   : > { %v998_v51 = vrot.slane %v2839_v47, 2  ;;  %v999_v52 = vrot.slane %v2836_v46, 2  ;;  %v1001_v53 = vrot.slane %v852_v48, 2  ;;  %v887_v54 = vrot.slane %v2839_v47, 1 }
  0x22   : > { %v888_v55 = vrot.slane %v2836_v46, 1  ;;  %v890_v56 = vrot.slane %v852_v48, 1  ;;  %v2855_v57 = vsel %vm780_vm0, 0.0, %v787_v40  ;;  %v853_v58 = vsel %vm780_vm0, %v788_v41, 0.0 }
  0x23   : > { %v1000_v59 = vsel %vm992_vm1, %v998_v51, %v999_v52  ;;  %v1002_v60 = vsel %vm992_vm1, %v999_v52, %v1001_v53  ;;  %v1003_v61 = vrot.slane %v2855_v57, 2  ;;  %v1004_v62 = vrot.slane %v2843_v49, 2 }
  0x24   : > { %v2487_v63 = vpack.i.bf16 %v1002_v60, %v1000_v59  ;;  %v889_v14 = vsel %vm881_vm2, %v887_v54, %v888_v55  ;;  %v891_v15 = vsel %vm881_vm2, %v888_v55, %v890_v56  ;;  %v1006_v16 = vrot.slane %v853_v58, 2  ;;  %v2915_v54 = vld [vmem:[%s2771_s13 + $0x20] sm:$0xff]   ;;  %v2918_v55 = vld [vmem:[%s2771_s13 + $0x38] sm:$0xff]  }
  0x25   : > { %v2477_v17 = vpack.i.bf16 %v891_v15, %v889_v14  ;;  %v1005_v18 = vsel %vm992_vm1, %v1003_v61, %v1004_v62  ;;  %v892_v19 = vrot.slane %v2855_v57, 1  ;;  %v893_v20 = vrot.slane %v2843_v49, 1  ;;  %v2933_v15 = vld [vmem:[%s2771_s13 + $0x30] sm:$0xff]  }
  0x26   : > { %2488 = vrot.lane.b32.xlu1 %v2487_v63, %s2660_s12  ;;  %v1007_v21 = vsel %vm992_vm1, %v1004_v62, %v1006_v16  ;;  %v895_v22 = vrot.slane %v853_v58, 1  ;;  %v2875_v23 = vsel %vm780_vm0, %v793_v42, %v794_v43  ;;  %v2878_v24 = vsel %vm780_vm0, 0.0, %v793_v42 }
  0x27   : > { %2478 = vrot.lane.b32.xlu0 %v2477_v17, %s2661_s14  ;;  %v2492_v25 = vpack.i.bf16 %v1007_v21, %v1005_v18  ;;  %v894_v26 = vsel %vm881_vm2, %v892_v19, %v893_v20  ;;  %v855_v27 = vsel %vm780_vm0, %v794_v43, 0.0  ;;  %v902_v28 = vrot.slane %v2878_v24, 1 }
  0x28   : > { %v896_v29 = vsel %vm881_vm2, %v893_v20, %v895_v22  ;;  %v903_v30 = vrot.slane %v2875_v23, 1  ;;  %v905_v31 = vrot.slane %v855_v27, 1  ;;  %v2888_v32 = vsel %vm780_vm0, %v790_v44, %v791_v45 }
  0x29   : > { %v2482_v33 = vpack.i.bf16 %v896_v29, %v894_v26  ;;  %v2891_v34 = vsel %vm780_vm0, 0.0, %v790_v44  ;;  %v854_v35 = vsel %vm780_vm0, %v791_v45, 0.0  ;;  %v898_v36 = vrot.slane %v2888_v32, 1  ;;  %v2905_v45 = vld [vmem:[%s2771_s13 + $0x28] sm:$0xff]   ;;  %s2994_s13 = sadd.s32 %s2167_s24, %s2760_s26  ;;  %s3037_s26 = sshll.u32 %s593_s30, 2 }
  0x2a   : > { %2493 = vrot.lane.b32.xlu1 %v2492_v25, %s2660_s12  ;;  %v904_v37 = vsel %vm881_vm2, %v902_v28, %v903_v30  ;;  %v906_v38 = vsel %vm881_vm2, %v903_v30, %v905_v31  ;;  %v897_v39 = vrot.slane %v2891_v34, 1  ;;  %v900_v40 = vrot.slane %v854_v35, 1  ;;  %s2169_s27 = sshll.u32 %s2994_s13, 2  ;;  %s595_s25 = scalar_lea.vmem %s3550_s2, %s3037_s26 }
  0x2b   : > { %2483 = vrot.lane.b32.xlu0 %v2482_v33, %s2661_s14  ;;  %v2502_v41 = vpack.i.bf16 %v906_v38, %v904_v37  ;;  %v1013_v42 = vrot.slane %v2878_v24, 2  ;;  %v1014_v43 = vrot.slane %v2875_v23, 2  ;;  %v1016_v44 = vrot.slane %v855_v27, 2  ;;  %s578_s18 = scalar_lea.vmem %s3549_s1, %s2169_s27 }
  0x2c   : > { %v899_v48 = vsel %vm881_vm2, %v897_v39, %v898_v36  ;;  %v901_v51 = vsel %vm881_vm2, %v898_v36, %v900_v40  ;;  %v1008_v52 = vrot.slane %v2891_v34, 2  ;;  %v1009_v53 = vrot.slane %v2888_v32, 2  ;;  %s3060_s27 = scalar_select %p636_p10, 1, 0 }
  0x2d   : > { %v2497_v56 = vpack.i.bf16 %v901_v51, %v899_v48  ;;  %v1015_v58 = vsel %vm992_vm1, %v1013_v42, %v1014_v43  ;;  %v1017_v59 = vsel %vm992_vm1, %v1014_v43, %v1016_v44  ;;  %v1011_v60 = vrot.slane %v854_v35, 2  ;;  %s3077_s30 = scalar_select %p639_p11, 1, 0 }
  0x2e   : > { %2503 = vrot.lane.b32.xlu1 %v2502_v41, %s2661_s14  ;;  %v2512_v61 = vpack.i.bf16 %v1017_v59, %v1015_v58  ;;  %v1010_v62 = vsel %vm992_vm1, %v1008_v52, %v1009_v53  ;;  %v2262_v63 = vunpack.c.l.bf16 %v2905_v45  ;;  %v2263_v14 = vunpack.c.h.bf16 %v2905_v45  ;;  %s638_s15 = scvt.s32.f32 %s3060_s27 }
  0x2f   : > { %2498 = vrot.lane.b32.xlu0 %v2497_v56, %s2661_s14  ;;  %v1012_v16 = vsel %vm992_vm1, %v1009_v53, %v1011_v60  ;;  %v2258_v17 = vunpack.c.l.bf16 %v2915_v54  ;;  %v2259_v18 = vunpack.c.h.bf16 %v2915_v54  ;;  %v2270_v19 = vunpack.c.l.bf16 %v2918_v55 }
  0x30   : > { %v2507_v20 = vpack.i.bf16 %v1012_v16, %v1010_v62  ;;  %v709_v21 = vmul.f32 %v2262_v63, %v2776_v0  ;;  %v710_v22 = vmul.f32 %v2263_v14, %v2776_v0  ;;  %v2271_v25 = vunpack.c.h.bf16 %v2918_v55 }
  0x31   : > { %v707_v26 = vmul.f32 %v2258_v17, %v2776_v0  ;;  %v708_v27 = vmul.f32 %v2259_v18, %v2776_v0  ;;  %v713_v28 = vmul.f32 %v2270_v19, %v2776_v0  ;;  %v2266_v29 = vunpack.c.l.bf16 %v2933_v15 }
  0x32   : > { %2513 = vrot.lane.b32.xlu1 %v2512_v61, %s2660_s12  ;;  %v725_v30 = vadd.f32 %v2797_v9, %v709_v21  ;;  %v726_v31 = vadd.f32 %v2797_v9, %v710_v22  ;;  %v714_v33 = vmul.f32 %v2271_v25, %v2776_v0  ;;  %v2267_v35 = vunpack.c.h.bf16 %v2933_v15 }
  0x33   : > { %2508 = vrot.lane.b32.xlu0 %v2507_v20, %s2660_s12  ;;  %v723_v36 = vadd.f32 %v2797_v9, %v707_v26  ;;  %v724_v37 = vadd.f32 %v2797_v9, %v708_v27  ;;  %v729_v38 = vadd.f32 %v2797_v9, %v713_v28  ;;  %v711_v39 = vmul.f32 %v2266_v29, %v2776_v0 }
  0x34   : > { %v741_v40 = vmax.f32 %v725_v30, 0.0  ;;  %v742_v41 = vmax.f32 %v726_v31, 0.0  ;;  %v730_v42 = vadd.f32 %v2797_v9, %v714_v33  ;;  %v712_v43 = vmul.f32 %v2267_v35, %v2776_v0 }
  0x35   : > { %v739_v44 = vmax.f32 %v723_v36, 0.0  ;;  %v740_v48 = vmax.f32 %v724_v37, 0.0  ;;  %v745_v51 = vmax.f32 %v729_v38, 0.0  ;;  %v727_v52 = vadd.f32 %v2797_v9, %v711_v39 }
  0x36   : > { %v799_v53 = vrot.slane %v741_v40, 7  ;;  %v800_v56 = vrot.slane %v742_v41, 7  ;;  %v746_v58 = vmax.f32 %v730_v42, 0.0  ;;  %v2991_v59 = vadd.f32 %v2797_v9, %v712_v43 }
  0x37   : > { %v796_v60 = vrot.slane %v739_v44, 7  ;;  %v797_v61 = vrot.slane %v740_v48, 7  ;;  %v805_v62 = vrot.slane %v745_v51, 7  ;;  %v743_v16 = vmax.f32 %v727_v52, 0.0 }
  0x38   : > { %v2997_v20 = vsel %vm780_vm0, %v799_v53, %v800_v56  ;;  %v3000_v21 = vsel %vm780_vm0, 0.0, %v799_v53  ;;  %v857_v22 = vsel %vm780_vm0, %v800_v56, 0.0  ;;  %v806_v26 = vrot.slane %v746_v58, 7 }
  0x39   : > { %v912_v27 = vrot.slane %v3000_v21, 1  ;;  %v913_v28 = vrot.slane %v2997_v20, 1  ;;  %v915_v30 = vrot.slane %v857_v22, 1  ;;  %v3008_v31 = vsel %vm780_vm0, %v796_v60, %v797_v61 }
  0x3a   : > { %v3012_v33 = vsel %vm780_vm0, 0.0, %v796_v60  ;;  %v856_v36 = vsel %vm780_vm0, %v797_v61, 0.0  ;;  %v908_v37 = vrot.slane %v3008_v31, 1  ;;  %v1023_v38 = vrot.slane %v3000_v21, 2 }
  0x3b   : > { %v914_v39 = vsel %vm881_vm2, %v912_v27, %v913_v28  ;;  %v916_v40 = vsel %vm881_vm2, %v913_v28, %v915_v30  ;;  %v907_v41 = vrot.slane %v3012_v33, 1  ;;  %v910_v42 = vrot.slane %v856_v36, 1 }
  0x3c   : > { %v2522_v43 = vpack.i.bf16 %v916_v40, %v914_v39  ;;  %v1024_v44 = vrot.slane %v2997_v20, 2  ;;  %v1026_v48 = vrot.slane %v857_v22, 2  ;;  %v1018_v51 = vrot.slane %v3012_v33, 2  ;;  %v2237_v39 = vld [vmem:[%s578_s18] sm:$0xff]   ;;  %s641_s18 = scvt.s32.f32 %s3077_s30 }
  0x3d   : > { %v909_v52 = vsel %vm881_vm2, %v907_v41, %v908_v37  ;;  %v911_v53 = vsel %vm881_vm2, %v908_v37, %v910_v42  ;;  %v1019_v56 = vrot.slane %v3008_v31, 2  ;;  %v1021_v58 = vrot.slane %v856_v36, 2 }
  0x3e   : > { %2523 = vrot.lane.b32.xlu1 %v2522_v43, %s2661_s14  ;;  %v2517_v60 = vpack.i.bf16 %v911_v53, %v909_v52  ;;  %v1025_v61 = vsel %vm992_vm1, %v1023_v38, %v1024_v44  ;;  %v1027_v22 = vsel %vm992_vm1, %v1024_v44, %v1026_v48  ;;  %v3034_v27 = vsel %vm780_vm0, %v805_v62, %v806_v26 }
  0x3f   : > { %v2532_v28 = vpack.i.bf16 %v1027_v22, %v1025_v61  ;;  %v1020_v30 = vsel %vm992_vm1, %v1018_v51, %v1019_v56  ;;  %v1022_v36 = vsel %vm992_vm1, %v1019_v56, %v1021_v58  ;;  %v3042_v37 = vsel %vm780_vm0, 0.0, %v805_v62 }
  0x40   : > { %2518 = vrot.lane.b32.xlu0 %v2517_v60, %s2661_s14  ;;  %v2527_v38 = vpack.i.bf16 %v1022_v36, %v1020_v30  ;;  %v859_v40 = vsel %vm780_vm0, %v806_v26, 0.0  ;;  %v922_v41 = vrot.slane %v3042_v37, 1  ;;  %v923_v42 = vrot.slane %v3034_v27, 1  ;;  %v2273_v30 = vld [vmem:[%s595_s25] sm:$0xff]   ;;  %s3425_s25 = scalar_lea.vmem %s3554_s6, %s2159_s29 }
  0x41   : > { %v925_v43 = vrot.slane %v859_v40, 1  ;;  %v744_v44 = vmax.f32 %v2991_v59, 0.0  ;;  %v802_v48 = vrot.slane %v743_v16, 7  ;;  %v1033_v51 = vrot.slane %v3042_v37, 2 }
  0x42   : > { %2533 = vrot.lane.b32.xlu1 %v2532_v28, %s2660_s12  ;;  %v924_v62 = vsel %vm881_vm2, %v922_v41, %v923_v42  ;;  %v1034_v26 = vrot.slane %v3034_v27, 2  ;;  %v1036_v52 = vrot.slane %v859_v40, 2  ;;  %v2238_v59 = vunpack.c.l.bf16 %v2237_v39 }
  0x43   : > { %v926_v16 = vsel %vm881_vm2, %v923_v42, %v925_v43  ;;  %v803_v53 = vrot.slane %v744_v44, 7  ;;  %v3064_v56 = vsel %vm780_vm0, 0.0, %v802_v48  ;;  %v2239_v58 = vunpack.c.h.bf16 %v2237_v39 }
  0x44   : > { %2528 = vrot.lane.b32.xlu0 %v2527_v38, %s2660_s12  ;;  %v2542_v60 = vpack.i.bf16 %v926_v16, %v924_v62  ;;  %v917_v61 = vrot.slane %v3064_v56, 1  ;;  %v1035_v22 = vsel %vm992_vm1, %v1033_v51, %v1034_v26  ;;  %v1037_v28 = vsel %vm992_vm1, %v1034_v26, %v1036_v52 }
  0x45   : > { %v3071_v36 = vsel %vm780_vm0, %v802_v48, %v803_v53  ;;  %v858_v40 = vsel %vm780_vm0, %v803_v53, 0.0  ;;  %v2552_v41 = vpack.i.bf16 %v1037_v28, %v1035_v22  ;;  %v1028_v42 = vrot.slane %v3064_v56, 2 }
  0x46   : > { %2543 = vrot.lane.b32.xlu1 %v2542_v60, %s2661_s14  ;;  %v918_v39 = vrot.slane %v3071_v36, 1  ;;  %v920_v38 = vrot.slane %v858_v40, 1  ;;  %v1029_v43 = vrot.slane %v3071_v36, 2  ;;  %v1031_v44 = vrot.slane %v858_v40, 2  ;;  %v2618_v60 = vld [vmem:[%s3553_s5 + $0x10] sm:$0x3f]  }
  0x47   : > { %v652_v48 = vmul.f32 %v2238_v59, %v2776_v0  ;;  %v653_v51 = vmul.f32 %v2239_v58, %v2776_v0  ;;  %v2274_v62 = vunpack.c.l.bf16 %v2273_v30  ;;  %v664_v58 = vstv %s638_s15 }
  0x48   : > { %v919_v26 = vsel %vm881_vm2, %v917_v61, %v918_v39  ;;  %v921_v52 = vsel %vm881_vm2, %v918_v39, %v920_v38  ;;  %v1030_v16 = vsel %vm992_vm1, %v1028_v42, %v1029_v43  ;;  %v1032_v53 = vsel %vm992_vm1, %v1029_v43, %v1031_v44  ;;  %v2619_v44 = vld [vmem:[%s3553_s5] sm:$0x3f]  }
  0x49   : > { %v2537_v22 = vpack.i.bf16 %v921_v52, %v919_v26  ;;  %v660_v28 = vadd.f32 %v2797_v9, %v652_v48  ;;  %v661_v59 = vadd.f32 %v2797_v9, %v653_v51  ;;  %v2275_v61 = vunpack.c.h.bf16 %v2273_v30  ;;  %2431 = vmatprep.subr.msk.bf16.mxu1 %vm992_vm1, %v2619_v44 }
  0x4a   : > { %2553 = vrot.lane.b32.xlu1 %v2552_v41, %s2660_s12  ;;  %v751_v40 = vmul.f32 %v2274_v62, %v2776_v0  ;;  %v2547_v42 = vpack.i.bf16 %v1032_v53, %v1030_v16  ;;  %v1191_v43 = vsel %vm992_vm1, %v2848_v50, 0  ;;  %v3106_v30 = vsel %vm992_vm1, %v2618_v60, 0 }
  0x4b   : > { %2538 = vrot.lane.b32.xlu0 %v2537_v22, %s2661_s14  ;;  %v662_v39 = vmax.f32 %v660_v28, 0.0  ;;  %v663_v38 = vmax.f32 %v661_v59, 0.0  ;;  %v752_v48 = vmul.f32 %v2275_v61, %v2776_v0  ;;  %2359 = vmatpush3.bf16.msra.mxu0 %v1191_v43  ;;  %v757_v26 = vstv %s641_s18 }
  0x4c   : > { %v753_v41 = vadd.f32 %v2797_v9, %v751_v40  ;;  %2432 = vmatprep.subr.msk.bf16.mxu0 %vm992_vm1, %v2618_v60  ;;  %v1299_v50 = vsel %vm992_vm1, %v2619_v44, 0  ;;  %v2597_v2 = vpack.i.bf16 %v2259_v18, %v2258_v17  ;;  %v2607_v3 = vpack.i.bf16 %v2267_v35, %v2266_v29 }
  0x4d   : > { %v665_v51 = vmul.f32 %v664_v58, %v662_v39  ;;  %v666_v62 = vmul.f32 %v664_v58, %v663_v38  ;;  %v754_v52 = vadd.f32 %v2797_v9, %v752_v48  ;;  %2377 = vmatpush3.bf16.msra.mxu1 %v1299_v50 }
  0x4e   : > { %v755_v16 = vmax.f32 %v753_v41, 0.0 }
  0x4f   : > { %2548 = vrot.lane.b32.xlu0 %v2547_v42, %s2660_s12  ;;  %v781_v0 = vrot.slane %v665_v51, 7  ;;  %v782_v53 = vrot.slane %v666_v62, 7  ;;  %v756_v22 = vmax.f32 %v754_v52, 0.0 }
  0x50   : > { %v758_v28 = vmul.f32 %v757_v26, %v755_v16 }
  0x51   : > { %v3114_v59 = vsel %vm780_vm0, %v781_v0, %v782_v53  ;;  %v3117_v58 = vsel %vm780_vm0, 0.0, %v781_v0  ;;  %v851_v60 = vsel %vm780_vm0, %v782_v53, 0.0  ;;  %v759_v43 = vmul.f32 %v757_v26, %v756_v22 }
  0x52   : > { %v882_v61 = vrot.slane %v3117_v58, 1  ;;  %v883_v9 = vrot.slane %v3114_v59, 1  ;;  %v885_v40 = vrot.slane %v851_v60, 1  ;;  %v993_v39 = vrot.slane %v3117_v58, 2 }
  0x53   : > { %v994_v42 = vrot.slane %v3114_v59, 2  ;;  %v996_v38 = vrot.slane %v851_v60, 2  ;;  %v808_v44 = vrot.slane %v758_v28, 7  ;;  %v809_v52 = vrot.slane %v759_v43, 7 }
  0x54   : > { %v884_v48 = vsel %vm881_vm2, %v882_v61, %v883_v9  ;;  %v886_v41 = vsel %vm881_vm2, %v883_v9, %v885_v40 }
  0x55   : > { %v2557_v51 = vpack.i.bf16 %v886_v41, %v884_v48  ;;  %v995_v62 = vsel %vm992_vm1, %v993_v39, %v994_v42  ;;  %v997_v50 = vsel %vm992_vm1, %v994_v42, %v996_v38  ;;  %v3129_v0 = vsel %vm780_vm0, 0.0, %v808_v44  ;;  %v1611_v41 = vld [vmem:[%s3558_s10] sm:$0x3] }
  0x56   : > { %v2562_v16 = vpack.i.bf16 %v997_v50, %v995_v62  ;;  %v3133_v53 = vsel %vm780_vm0, %v808_v44, %v809_v52  ;;  %v860_v26 = vsel %vm780_vm0, %v809_v52, 0.0  ;;  %v927_v22 = vrot.slane %v3129_v0, 1  ;;  %2433 = vmatprep.subr.msk.bf16.mxu1 %vm1636_vm3, %v1611_v41 }
  0x57   : > { %2558 = vrot.lane.b32.xlu0 %v2557_v51, %s2661_s14  ;;  %v1038_v28 = vrot.slane %v3129_v0, 2  ;;  %v928_v60 = vrot.slane %v3133_v53, 1  ;;  %v930_v61 = vrot.slane %v860_v26, 1  ;;  %v1039_v9 = vrot.slane %v3133_v53, 2 }
  0x58   : > { %2563 = vrot.lane.b32.xlu1 %v2562_v16, %s2660_s12  ;;  %v1041_v40 = vrot.slane %v860_v26, 2  ;;  %v3150_v51 = vsel %vm1636_vm3, %v1611_v41, 0 }
  0x59   : > { %v929_v39 = vsel %vm881_vm2, %v927_v22, %v928_v60  ;;  %v931_v42 = vsel %vm881_vm2, %v928_v60, %v930_v61  ;;  %v1040_v38 = vsel %vm992_vm1, %v1038_v28, %v1039_v9 }
  0x5a   : > { %v1042_v43 = vsel %vm992_vm1, %v1039_v9, %v1041_v40  ;;  %v2567_v44 = vpack.i.bf16 %v931_v42, %v929_v39 }
  0x5b   : > { %v2572_v48 = vpack.i.bf16 %v1042_v43, %v1040_v38 }
  0x5c   : > { %2568 = vrot.lane.b32.xlu0 %v2567_v44, %s2661_s14  ;;  %s2184_s14 = sshll.u32 %s2763_s28, 3 }
  0x5d   : > { %2573 = vrot.lane.b32.xlu1 %v2572_v48, %s2660_s12  ;;  %s3254_s15 = scalar_lea.vmem %s3555_s7, %s2184_s14  ;;  %s3447_s30 = scalar_lea.vmem %s3559_s11, %s2184_s14 }
  0x98   : > { %v2489_v62 = vpop.permute.xlu1 %2488 }
  0x99   : > { %v2491_v50 = vunpack.i.h.bf16 %v2489_v62  ;;  %v2490_v52 = vunpack.i.l.bf16 %v2489_v62  ;;  %v2479_v16 = vpop.permute.xlu0 %2478 }
  0x9a   : > { %v2481_v26 = vunpack.i.h.bf16 %v2479_v16  ;;  %v2480_v22 = vunpack.i.l.bf16 %v2479_v16 }
  0x9c   : > { %v2494_v28 = vpop.permute.xlu1 %2493  ;;  %v1106_v60 = vsel %vm1103_vm4, %v2839_v47, %v2480_v22  ;;  %v1107_v61 = vsel %vm1103_vm4, %v2836_v46, %v2481_v26 }
  0x9d   : > { %v2496_v9 = vunpack.i.h.bf16 %v2494_v28  ;;  %v2495_v40 = vunpack.i.l.bf16 %v2494_v28  ;;  %v2484_v39 = vpop.permute.xlu0 %2483  ;;  %v1127_v42 = vsel %vm1124_vm5, %v1106_v60, %v2490_v52  ;;  %v1128_v38 = vsel %vm1124_vm5, %v1107_v61, %v2491_v50 }
  0x9e   : > { %v2486_v43 = vunpack.i.h.bf16 %v2484_v39  ;;  %v2485_v44 = vunpack.i.l.bf16 %v2484_v39  ;;  %v3158_v48 = vpack.c.bf16 %v1128_v38, %v1127_v42 }
  0xa0   : > { %v1109_v41 = vsel %vm1103_vm4, %v2843_v49, %v2486_v43  ;;  %v1108_v47 = vsel %vm1103_vm4, %v2855_v57, %v2485_v44  ;;  %2360 = vmatprep.mubr.msk.bf16.mxu0 %vm1165_vm6, %v3158_v48  ;;  %v2504_v46 = vpop.permute.xlu1 %2503 }
  0xa1   : > { %v2499_v62 = vpop.permute.xlu0 %2498  ;;  %v1129_v16 = vsel %vm1124_vm5, %v1108_v47, %v2495_v40  ;;  %v1130_v52 = vsel %vm1124_vm5, %v1109_v41, %v2496_v9  ;;  %v2506_v50 = vunpack.i.h.bf16 %v2504_v46  ;;  %v2505_v26 = vunpack.i.l.bf16 %v2504_v46 }
  0xa2   : > { %v3168_v22 = vpack.c.bf16 %v1130_v52, %v1129_v16  ;;  %v2501_v28 = vunpack.i.h.bf16 %v2499_v62  ;;  %v2500_v60 = vunpack.i.l.bf16 %v2499_v62 }
  0xa3   : > { %v1113_v40 = vsel %vm1103_vm4, %v2875_v23, %v2506_v50  ;;  %v1112_v9 = vsel %vm1103_vm4, %v2878_v24, %v2505_v26 }
  0xa4   : > { %2361 = vmatmul.mubr.msk.bf16.vlgmr.msra.gmra.mxu0 %vm1165_vm6, %v3168_v22  ;;  %v2514_v49 = vpop.permute.xlu1 %2513  ;;  %v1111_v43 = vsel %vm1103_vm4, %v2888_v32, %v2501_v28  ;;  %v1110_v44 = vsel %vm1103_vm4, %v2891_v34, %v2500_v60 }
  0xa5   : > { %2395 = vmatpush3.bf16.msra.mxu0 %v3106_v30  ;;  %v2516_v57 = vunpack.i.h.bf16 %v2514_v49  ;;  %v2515_v61 = vunpack.i.l.bf16 %v2514_v49  ;;  %v2509_v39 = vpop.permute.xlu0 %2508 }
  0xa6   : > { %v2511_v42 = vunpack.i.h.bf16 %v2509_v39  ;;  %v2510_v38 = vunpack.i.l.bf16 %v2509_v39 }
  0xa7   : > { %v1133_v41 = vsel %vm1124_vm5, %v1112_v9, %v2515_v61  ;;  %v1134_v30 = vsel %vm1124_vm5, %v1113_v40, %v2516_v57 }
  0xa8   : > { %v3183_v47 = vpack.c.bf16 %v1134_v30, %v1133_v41  ;;  %v1131_v46 = vsel %vm1124_vm5, %v1110_v44, %v2510_v38  ;;  %v1132_v23 = vsel %vm1124_vm5, %v1111_v43, %v2511_v42 }
  0xa9   : > { %v3187_v62 = vpack.c.bf16 %v1132_v23, %v1131_v46 }
  0xab   : > { %2364 = vmatprep.mubr.msk.bf16.mxu0 %vm1165_vm6, %v3187_v62 }
  0xac   : > { %2365 = vmatmul.mubr.msk.bf16.gmra.mxu0 %vm1165_vm6, %v3183_v47 }
  0xb0   : > { %v2524_v24 = vpop.permute.xlu1 %2523 }
  0xb1   : > { %v2526_v32 = vunpack.i.h.bf16 %v2524_v24  ;;  %v2525_v34 = vunpack.i.l.bf16 %v2524_v24 }
  0xb2   : > { %v2519_v16 = vpop.permute.xlu0 %2518 }
  0xb3   : > { %v2521_v52 = vunpack.i.h.bf16 %v2519_v16  ;;  %v2520_v50 = vunpack.i.l.bf16 %v2519_v16  ;;  %v1117_v49 = vsel %vm1103_vm4, %v2997_v20, %v2526_v32  ;;  %v1116_v57 = vsel %vm1103_vm4, %v3000_v21, %v2525_v34 }
  0xb4   : > { %v2534_v26 = vpop.permute.xlu1 %2533 }
  0xb5   : > { %v2536_v28 = vunpack.i.h.bf16 %v2534_v26  ;;  %v2535_v60 = vunpack.i.l.bf16 %v2534_v26  ;;  %v1115_v38 = vsel %vm1103_vm4, %v3008_v31, %v2521_v52  ;;  %v1114_v43 = vsel %vm1103_vm4, %v3012_v33, %v2520_v50 }
  0xb6   : > { %v2529_v61 = vpop.permute.xlu0 %2528 }
  0xb7   : > { %v1137_v39 = vsel %vm1124_vm5, %v1116_v57, %v2535_v60  ;;  %v1138_v40 = vsel %vm1124_vm5, %v1117_v49, %v2536_v28  ;;  %v2531_v9 = vunpack.i.h.bf16 %v2529_v61  ;;  %v2530_v42 = vunpack.i.l.bf16 %v2529_v61 }
  0xb8   : > { %v2544_v44 = vpop.permute.xlu1 %2543  ;;  %v3203_v41 = vpack.c.bf16 %v1138_v40, %v1137_v39 }
  0xb9   : > { %v1135_v20 = vsel %vm1124_vm5, %v1114_v43, %v2530_v42  ;;  %v1136_v21 = vsel %vm1124_vm5, %v1115_v38, %v2531_v9  ;;  %v2546_v46 = vunpack.i.h.bf16 %v2544_v44  ;;  %v2545_v23 = vunpack.i.l.bf16 %v2544_v44 }
  0xba   : > { %v3207_v30 = vpack.c.bf16 %v1136_v21, %v1135_v20 }
  0xbb   : > { %v1121_v52 = vsel %vm1103_vm4, %v3034_v27, %v2546_v46  ;;  %v1120_v50 = vsel %vm1103_vm4, %v3042_v37, %v2545_v23 }
  0xbc   : > { %2368 = vmatprep.mubr.msk.bf16.mxu0 %vm1165_vm6, %v3207_v30  ;;  %v2554_v24 = vpop.permute.xlu1 %2553 }
  0xbd   : > { %v2539_v32 = vpop.permute.xlu0 %2538  ;;  %2369 = vmatmul.mubr.msk.bf16.gmra.mxu0 %vm1165_vm6, %v3203_v41  ;;  %v2556_v31 = vunpack.i.h.bf16 %v2554_v24  ;;  %v2555_v33 = vunpack.i.l.bf16 %v2554_v24 }
  0xbe   : > { %v2541_v34 = vunpack.i.h.bf16 %v2539_v32  ;;  %v2540_v16 = vunpack.i.l.bf16 %v2539_v32  ;;  %v3261_v32 = vld [vmem:[%s3556_s8] ss:$0 sm:$0xff] }
  0xbf   : > { %v1141_v26 = vsel %vm1124_vm5, %v1120_v50, %v2555_v33  ;;  %v1142_v28 = vsel %vm1124_vm5, %v1121_v52, %v2556_v31  ;;  %v1527_v50 = vld [vmem:[%s3254_s15 + $0x10] sm:$0xff] }
  0xc0   : > { %v1119_v61 = vsel %vm1103_vm4, %v3071_v36, %v2541_v34  ;;  %v1118_v39 = vsel %vm1103_vm4, %v3064_v56, %v2540_v16  ;;  %v1153_v40 = vpack.c.bf16 %v1142_v28, %v1141_v26 }
  0xc1   : > { %v2549_v60 = vpop.permute.xlu0 %2548 }
  0xc2   : > { %v2551_v49 = vunpack.i.h.bf16 %v2549_v60  ;;  %v2550_v57 = vunpack.i.l.bf16 %v2549_v60 }
  0xc4   : > { %v1139_v9 = vsel %vm1124_vm5, %v1118_v39, %v2550_v57  ;;  %v1140_v27 = vsel %vm1124_vm5, %v1119_v61, %v2551_v49  ;;  %v1528_v49 = vld [vmem:[%s3254_s15 + $0x18] sm:$0xff]  ;;  %v1529_v57 = vld [vmem:[%s3254_s15 + $0x20] sm:$0xff]  ;;  %v1530_v61 = vld [vmem:[%s3254_s15 + $0x28] sm:$0xff]  ;;  %v1550_v39 = vmul.f32 %v3261_v32, %v1527_v50 }
  0xc5   : > { %v3225_v42 = vpack.c.bf16 %v1140_v27, %v1139_v9  ;;  %v1551_v9 = vmul.f32 %v3261_v32, %v1528_v49  ;;  %v1538_v49 = vld [vmem:[%s3254_s15 + $0x68] sm:$0xff] }
  0xc7   : > { %2372 = vmatprep.mubr.msk.bf16.mxu0 %vm1165_vm6, %v3225_v42 }
  0xc8   : > { %2373 = vmatmul.mubr.msk.bf16.gmra.mxu0 %vm1165_vm6, %v1153_v40 }
  0xc9   : > { %v2559_v37 = vpop.permute.xlu0 %2558  ;;  %2396 = vmatprep.mubr.msk.bf16.mxu0 %vm1165_vm6, %v3168_v22 }
  0xca   : > { %v2561_v36 = vunpack.i.h.bf16 %v2559_v37  ;;  %v2560_v38 = vunpack.i.l.bf16 %v2559_v37  ;;  %v2564_v56 = vpop.permute.xlu1 %2563 }
  0xcb   : > { %v2566_v43 = vunpack.i.h.bf16 %v2564_v56  ;;  %v2565_v44 = vunpack.i.l.bf16 %v2564_v56 }
  0xcc   : > { %v1104_v20 = vsel %vm1103_vm4, %v3117_v58, %v2560_v38  ;;  %v1105_v21 = vsel %vm1103_vm4, %v3114_v59, %v2561_v36  ;;  %v1525_v58 = vld [vmem:[%s3254_s15] sm:$0xff]  ;;  %v1552_v36 = vmul.f32 %v3261_v32, %v1529_v57 }
  0xcd   : > { %v1125_v46 = vsel %vm1124_vm5, %v1104_v20, %v2565_v44  ;;  %v1126_v23 = vsel %vm1124_vm5, %v1105_v21, %v2566_v43  ;;  %v1548_v33 = vmul.f32 %v3261_v32, %v1525_v58  ;;  %v1531_v21 = vld [vmem:[%s3254_s15 + $0x30] sm:$0xff] }
  0xce   : > { %v1145_v24 = vpack.c.bf16 %v1126_v23, %v1125_v46  ;;  %v2569_v59 = vpop.permute.xlu0 %2568  ;;  %v1532_v46 = vld [vmem:[%s3254_s15 + $0x38] sm:$0xff]  ;;  %v1533_v23 = vld [vmem:[%s3254_s15 + $0x40] sm:$0xff]  ;;  %v1554_v58 = vmul.f32 %v3261_v32, %v1531_v21 }
  0xcf   : > { %v2574_v31 = vpop.permute.xlu1 %2573 }
  0xd0   : > { %2378 = vmatprep.mubr.msk.bf16.mxu1 %vm1165_vm6, %v1145_v24  ;;  %2397 = vmatmul.mubr.msk.bf16.vlgmr.msra.gmra.mxu0 %vm1165_vm6, %v3187_v62  ;;  %v2576_v16 = vunpack.i.h.bf16 %v2574_v31  ;;  %v2575_v52 = vunpack.i.l.bf16 %v2574_v31  ;;  %v1556_v31 = vmul.f32 %v3261_v32, %v1533_v23 }
  0xd1   : > { %2379 = vmatmul.mubr.msk.bf16.vlgmr.msra.gmra.mxu1 %vm1165_vm6, %v3158_v48  ;;  %2400 = vmatprep.mubr.msk.bf16.mxu0 %vm1165_vm6, %v3183_v47  ;;  %v1526_v48 = vld [vmem:[%s3254_s15 + $0x8] sm:$0xff] }
  0xd2   : > { %2382 = vmatprep.mubr.msk.bf16.mxu1 %vm1165_vm6, %v3168_v22  ;;  %2413 = vmatpush3.bf16.msra.mxu1 %v3150_v51  ;;  %v2571_v51 = vunpack.i.h.bf16 %v2569_v59  ;;  %v2570_v22 = vunpack.i.l.bf16 %v2569_v59  ;;  %v1549_v34 = vmul.f32 %v3261_v32, %v1526_v48  ;;  %v1555_v48 = vmul.f32 %v3261_v32, %v1532_v46 }
  0xd4   : > { %v1123_v26 = vsel %vm1103_vm4, %v3133_v53, %v2571_v51 }
  0xd5   : > { %v1144_v53 = vsel %vm1124_vm5, %v1123_v26, %v2576_v16 }
  0xd8   : > { %2401 = vmatmul.mubr.msk.bf16.gmra.mxu0 %vm1165_vm6, %v3207_v30 }
  0xd9   : > { %2383 = vmatmul.mubr.msk.bf16.gmra.mxu1 %vm1165_vm6, %v3187_v62  ;;  %2404 = vmatprep.mubr.msk.bf16.mxu0 %vm1165_vm6, %v3203_v41  ;;  %v3276_v62 = vld [vmem:[%s3557_s9] ss:$0 sm:$0xff] }
  0xda   : > { %2386 = vmatprep.mubr.msk.bf16.mxu1 %vm1165_vm6, %v3183_v47  ;;  %v1122_v47 = vsel %vm1103_vm4, %v3129_v0, %v2570_v22  ;;  %v1571_v28 = vadd.f32 %v3276_v62, %v1548_v33  ;;  %v1572_v60 = vadd.f32 %v3276_v62, %v1549_v34  ;;  %v1574_v56 = vadd.f32 %v3276_v62, %v1551_v9 }
  0xdb   : > { %v1143_v0 = vsel %vm1124_vm5, %v1122_v47, %v2575_v52  ;;  %v1575_v44 = vadd.f32 %v3276_v62, %v1552_v36  ;;  %v1578_v16 = vadd.f32 %v3276_v62, %v1555_v48  ;;  %v1579_v50 = vadd.f32 %v3276_v62, %v1556_v31  ;;  %v1535_v47 = vld [vmem:[%s3254_s15 + $0x50] sm:$0xff] }
  0xdc   : > { %v1587_v27 = vmax.f32 %v1571_v28, 0.0  ;;  %v1588_v37 = vmax.f32 %v1572_v60, 0.0  ;;  %v1154_v38 = vpack.c.bf16 %v1144_v53, %v1143_v0  ;;  %v1590_v59 = vmax.f32 %v1574_v56, 0.0  ;;  %v1536_v28 = vld [vmem:[%s3254_s15 + $0x58] sm:$0xff]  ;;  %v1537_v60 = vld [vmem:[%s3254_s15 + $0x60] sm:$0xff] }
  0xdd   : > { %v1591_v51 = vmax.f32 %v1575_v44, 0.0  ;;  %v1559_v0 = vmul.f32 %v3261_v32, %v1536_v28  ;;  %v1595_v53 = vmax.f32 %v1579_v50, 0.0  ;;  %v1539_v44 = vld [vmem:[%s3254_s15 + $0x70] sm:$0xff]  ;;  %v2577_v31 = vpack.i.bf16 %v2243_v5, %v2242_v4 }
  0xde   : > { %v1603_v43 = vpack.c.bf16 %v1588_v37, %v1587_v27  ;;  %v1560_v27 = vmul.f32 %v3261_v32, %v1537_v60  ;;  %v1561_v37 = vmul.f32 %v3261_v32, %v1538_v49  ;;  %v1562_v23 = vmul.f32 %v3261_v32, %v1539_v44 }
  0xdf   : > { %2578 = vrot.lane.b32.xlu0 %v2577_v31, %s2660_s12  ;;  %v2592_v4 = vpack.i.bf16 %v2255_v11, %v2254_v10  ;;  %v2602_v5 = vpack.i.bf16 %v2263_v14, %v2262_v63 }
  0xe0   : > { %2405 = vmatmul.mubr.msk.bf16.gmra.mxu0 %vm1165_vm6, %v3225_v42  ;;  %v1583_v56 = vadd.f32 %v3276_v62, %v1560_v27  ;;  %v1585_v48 = vadd.f32 %v3276_v62, %v1562_v23 }
  0xe1   : > { %2387 = vmatmul.mubr.msk.bf16.gmra.mxu1 %vm1165_vm6, %v3207_v30  ;;  %2408 = vmatprep.mubr.msk.bf16.mxu0 %vm1165_vm6, %v1153_v40  ;;  %v1553_v30 = vmul.f32 %v3261_v32, %v1530_v61  ;;  %v1573_v40 = vadd.f32 %v3276_v62, %v1550_v39  ;;  %v1594_v61 = vmax.f32 %v1578_v16, 0.0  ;;  %v1558_v39 = vmul.f32 %v3261_v32, %v1535_v47 }
  0xe2   : > { %2390 = vmatprep.mubr.msk.bf16.mxu1 %vm1165_vm6, %v3203_v41  ;;  %v1534_v41 = vld [vmem:[%s3254_s15 + $0x48] sm:$0xff] }
  0xe3   : > { %v1576_v20 = vadd.f32 %v3276_v62, %v1553_v30  ;;  %v1589_v24 = vmax.f32 %v1573_v40, 0.0  ;;  %v1557_v33 = vmul.f32 %v3261_v32, %v1534_v41  ;;  %v1581_v30 = vadd.f32 %v3276_v62, %v1558_v39 }
  0xe5   : > { %v1592_v22 = vmax.f32 %v1576_v20, 0.0  ;;  %v1604_v34 = vpack.c.bf16 %v1590_v59, %v1589_v24  ;;  %v1580_v26 = vadd.f32 %v3276_v62, %v1557_v33  ;;  %v1540_v20 = vld [vmem:[%s3254_s15 + $0x78] sm:$0xff]  ;;  %v1597_v21 = vmax.f32 %v1581_v30, 0.0 }
  0xe6   : > { %v1563_v41 = vmul.f32 %v3261_v32, %v1540_v20  ;;  %v1599_v24 = vmax.f32 %v1583_v56, 0.0  ;;  %v1601_v33 = vmax.f32 %v1585_v48, 0.0  ;;  %v2582_v32 = vpack.i.bf16 %v2247_v7, %v2246_v6 }
  0xe7   : > { %v1605_v52 = vpack.c.bf16 %v1592_v22, %v1591_v51  ;;  %v1596_v9 = vmax.f32 %v1580_v26, 0.0  ;;  %v2612_v6 = vpack.i.bf16 %v2271_v25, %v2270_v19 }
  0xe8   : > { %2409 = vmatmul.mubr.msk.bf16.gmra.mxu0 %vm1165_vm6, %v1154_v38  ;;  %v1582_v38 = vadd.f32 %v3276_v62, %v1559_v0  ;;  %v1586_v51 = vadd.f32 %v3276_v62, %v1563_v41  ;;  %2583 = vrot.lane.b32.xlu1 %v2582_v32, %s2660_s12 }
  0xe9   : > { %2391 = vmatmul.mubr.msk.bf16.gmra.mxu1 %vm1165_vm6, %v3225_v42  ;;  %v1577_v42 = vadd.f32 %v3276_v62, %v1554_v58  ;;  %v1607_v40 = vpack.c.bf16 %v1596_v9, %v1595_v53 }
  0xea   : > { %2414 = vmatprep.mubr.msk.bf16.mxu1 %vm1103_vm4, %v1603_v43  ;;  %v1584_v43 = vadd.f32 %v3276_v62, %v1561_v37  ;;  %v1598_v46 = vmax.f32 %v1582_v38, 0.0  ;;  %v2587_v62 = vpack.i.bf16 %v2251_v13, %v2250_v12 }
  0xeb   : > { %v1593_v57 = vmax.f32 %v1577_v42, 0.0 }
  0xec   : > { %v1600_v59 = vmax.f32 %v1584_v43, 0.0  ;;  %v1608_v58 = vpack.c.bf16 %v1598_v46, %v1597_v21  ;;  %2588 = vrot.lane.b32.xlu0 %v2587_v62, %s2660_s12  ;;  %2593 = vrot.lane.b32.xlu1 %v2592_v4, %s2660_s12 }
  0xed   : > { %v1606_v36 = vpack.c.bf16 %v1594_v61, %v1593_v57 }
  0xee   : > { %v1609_v22 = vpack.c.bf16 %v1600_v59, %v1599_v24 }
  0xf0   : > { %2598 = vrot.lane.b32.xlu0 %v2597_v2, %s2660_s12  ;;  %2603 = vrot.lane.b32.xlu1 %v2602_v5, %s2660_s12 }
  0xf1   : > { %2415 = vmatmul.mubr.msk.bf16.vlgmr.msra.gmra.mxu1 %vm1103_vm4, %v1604_v34  ;;  %v1602_v34 = vmax.f32 %v1586_v51, 0.0 }
  0xf2   : > { %2418 = vmatprep.mubr.msk.bf16.mxu1 %vm1103_vm4, %v1605_v52 }
  0xf3   : > { %v1610_v1 = vpack.c.bf16 %v1602_v34, %v1601_v33 }
  0xf4   : > { %2608 = vrot.lane.b32.xlu0 %v2607_v3, %s2660_s12  ;;  %2613 = vrot.lane.b32.xlu1 %v2612_v6, %s2660_s12  ;;  %s2662_s12 = smov 12  }
  0xf9   : > { %2419 = vmatmul.mubr.msk.bf16.gmra.mxu1 %vm1103_vm4, %v1606_v36 }
  0xfa   : > { %2422 = vmatprep.mubr.msk.bf16.mxu1 %vm1103_vm4, %v1607_v40 }
 0x101   : > { %2423 = vmatmul.mubr.msk.bf16.gmra.mxu1 %vm1103_vm4, %v1608_v58 }
 0x102   : > { %2426 = vmatprep.mubr.msk.bf16.mxu1 %vm1103_vm4, %v1609_v22 }
 0x109   : > { %2427 = vmatmul.mubr.msk.bf16.gmra.mxu1 %vm1103_vm4, %v1610_v1 }
 0x164   : > { %v2362_v7 = vpop.f32.mrf.mxu0 }
 0x166   : > { %v1227_v8 = vpop.f32.mrf.mxu0 }
 0x168   : > { %v2363_v10 = vpop.f32.mrf.mxu0 }
 0x16a   : > { %v1230_v11 = vpop.f32.mrf.mxu0 }
 0x16c   : > { %v2366_v12 = vpop.f32.mrf.mxu0 }
 0x16e   : > { %v1243_v13 = vpop.f32.mrf.mxu0 }
 0x170   : > { %v2367_v45 = vpop.f32.mrf.mxu0 }
 0x172   : > { %v1246_v54 = vpop.f32.mrf.mxu0 }
 0x17d   : > { %v2370_v63 = vpop.f32.mrf.mxu0 }
 0x17f   : > { %v1259_v14 = vpop.f32.mrf.mxu0 }
 0x181   : > { %v2371_v15 = vpop.f32.mrf.mxu0 }
 0x183   : > { %v1262_v17 = vpop.f32.mrf.mxu0 }
 0x188   : > { %v3386_v18 = vpop.f32.mrf.mxu0 }
 0x18a   : > { %v3388_v29 = vpop.f32.mrf.mxu0 }
 0x18c   : > { %v3390_v55 = vpop.f32.mrf.mxu0 }
 0x18e   : > { %v3392_v19 = vpop.f32.mrf.mxu0 }
 0x190   : > { %v2398_v25 = vpop.f32.mrf.mxu0 }
 0x191   : > { %v2380_v35 = vpop.f32.mrf.mxu1 }
 0x192   : > { %v1344_v42 = vadd.f32 %v2380_v35, %v2362_v7  ;;  %v1446_v16 = vpop.f32.mrf.mxu0 }
 0x193   : > { %v1335_v52 = vpop.f32.mrf.mxu1 }
 0x194   : > { %v1336_v50 = vadd.f32 %v1335_v52, %v1227_v8  ;;  %v1511_v26 = vadd.f32 %v2398_v25, %v1344_v42  ;;  %v2399_v47 = vpop.f32.mrf.mxu0  ;;  %v2579_v52 = vpop.permute.xlu0 %2578 }
 0x195   : > { %v2381_v28 = vpop.f32.mrf.mxu1 }
 0x196   : > { %v1347_v60 = vadd.f32 %v2381_v28, %v2363_v10  ;;  %1853 = vrot.lane.b32.xlu0 %v1511_v26, %s2662_s12  ;;  %v1449_v49 = vpop.f32.mrf.mxu0  ;;  %v1509_v61 = vadd.f32 %v1446_v16, %v1336_v50  ;;  %v2584_v26 = vpop.permute.xlu1 %2583 }
 0x197   : > { %v1338_v57 = vpop.f32.mrf.mxu1 }
 0x198   : > { %v1339_v39 = vadd.f32 %v1338_v57, %v1230_v11  ;;  %v1512_v0 = vadd.f32 %v2399_v47, %v1347_v60  ;;  %v2402_v53 = vpop.f32.mrf.mxu0 }
 0x199   : > { %v2384_v9 = vpop.f32.mrf.mxu1 }
 0x19a   : > { %v1360_v27 = vadd.f32 %v2384_v9, %v2366_v12  ;;  %1849 = vrot.lane.b32.xlu0 %v1509_v61, %s2662_s12  ;;  %1855 = vrot.lane.b32.xlu1 %v1512_v0, %s2662_s12  ;;  %v1462_v37 = vpop.f32.mrf.mxu0  ;;  %v1510_v30 = vadd.f32 %v1449_v49, %v1339_v39  ;;  %v3416_v28 = vpop.permute.xlu1 %2593  ;;  %v2315_v61 = vld [vmem:[%s3425_s25 + $0x8] sm:$0xff]  }
 0x19b   : > { %v1351_v36 = vpop.f32.mrf.mxu1  ;;  %v2282_v9 = vunpack.c.l.bf16 %v2315_v61 }
 0x19c   : > { %v1352_v38 = vadd.f32 %v1351_v36, %v1243_v13  ;;  %v1515_v40 = vadd.f32 %v2402_v53, %v1360_v27  ;;  %v2403_v56 = vpop.f32.mrf.mxu0  ;;  %v2585_v53 = vunpack.i.l.bf16 %v2584_v26  ;;  %v2277_v27 = vld [vmem:[%s3425_s25] sm:$0xff]   ;;  %v2580_v36 = vunpack.i.l.bf16 %v2579_v52 }
 0x19d   : > { %v2385_v43 = vpop.f32.mrf.mxu1 }
 0x19e   : > { %v1363_v44 = vadd.f32 %v2385_v43, %v2367_v45  ;;  %1851 = vrot.lane.b32.xlu1 %v1510_v30, %s2662_s12  ;;  %1861 = vrot.lane.b32.xlu0 %v1515_v40, %s2662_s12  ;;  %v1465_v20 = vpop.f32.mrf.mxu0  ;;  %v1513_v46 = vadd.f32 %v1462_v37, %v1352_v38  ;;  %v3429_v57 = vpop.permute.xlu1 %2603  ;;  %v2586_v38 = vunpack.i.h.bf16 %v2584_v26  ;;  %v1899_v40 = vsel %vm1124_vm5, %v2282_v9, %v2585_v53  ;;  %v2318_v26 = vld [vmem:[%s3425_s25 + $0x20] sm:$0xff]  }
 0x19f   : > { %v1354_v21 = vpop.f32.mrf.mxu1  ;;  %v2278_v43 = vunpack.c.l.bf16 %v2277_v27 }
 0x1a0   : > { %v1355_v23 = vadd.f32 %v1354_v21, %v1246_v54  ;;  %v1516_v41 = vadd.f32 %v2403_v56, %v1363_v44  ;;  %v2406_v24 = vpop.f32.mrf.mxu0  ;;  %v2283_v44 = vunpack.c.h.bf16 %v2315_v61  ;;  %v2317_v21 = vld [vmem:[%s3425_s25 + $0x18] sm:$0xff]  }
 0x1a1   : > { %v2388_v59 = vpop.f32.mrf.mxu1 }
 0x1a2   : > { %v1376_v58 = vadd.f32 %v2388_v59, %v2370_v63  ;;  %1857 = vrot.lane.b32.xlu0 %v1513_v46, %s2662_s12  ;;  %1863 = vrot.lane.b32.xlu1 %v1516_v41, %s2662_s12  ;;  %v1478_v48 = vpop.f32.mrf.mxu0  ;;  %v1514_v22 = vadd.f32 %v1465_v20, %v1355_v23  ;;  %v3437_v37 = vpop.permute.xlu1 %2613  ;;  %v2581_v23 = vunpack.i.h.bf16 %v2579_v52  ;;  %v2595_v41 = vunpack.i.l.bf16 %v3416_v28 }
 0x1a3   : > { %v1367_v51 = vpop.f32.mrf.mxu1  ;;  %v1897_v59 = vsel %vm1124_vm5, %v2278_v43, %v2580_v36  ;;  %v2294_v36 = vunpack.c.l.bf16 %v2318_v26 }
 0x1a4   : > { %v1368_v31 = vadd.f32 %v1367_v51, %v1259_v14  ;;  %v1519_v33 = vadd.f32 %v2406_v24, %v1376_v58  ;;  %v2407_v34 = vpop.f32.mrf.mxu0 }
 0x1a5   : > { %v2389_v32 = vpop.f32.mrf.mxu1 }
 0x1a6   : > { %v1379_v62 = vadd.f32 %v2389_v32, %v2371_v15  ;;  %1859 = vrot.lane.b32.xlu1 %v1514_v22, %s2662_s12  ;;  %1869 = vrot.lane.b32.xlu0 %v1519_v33, %s2662_s12  ;;  %v1481_v1 = vpop.f32.mrf.mxu0  ;;  %v1517_v2 = vadd.f32 %v1478_v48, %v1368_v31  ;;  %v1900_v48 = vsel %vm1124_vm5, %v2283_v44, %v2586_v38  ;;  %v2279_v22 = vunpack.c.h.bf16 %v2277_v27  ;;  %v2316_v32 = vld [vmem:[%s3425_s25 + $0x10] sm:$0xff]  }
 0x1a7   : > { %v1370_v4 = vpop.f32.mrf.mxu1  ;;  %v2290_v31 = vunpack.c.l.bf16 %v2317_v21  ;;  %v2320_v44 = vld [vmem:[%s3425_s25 + $0x30] sm:$0xff]  }
 0x1a8   : > { %v1371_v5 = vadd.f32 %v1370_v4, %v1262_v17  ;;  %v1520_v3 = vadd.f32 %v2407_v34, %v1379_v62  ;;  %v2410_v6 = vpop.f32.mrf.mxu0 }
 0x1a9   : > { %v2392_v7 = vpop.f32.mrf.mxu1 }
 0x1aa   : > { %1865 = vrot.lane.b32.xlu0 %v1517_v2, %s2662_s12  ;;  %1871 = vrot.lane.b32.xlu1 %v1520_v3, %s2662_s12  ;;  %v1494_v8 = vpop.f32.mrf.mxu0  ;;  %v1518_v11 = vadd.f32 %v1481_v1, %v1371_v5  ;;  %v1392_v54 = vadd.f32 %v2392_v7, %v3386_v18  ;;  %v2596_v2 = vunpack.i.h.bf16 %v3416_v28  ;;  %v1898_v3 = vsel %vm1124_vm5, %v2279_v22, %v2581_v23 }
 0x1ab   : > { %v1383_v10 = vpop.f32.mrf.mxu1  ;;  %v1903_v7 = vsel %vm1124_vm5, %v2290_v31, %v2595_v41  ;;  %v2321_v31 = vld [vmem:[%s3425_s25 + $0x38] sm:$0xff]  }
 0x1ac   : > { %v1384_v12 = vadd.f32 %v1383_v10, %v3388_v29  ;;  %v2411_v13 = vpop.f32.mrf.mxu0  ;;  %v1523_v25 = vadd.f32 %v2410_v6, %v1392_v54  ;;  %v2286_v10 = vunpack.c.l.bf16 %v2316_v32 }
 0x1ad   : > { %v2393_v45 = vpop.f32.mrf.mxu1 }
 0x1ae   : > { %v1521_v63 = vadd.f32 %v1494_v8, %v1384_v12  ;;  %1867 = vrot.lane.b32.xlu1 %v1518_v11, %s2662_s12  ;;  %v1497_v15 = vpop.f32.mrf.mxu0  ;;  %v1395_v35 = vadd.f32 %v2393_v45, %v3390_v55  ;;  %v2291_v11 = vunpack.c.h.bf16 %v2317_v21  ;;  %v2319_v45 = vld [vmem:[%s3425_s25 + $0x28] sm:$0xff]  }
 0x1af   : > { %v1386_v14 = vpop.f32.mrf.mxu1 }
 0x1b0   : > { %v1387_v17 = vadd.f32 %v1386_v14, %v3392_v19  ;;  %1873 = vrot.lane.b32.xlu0 %v1521_v63, %s2662_s12  ;;  %v1524_v29 = vadd.f32 %v2411_v13, %v1395_v35  ;;  %v3414_v19 = vpop.permute.xlu0 %2588 }
 0x1b1   : > { %v2416_v18 = vpop.f32.mrf.mxu1  ;;  %v2590_v4 = vunpack.i.l.bf16 %v3414_v19  ;;  %v2591_v14 = vunpack.i.h.bf16 %v3414_v19 }
 0x1b2   : > { %v1522_v42 = vadd.f32 %v1497_v15, %v1387_v17  ;;  %v2287_v15 = vunpack.c.h.bf16 %v2316_v32 }
 0x1b3   : > { %v1674_v16 = vpop.f32.mrf.mxu1  ;;  %v1901_v35 = vsel %vm1124_vm5, %v2286_v10, %v2590_v4 }
 0x1b4   : > { %1877 = vrot.lane.b32.xlu0 %v1523_v25, %s2662_s12  ;;  %1875 = vrot.lane.b32.xlu1 %v1522_v42, %s2662_s12  ;;  %v3418_v60 = vpop.permute.xlu0 %2598  ;;  %v2605_v25 = vunpack.i.l.bf16 %v3429_v57  ;;  %v1902_v53 = vsel %vm1124_vm5, %v2287_v15, %v2591_v14 }
 0x1b5   : > { %v2417_v50 = vpop.f32.mrf.mxu1  ;;  %v2600_v28 = vunpack.i.l.bf16 %v3418_v60 }
 0x1b7   : > { %v1677_v47 = vpop.f32.mrf.mxu1  ;;  %v1905_v21 = vsel %vm1124_vm5, %v2294_v36, %v2600_v28 }
 0x1b8   : > { %1879 = vrot.lane.b32.xlu1 %v1524_v29, %s2662_s12  ;;  %v3432_v39 = vpop.permute.xlu0 %2608  ;;  %v1904_v29 = vsel %vm1124_vm5, %v2291_v11, %v2596_v2 }
 0x1b9   : > { %v2420_v55 = vpop.f32.mrf.mxu1  ;;  %v2611_v32 = vunpack.i.h.bf16 %v3432_v39 }
 0x1bb   : > { %v3427_v49 = vpop.f32.mrf.mxu1 }
 0x1bd   : > { %v3434_v0 = vpop.f32.mrf.mxu1 }
 0x1bf   : > { %v3439_v30 = vpop.f32.mrf.mxu1 }
 0x1c1   : > { %v2424_v24 = vpop.f32.mrf.mxu1 }
 0x1c3   : > { %v1706_v5 = vpop.f32.mrf.mxu1 }
 0x1c5   : > { %v2425_v17 = vpop.f32.mrf.mxu1 }
 0x1c7   : > { %v1709_v61 = vpop.f32.mrf.mxu1 }
 0x1c9   : > { %v2428_v43 = vpop.f32.mrf.mxu1 }
 0x1cb   : > { %v1722_v22 = vpop.f32.mrf.mxu1 }
 0x208   : > { %v1854_v56 = vpop.permute.xlu0 %1853 }
 0x209   : > { %v1915_v20 = vsel %vm1165_vm6, %v1899_v40, %v1854_v56 }
 0x20a   : > { %v1931_v46 = vadd.f32 %v2416_v18, %v1915_v20  ;;  %v2601_v20 = vunpack.i.h.bf16 %v3418_v60 }
 0x20c   : > { %1948 = vst.msk [vmem:[%s3447_s30 + $0x10] sm:$0xff] %vm1945_vm7, %v1931_v46  ;;  %v1850_v58 = vpop.permute.xlu0 %1849  ;;  %v1856_v51 = vpop.permute.xlu1 %1855 }
 0x20d   : > { %v1913_v33 = vsel %vm1165_vm6, %v1897_v59, %v1850_v58  ;;  %v1916_v34 = vsel %vm1165_vm6, %v1900_v48, %v1856_v51  ;;  %v2295_v59 = vunpack.c.h.bf16 %v2318_v26  ;;  %v2610_v58 = vunpack.i.l.bf16 %v3432_v39 }
 0x20e   : > { %v1929_v62 = vadd.f32 %v1913_v33, %v1674_v16  ;;  %v1932_v1 = vadd.f32 %v2417_v50, %v1916_v34  ;;  %v2298_v16 = vunpack.c.l.bf16 %v2319_v45  ;;  %v2302_v51 = vunpack.c.l.bf16 %v2320_v44 }
 0x20f   : > { %v1906_v33 = vsel %vm1124_vm5, %v2295_v59, %v2601_v20  ;;  %v2616_v39 = vunpack.i.h.bf16 %v3437_v37 }
 0x210   : > { %1946 = vst.msk [vmem:[%s3447_s30] sm:$0xff] %vm1945_vm7, %v1929_v62  ;;  %1949 = vst.msk [vmem:[%s3447_s30 + $0x18] sm:$0xff] %vm1945_vm7, %v1932_v1  ;;  %v1852_v6 = vpop.permute.xlu1 %1851  ;;  %v1862_v8 = vpop.permute.xlu0 %1861  ;;  %v1907_v27 = vsel %vm1124_vm5, %v2298_v16, %v2605_v25  ;;  %v2615_v62 = vunpack.i.l.bf16 %v3437_v37  ;;  %v1909_v2 = vsel %vm1124_vm5, %v2302_v51, %v2610_v58 }
 0x211   : > { %v1914_v12 = vsel %vm1165_vm6, %v1898_v3, %v1852_v6  ;;  %v1919_v13 = vsel %vm1165_vm6, %v1903_v7, %v1862_v8  ;;  %v2306_v3 = vunpack.c.l.bf16 %v2321_v31  ;;  %v2303_v6 = vunpack.c.h.bf16 %v2320_v44  ;;  %v2429_v8 = vpop.f32.mrf.mxu1 }
 0x212   : > { %v1930_v54 = vadd.f32 %v1914_v12, %v1677_v47  ;;  %v1935_v63 = vadd.f32 %v2420_v55, %v1919_v13  ;;  %v2606_v55 = vunpack.i.h.bf16 %v3429_v57 }
 0x213   : > { %v1911_v11 = vsel %vm1124_vm5, %v2306_v3, %v2615_v62  ;;  %v1910_v13 = vsel %vm1124_vm5, %v2303_v6, %v2611_v32 }
 0x214   : > { %1947 = vst.msk [vmem:[%s3447_s30 + $0x8] sm:$0xff] %vm1945_vm7, %v1930_v54  ;;  %1952 = vst.msk [vmem:[%s3447_s30 + $0x30] sm:$0xff] %vm1945_vm7, %v1935_v63  ;;  %v1858_v42 = vpop.permute.xlu0 %1857  ;;  %v1864_v18 = vpop.permute.xlu1 %1863  ;;  %v2307_v54 = vunpack.c.h.bf16 %v2321_v31 }
 0x215   : > { %v1917_v52 = vsel %vm1165_vm6, %v1901_v35, %v1858_v42  ;;  %v1920_v50 = vsel %vm1165_vm6, %v1904_v29, %v1864_v18  ;;  %v1725_v63 = vpop.f32.mrf.mxu1 }
 0x216   : > { %v1933_v19 = vadd.f32 %v1917_v52, %v3427_v49  ;;  %v1936_v47 = vadd.f32 %v3434_v0, %v1920_v50  ;;  %v2299_v0 = vunpack.c.h.bf16 %v2319_v45  ;;  %v1912_v37 = vsel %vm1124_vm5, %v2307_v54, %v2616_v39 }
 0x218   : > { %1950 = vst.msk [vmem:[%s3447_s30 + $0x20] sm:$0xff] %vm1945_vm7, %v1933_v19  ;;  %1953 = vst.msk [vmem:[%s3447_s30 + $0x38] sm:$0xff] %vm1945_vm7, %v1936_v47  ;;  %v1860_v9 = vpop.permute.xlu1 %1859  ;;  %v1870_v49 = vpop.permute.xlu0 %1869  ;;  %v1908_v23 = vsel %vm1124_vm5, %v2299_v0, %v2606_v55 }
 0x219   : > { %v1918_v38 = vsel %vm1165_vm6, %v1902_v53, %v1860_v9  ;;  %v1923_v40 = vsel %vm1165_vm6, %v1907_v27, %v1870_v49 }
 0x21a   : > { %v1934_v57 = vadd.f32 %v1918_v38, %v3439_v30  ;;  %v1939_v56 = vadd.f32 %v2424_v24, %v1923_v40 }
 0x21c   : > { %1951 = vst.msk [vmem:[%s3447_s30 + $0x28] sm:$0xff] %vm1945_vm7, %v1934_v57  ;;  %1956 = vst.msk [vmem:[%s3447_s30 + $0x50] sm:$0xff] %vm1945_vm7, %v1939_v56  ;;  %v1866_v46 = vpop.permute.xlu0 %1865  ;;  %v1872_v41 = vpop.permute.xlu1 %1871 }
 0x21d   : > { %v1921_v30 = vsel %vm1165_vm6, %v1905_v21, %v1866_v46  ;;  %v1924_v24 = vsel %vm1165_vm6, %v1908_v23, %v1872_v41 }
 0x21e   : > { %v1937_v60 = vadd.f32 %v1921_v30, %v1706_v5  ;;  %v1940_v48 = vadd.f32 %v2425_v17, %v1924_v24 }
 0x220   : > { %1954 = vst.msk [vmem:[%s3447_s30 + $0x40] sm:$0xff] %vm1945_vm7, %v1937_v60  ;;  %1957 = vst.msk [vmem:[%s3447_s30 + $0x58] sm:$0xff] %vm1945_vm7, %v1940_v48  ;;  %v1868_v34 = vpop.permute.xlu1 %1867 }
 0x221   : > { %v1922_v1 = vsel %vm1165_vm6, %v1906_v33, %v1868_v34 }
 0x222   : > { %v1938_v4 = vadd.f32 %v1922_v1, %v1709_v61  ;;  %v1874_v5 = vpop.permute.xlu0 %1873 }
 0x223   : > { %v1925_v7 = vsel %vm1165_vm6, %v1909_v2, %v1874_v5 }
 0x224   : > { %1955 = vst.msk [vmem:[%s3447_s30 + $0x48] sm:$0xff] %vm1945_vm7, %v1938_v4  ;;  %v1941_v10 = vadd.f32 %v1925_v7, %v1722_v22 }
 0x226   : > { %1958 = vst.msk [vmem:[%s3447_s30 + $0x60] sm:$0xff] %vm1945_vm7, %v1941_v10  ;;  %v1878_v12 = vpop.permute.xlu0 %1877  ;;  %v1876_v45 = vpop.permute.xlu1 %1875 }
 0x227   : > { %v1927_v14 = vsel %vm1165_vm6, %v1911_v11, %v1878_v12  ;;  %v1926_v15 = vsel %vm1165_vm6, %v1910_v13, %v1876_v45 }
 0x228   : > { %v1943_v17 = vadd.f32 %v2428_v43, %v1927_v14  ;;  %v1942_v25 = vadd.f32 %v1926_v15, %v1725_v63 }
 0x22a   : > { %1960 = vst.msk [vmem:[%s3447_s30 + $0x70] sm:$0xff] %vm1945_vm7, %v1943_v17  ;;  %1959 = vst.msk [vmem:[%s3447_s30 + $0x68] sm:$0xff] %vm1945_vm7, %v1942_v25  ;;  %v1880_v35 = vpop.permute.xlu1 %1879 }
 0x22b   : > { %v1928_v42 = vsel %vm1165_vm6, %v1912_v37, %v1880_v35 }
 0x22c   : > { %v1944_v29 = vadd.f32 %v2429_v8, %v1928_v42 }
 0x22e   : > { %1961 = vst.msk [vmem:[%s3447_s30 + $0x78] sm:$0xff] %vm1945_vm7, %v1944_v29 }
 0x22f PF: > { %s21_s21 = sadd.s32 1, %s2658_s21   ;;  %s3561_s17 = smov %s2650_s19 }
 0x230   : > { %p18_p12 = scmp.ge.s32.totalorder %s21_s21, 6   ;;  %s3562_s18 = smov %s2654_s20 }
 0x231   : > { %s3563_s19 = smov %s3566_s22  ;;  %s3564_s20 = smov %s3570_s23 }
 0x232   :  { %20 = sbr.rel (!%p18_p12) target bundleno = 3 (0x3), region = 108 }

// kernel: conv_block_forward.4
= control target key start
LH: loop header
LB: loop body
LE: loop exit
PB: predicated region body
PF: predicated region fallthrough
CT: control target
= control target key end

     0   :  { %s2226_s24 = smov 0   ;;  %s2228_s25 = smov 0   ;;  %s2825_s0 = inlined_call_operand.vmem [shape: bf16[2,16,16,8], index: 0, kind: input, shape index: {}, may-alias: {0,1,2}]   ;;  %s2826_s1 = inlined_call_operand.vmem [shape: bf16[2,16,16,8], index: 1, kind: input, shape index: {}, may-alias: {0,1,2}]   ;;  %s2827_s2 = inlined_call_operand.vmem [shape: bf16[2,16,16,8], index: 2, kind: input, shape index: {}, may-alias: {0,1,2}]   ;;  %s2828_s3 = inlined_call_operand.vmem [shape: f32[1,8], index: 3, kind: input, shape index: {}]   ;;  %s2829_s4 = inlined_call_operand.vmem [shape: f32[1,8], index: 4, kind: input, shape index: {}]   ;;  %s2830_s5 = inlined_call_operand.vmem [shape: bf16[3,24,4], index: 5, kind: input, shape index: {}]   ;;  %s2831_s6 = inlined_call_operand.vmem [shape: bf16[2,16,16,4], index: 6, kind: output, shape index: {0}]   ;;  %s2832_s7 = inlined_call_operand.vmem [shape: f32[2,2,2,4], index: 7, kind: output, shape index: {1}]  }
   0x1   :  { %s2230_s26 = smov 0   ;;  %s2232_s27 = smov 0  }
   0x2   :  { %s2234_s28 = smov 0  }
   0x3 LB: > { %s27_s29 = sadd.s32 1, %s2174_s26  ;;  %s30_s30 = sadd.s32 1, %s2178_s27  ;;  %s2182_s28 = sphi %s2234_s28, %s18_s28   ;;  %s2178_s27 = sphi %s2232_s27, %s2837_s27   ;;  %s2174_s26 = sphi %s2230_s26, %s2836_s26   ;;  %s2170_s25 = sphi %s2228_s25, %s2835_s25   ;;  %s2166_s24 = sphi %s2226_s24, %s2834_s24  }
   0x4   : > { %p28_p0 = scmp.ge.s32.totalorder %s27_s29, 2  ;;  %p1749_p1 = scmp.ge.s32.totalorder %s2182_s28, 1 }
   0x5   : > { %p328_p2 = scmp.lt.s32.totalorder %s2182_s28, 5 }
   0x6   : > { %s2839_s29 = smov (%p28_p0, %s27_s29), 0  ;;  %s2841_s30 = smov (!%p28_p0, %s30_s30), %s2178_s27 }
   0x7   : > { %p329_p3 = pnand %p1749_p1, %p328_p2  ;;  %p32_p4 = scmp.ge.s32.totalorder %s2841_s30, 2 }
   0x8   : > { %s2259_s8 = sshll.u32 (!%p329_p3), %s2166_s24, 3  ;;  %p405_p5 = scmp.lt.s32.totalorder (!%p329_p3), %s2170_s25, 1 }
   0x9   : > { %s2843_s30 = smov (%p32_p4, %s2841_s30), 0  ;;  %332 = sbr.rel (%p329_p3) target bundleno = 460 (0x1cc), region = 44 }
   0xa   : > { %p407_p6 = scmp.lt.s32.totalorder (!%p329_p3), %s2259_s8, 15  ;;  %p462_p7 = scmp.lt.s32.totalorder (!%p329_p3), %s2166_s24, 1 }
   0xb   : > { %s433_s14 = sadd.s32 (!%p329_p3), 8, %s2259_s8  ;;  %p471_p11 = scmp.gt.s32.totalorder (!%p329_p3), %s2166_s24, 0 }
   0xc   : > { %p2391_p10 = scmp.lt.s32.totalorder (!%p329_p3), %s433_s14, 15 }
   0xe   : > { %s2845_s25 = smov (!%p405_p5, %s2170_s25), 1  ;;  %v2282_v0 = vld [vmem:[%s2828_s3] ss:$0 sm:$0xff]  ;;  %vm615_vm0 = vcmask 1040384   ;;  %vm827_vm1 = vcmask 1045504   ;;  %vm716_vm2 = vcmask 1046528  }
   0xf   : > { %s408_s9 = scalar_select %p407_p6, %s2259_s8, 15  ;;  %v2291_v9 = vld [vmem:[%s2829_s4] ss:$0 sm:$0xff]  ;;  %vm1031_vm3 = vcmask 1043456   ;;  %vm938_vm4 = vcmask 64512   ;;  %vm959_vm5 = vcmask 130048  }
  0x10   : > { %s2266_s10 = sshll.u32 %s2845_s25, 5  ;;  %s1775_s21 = sshll.u32 %s2845_s25, 1  ;;  %vm1006_vm6 = vcmask 195584   ;;  %vm1534_vm7 = vcmask 27648   ;;  %vm1376_vm8 = vcmask 31744   ;;  %vm1468_vm9 = vcmask 25600  }
  0x11   : > { %s1751_s11 = sshll.u32 %s408_s9, 1  ;;  %s2184_s25 = smov 16  }
  0x12   : > { %s2269_s12 = sadd.s32 %s2266_s10, %s1751_s11  ;;  %s2185_s9 = smov 8  }
  0x13   : > { %s1753_s13 = sshll.u32 %s2269_s12, 2  ;;  %s2363_s11 = sadd.s32 4294967295, %s2259_s8 }
  0x14   : > { %s2277_s16 = scalar_lea.vmem %s2825_s0, %s1753_s13  ;;  %p417_p8 = scmp.gt.s32.totalorder %s2363_s11, 0 }
  0x15   : > { %v1894_v1 = vld [vmem:[%s2277_s16 + $0x20] sm:$0xff]   ;;  %v1895_v2 = vld [vmem:[%s2277_s16 + $0x28] sm:$0xff]   ;;  %s463_s22 = scalar_select %p462_p7, %s2166_s24, 1 }
  0x16   : > { %v1856_v3 = vld [vmem:[%s2277_s16] sm:$0xff]   ;;  %v1873_v4 = vunpack.c.l.bf16 %v1894_v1  ;;  %v1874_v5 = vunpack.c.h.bf16 %v1894_v1  ;;  %v1877_v6 = vunpack.c.l.bf16 %v1895_v2  ;;  %v1878_v7 = vunpack.c.h.bf16 %v1895_v2  ;;  %v1891_v8 = vld [vmem:[%s2277_s16 + $0x8] sm:$0xff]   ;;  %p1756_p9 = scmp.lt.s32.totalorder %s2363_s11, 15  ;;  %s2847_s14 = smov (!%p2391_p10, %s433_s14), 15 }
  0x17   : > { %v1857_v10 = vunpack.c.l.bf16 %v1856_v3  ;;  %v1858_v11 = vunpack.c.h.bf16 %v1856_v3  ;;  %v1861_v12 = vunpack.c.l.bf16 %v1891_v8  ;;  %v1862_v13 = vunpack.c.h.bf16 %v1891_v8  ;;  %s2324_s23 = sadd.s32 %s1775_s21, %s463_s22  ;;  %s2851_s14 = smov (!%p2391_p10, %s2847_s14), 15 }
  0x18   : > { %v542_v14 = vmul.f32 %v1873_v4, %v2282_v0  ;;  %v543_v15 = vmul.f32 %v1874_v5, %v2282_v0  ;;  %v544_v16 = vmul.f32 %v1877_v6, %v2282_v0  ;;  %v545_v17 = vmul.f32 %v1878_v7, %v2282_v0  ;;  %s418_s17 = scalar_select %p417_p8, %s2363_s11, 0 }
  0x19   : > { %v534_v18 = vmul.f32 %v1857_v10, %v2282_v0  ;;  %v535_v19 = vmul.f32 %v1858_v11, %v2282_v0  ;;  %v536_v20 = vmul.f32 %v1861_v12, %v2282_v0  ;;  %v537_v21 = vmul.f32 %v1862_v13, %v2282_v0  ;;  %s2454_s18 = sshll.u32 %s2851_s14, 1  ;;  %s1776_s12 = sshll.u32 %s2324_s23, 1 }
  0x1a   : > { %v558_v22 = vadd.f32 %v2291_v9, %v542_v14  ;;  %v559_v23 = vadd.f32 %v2291_v9, %v543_v15  ;;  %v560_v24 = vadd.f32 %v2291_v9, %v544_v16  ;;  %v561_v25 = vadd.f32 %v2291_v9, %v545_v17  ;;  %s2849_s17 = smov (!%p1756_p9, %s418_s17), 15  ;;  %s442_s20 = sadd.s32 %s2454_s18, %s2266_s10 }
  0x1b   : > { %v550_v26 = vadd.f32 %v2291_v9, %v534_v18  ;;  %v551_v27 = vadd.f32 %v2291_v9, %v535_v19  ;;  %v552_v28 = vadd.f32 %v2291_v9, %v536_v20  ;;  %v553_v29 = vadd.f32 %v2291_v9, %v537_v21  ;;  %s1761_s8 = sshll.u32 %s2849_s17, 1  ;;  %s2484_s11 = sshll.u32 %s442_s20, 2 }
  0x1c   : > { %v574_v30 = vmax.f32 %v558_v22, 0.0  ;;  %v575_v31 = vmax.f32 %v559_v23, 0.0  ;;  %v576_v32 = vmax.f32 %v560_v24, 0.0  ;;  %v577_v33 = vmax.f32 %v561_v25, 0.0  ;;  %s2495_s14 = scalar_select %p471_p11, 1, 0 }
  0x1d   : > { %v566_v34 = vmax.f32 %v550_v26, 0.0  ;;  %v567_v35 = vmax.f32 %v551_v27, 0.0  ;;  %v568_v36 = vmax.f32 %v552_v28, 0.0  ;;  %v569_v37 = vmax.f32 %v553_v29, 0.0  ;;  %s467_s24 = scalar_lea.vmem %s2832_s7, %s1776_s12 }
  0x1e   : > { %v631_v38 = vrot.slane %v574_v30, 7  ;;  %v632_v39 = vrot.slane %v575_v31, 7  ;;  %v634_v40 = vrot.slane %v576_v32, 7  ;;  %v635_v41 = vrot.slane %v577_v33, 7  ;;  %v1896_v32 = vld [vmem:[%s2277_s16 + $0x30] sm:$0xff]   ;;  %s473_s18 = scvt.s32.f32 %s2495_s14 }
  0x1f   : > { %v619_v42 = vrot.slane %v566_v34, 7  ;;  %v620_v43 = vrot.slane %v567_v35, 7  ;;  %v622_v44 = vrot.slane %v568_v36, 7  ;;  %v623_v45 = vrot.slane %v569_v37, 7  ;;  %v1897_v37 = vld [vmem:[%s2277_s16 + $0x38] sm:$0xff]  }
  0x20   : > { %v2315_v46 = vsel %vm615_vm0, %v631_v38, %v632_v39  ;;  %v2318_v47 = vsel %vm615_vm0, 0.0, %v631_v38  ;;  %v691_v48 = vsel %vm615_vm0, %v632_v39, 0.0  ;;  %v2322_v49 = vsel %vm615_vm0, %v634_v40, %v635_v41  ;;  %v1892_v38 = vld [vmem:[%s2277_s16 + $0x10] sm:$0xff]  }
  0x21   : > { %v853_v50 = vrot.slane %v2318_v47, 2  ;;  %v854_v51 = vrot.slane %v2315_v46, 2  ;;  %v856_v52 = vrot.slane %v691_v48, 2  ;;  %v742_v53 = vrot.slane %v2318_v47, 1 }
  0x22   : > { %v743_v54 = vrot.slane %v2315_v46, 1  ;;  %v745_v55 = vrot.slane %v691_v48, 1  ;;  %v2331_v56 = vsel %vm615_vm0, 0.0, %v634_v40  ;;  %v692_v57 = vsel %vm615_vm0, %v635_v41, 0.0 }
  0x23   : > { %v855_v58 = vsel %vm827_vm1, %v853_v50, %v854_v51  ;;  %v857_v59 = vsel %vm827_vm1, %v854_v51, %v856_v52  ;;  %v747_v60 = vrot.slane %v2331_v56, 1  ;;  %v748_v61 = vrot.slane %v2322_v49, 1  ;;  %v1893_v50 = vld [vmem:[%s2277_s16 + $0x18] sm:$0xff]   ;;  %s2452_s16 = sadd.s32 %s1761_s8, %s2266_s10  ;;  %s444_s8 = scalar_lea.vmem %s2827_s2, %s2484_s11 }
  0x24   : > { %v2048_v62 = vpack.i.bf16 %v857_v59, %v855_v58  ;;  %v744_v63 = vsel %vm716_vm2, %v742_v53, %v743_v54  ;;  %v746_v1 = vsel %vm716_vm2, %v743_v54, %v745_v55  ;;  %v750_v2 = vrot.slane %v692_v57, 1  ;;  %s1763_s19 = sshll.u32 %s2452_s16, 2 }
  0x25   : > { %v2038_v3 = vpack.i.bf16 %v746_v1, %v744_v63  ;;  %v749_v4 = vsel %vm716_vm2, %v747_v60, %v748_v61  ;;  %v2342_v5 = vsel %vm615_vm0, %v619_v42, %v620_v43  ;;  %v2345_v6 = vsel %vm615_vm0, 0.0, %v619_v42  ;;  %s427_s22 = scalar_lea.vmem %s2826_s1, %s1763_s19  ;;  %s2731_s19 = scalar_lea.vmem %s2831_s6, %s1753_s13 }
  0x26   : > { %2049 = vrot.lane.b32.xlu1 %v2048_v62, %s2184_s25  ;;  %v751_v7 = vsel %vm716_vm2, %v748_v61, %v750_v2  ;;  %v687_v8 = vsel %vm615_vm0, %v620_v43, 0.0  ;;  %v722_v10 = vrot.slane %v2345_v6, 1  ;;  %v723_v11 = vrot.slane %v2342_v5, 1  ;;  %s2518_s16 = scalar_select %p462_p7, 1, 0 }
  0x27   : > { %2039 = vrot.lane.b32.xlu0 %v2038_v3, %s2185_s9  ;;  %v2043_v12 = vpack.i.bf16 %v751_v7, %v749_v4  ;;  %v725_v13 = vrot.slane %v687_v8, 1  ;;  %v858_v14 = vrot.slane %v2331_v56, 2  ;;  %v859_v15 = vrot.slane %v2322_v49, 2 }
  0x28   : > { %v724_v16 = vsel %vm716_vm2, %v722_v10, %v723_v11  ;;  %v861_v17 = vrot.slane %v692_v57, 2  ;;  %v2357_v18 = vsel %vm615_vm0, %v622_v44, %v623_v45  ;;  %v2360_v19 = vsel %vm615_vm0, 0.0, %v622_v44  ;;  %s476_s15 = scvt.s32.f32 %s2518_s16 }
  0x29   : > { %v726_v20 = vsel %vm716_vm2, %v723_v11, %v725_v13  ;;  %v860_v21 = vsel %vm827_vm1, %v858_v14, %v859_v15  ;;  %v688_v22 = vsel %vm615_vm0, %v623_v45, 0.0  ;;  %v727_v23 = vrot.slane %v2360_v19, 1 }
  0x2a   : > { %v2053_v24 = vpack.i.bf16 %v726_v20, %v724_v16  ;;  %v862_v25 = vsel %vm827_vm1, %v859_v15, %v861_v17  ;;  %v728_v26 = vrot.slane %v2357_v18, 1  ;;  %v730_v27 = vrot.slane %v688_v22, 1 }
  0x2b   : > { %2044 = vrot.lane.b32.xlu0 %v2043_v12, %s2185_s9  ;;  %v2058_v28 = vpack.i.bf16 %v862_v25, %v860_v21  ;;  %v833_v29 = vrot.slane %v2345_v6, 2  ;;  %v834_v30 = vrot.slane %v2342_v5, 2  ;;  %v836_v31 = vrot.slane %v687_v8, 2 }
  0x2c   : > { %2054 = vrot.lane.b32.xlu1 %v2053_v24, %s2185_s9  ;;  %v729_v33 = vsel %vm716_vm2, %v727_v23, %v728_v26  ;;  %v731_v34 = vsel %vm716_vm2, %v728_v26, %v730_v27  ;;  %v838_v35 = vrot.slane %v2360_v19, 2  ;;  %v839_v36 = vrot.slane %v2357_v18, 2 }
  0x2d   : > { %v2063_v39 = vpack.i.bf16 %v731_v34, %v729_v33  ;;  %v835_v40 = vsel %vm827_vm1, %v833_v29, %v834_v30  ;;  %v837_v41 = vsel %vm827_vm1, %v834_v30, %v836_v31  ;;  %v841_v42 = vrot.slane %v688_v22, 2 }
  0x2e   : > { %v2068_v43 = vpack.i.bf16 %v837_v41, %v835_v40  ;;  %v840_v44 = vsel %vm827_vm1, %v838_v35, %v839_v36  ;;  %v1881_v45 = vunpack.c.l.bf16 %v1896_v32  ;;  %v1882_v48 = vunpack.c.h.bf16 %v1896_v32 }
  0x2f   : > { %2059 = vrot.lane.b32.xlu0 %v2058_v28, %s2184_s25  ;;  %v842_v51 = vsel %vm827_vm1, %v839_v36, %v841_v42  ;;  %v1885_v52 = vunpack.c.l.bf16 %v1897_v37  ;;  %v1886_v53 = vunpack.c.h.bf16 %v1897_v37  ;;  %v1865_v54 = vunpack.c.l.bf16 %v1892_v38 }
  0x30   : > { %2064 = vrot.lane.b32.xlu1 %v2063_v39, %s2185_s9  ;;  %v2073_v55 = vpack.i.bf16 %v842_v51, %v840_v44  ;;  %v546_v57 = vmul.f32 %v1881_v45, %v2282_v0  ;;  %v547_v58 = vmul.f32 %v1882_v48, %v2282_v0  ;;  %v1866_v59 = vunpack.c.h.bf16 %v1892_v38 }
  0x31   : > { %v548_v60 = vmul.f32 %v1885_v52, %v2282_v0  ;;  %v549_v61 = vmul.f32 %v1886_v53, %v2282_v0  ;;  %v538_v62 = vmul.f32 %v1865_v54, %v2282_v0  ;;  %v1869_v63 = vunpack.c.l.bf16 %v1893_v50 }
  0x32   : > { %v562_v1 = vadd.f32 %v2291_v9, %v546_v57  ;;  %v563_v2 = vadd.f32 %v2291_v9, %v547_v58  ;;  %v539_v3 = vmul.f32 %v1866_v59, %v2282_v0  ;;  %v1870_v4 = vunpack.c.h.bf16 %v1893_v50 }
  0x33   : > { %2069 = vrot.lane.b32.xlu0 %v2068_v43, %s2184_s25  ;;  %v564_v7 = vadd.f32 %v2291_v9, %v548_v60  ;;  %v565_v8 = vadd.f32 %v2291_v9, %v549_v61  ;;  %v554_v10 = vadd.f32 %v2291_v9, %v538_v62  ;;  %v540_v11 = vmul.f32 %v1869_v63, %v2282_v0 }
  0x34   : > { %2074 = vrot.lane.b32.xlu1 %v2073_v55, %s2184_s25  ;;  %v578_v12 = vmax.f32 %v562_v1, 0.0  ;;  %v579_v13 = vmax.f32 %v563_v2, 0.0  ;;  %v555_v14 = vadd.f32 %v2291_v9, %v539_v3  ;;  %v541_v15 = vmul.f32 %v1870_v4, %v2282_v0 }
  0x35   : > { %v580_v16 = vmax.f32 %v564_v7, 0.0  ;;  %v581_v17 = vmax.f32 %v565_v8, 0.0  ;;  %v570_v20 = vmax.f32 %v554_v10, 0.0  ;;  %v556_v21 = vadd.f32 %v2291_v9, %v540_v11 }
  0x36   : > { %v637_v22 = vrot.slane %v578_v12, 7  ;;  %v638_v23 = vrot.slane %v579_v13, 7  ;;  %v571_v24 = vmax.f32 %v555_v14, 0.0  ;;  %v557_v25 = vadd.f32 %v2291_v9, %v541_v15 }
  0x37   : > { %v640_v26 = vrot.slane %v580_v16, 7  ;;  %v641_v27 = vrot.slane %v581_v17, 7  ;;  %v625_v28 = vrot.slane %v570_v20, 7  ;;  %v572_v29 = vmax.f32 %v556_v21, 0.0 }
  0x38   : > { %v2434_v30 = vsel %vm615_vm0, %v637_v22, %v638_v23  ;;  %v2437_v31 = vsel %vm615_vm0, 0.0, %v637_v22  ;;  %v693_v32 = vsel %vm615_vm0, %v638_v23, 0.0  ;;  %v626_v33 = vrot.slane %v571_v24, 7  ;;  %v1852_v24 = vld [vmem:[%s427_s22] sm:$0xff]  }
  0x39   : > { %v752_v34 = vrot.slane %v2437_v31, 1  ;;  %v753_v35 = vrot.slane %v2434_v30, 1  ;;  %v755_v36 = vrot.slane %v693_v32, 1  ;;  %v2443_v37 = vsel %vm615_vm0, %v640_v26, %v641_v27 }
  0x3a   : > { %v2446_v38 = vsel %vm615_vm0, 0.0, %v640_v26  ;;  %v694_v39 = vsel %vm615_vm0, %v641_v27, 0.0  ;;  %v758_v40 = vrot.slane %v2443_v37, 1  ;;  %v863_v41 = vrot.slane %v2437_v31, 2 }
  0x3b   : > { %v754_v42 = vsel %vm716_vm2, %v752_v34, %v753_v35  ;;  %v756_v43 = vsel %vm716_vm2, %v753_v35, %v755_v36  ;;  %v757_v44 = vrot.slane %v2446_v38, 1  ;;  %v760_v45 = vrot.slane %v694_v39, 1 }
  0x3c   : > { %v2078_v48 = vpack.i.bf16 %v756_v43, %v754_v42  ;;  %v864_v50 = vrot.slane %v2434_v30, 2  ;;  %v866_v51 = vrot.slane %v693_v32, 2  ;;  %v2461_v52 = vsel %vm615_vm0, %v625_v28, %v626_v33 }
  0x3d   : > { %v759_v53 = vsel %vm716_vm2, %v757_v44, %v758_v40  ;;  %v761_v54 = vsel %vm716_vm2, %v758_v40, %v760_v45  ;;  %v2466_v55 = vsel %vm615_vm0, 0.0, %v625_v28  ;;  %v689_v57 = vsel %vm615_vm0, %v626_v33, 0.0  ;;  %v2138_v45 = vld [vmem:[%s2830_s5 + $0x14] ss:$0 sps:$4 sm:$0xff]  }
  0x3e   : > { %2079 = vrot.lane.b32.xlu0 %v2078_v48, %s2185_s9  ;;  %v2083_v58 = vpack.i.bf16 %v761_v54, %v759_v53  ;;  %v865_v59 = vsel %vm827_vm1, %v863_v41, %v864_v50  ;;  %v867_v60 = vsel %vm827_vm1, %v864_v50, %v866_v51  ;;  %v732_v61 = vrot.slane %v2466_v55, 1  ;;  %v1888_v41 = vld [vmem:[%s444_s8] sm:$0xff]   ;;  %v2140_v54 = vld [vmem:[%s2830_s5 + $0x8] ss:$0 sps:$4 sm:$0xff]   ;;  %1993 = vmatprep.subr.msk.bf16.mxu1 %vm1031_vm3, %v2138_v45 }
  0x3f   : > { %v2088_v62 = vpack.i.bf16 %v867_v60, %v865_v59  ;;  %v733_v63 = vrot.slane %v2461_v52, 1  ;;  %v735_v1 = vrot.slane %v689_v57, 1  ;;  %v868_v2 = vrot.slane %v2446_v38, 2  ;;  %v2139_v59 = vld [vmem:[%s2830_s5 + $0xc] sm:$0xff]   ;;  %v2141_v60 = vld [vmem:[%s2830_s5 + $0x20] ss:$0 sps:$4 sm:$0xff]   ;;  %1992 = vmatprep.subr.msk.bf16.mxu0 %vm1031_vm3, %v2138_v45 }
  0x40   : > { %2084 = vrot.lane.b32.xlu1 %v2083_v58, %s2185_s9  ;;  %v869_v3 = vrot.slane %v2443_v37, 2  ;;  %v871_v4 = vrot.slane %v694_v39, 2  ;;  %v573_v7 = vmax.f32 %v557_v25, 0.0  ;;  %v628_v8 = vrot.slane %v572_v29, 7 }
  0x41   : > { %v734_v10 = vsel %vm716_vm2, %v732_v61, %v733_v63  ;;  %v736_v11 = vsel %vm716_vm2, %v733_v63, %v735_v1  ;;  %v843_v12 = vrot.slane %v2466_v55, 2  ;;  %v844_v13 = vrot.slane %v2461_v52, 2 }
  0x42   : > { %2089 = vrot.lane.b32.xlu0 %v2088_v62, %s2184_s25  ;;  %v2093_v14 = vpack.i.bf16 %v736_v11, %v734_v10  ;;  %v870_v15 = vsel %vm827_vm1, %v868_v2, %v869_v3  ;;  %v872_v16 = vsel %vm827_vm1, %v869_v3, %v871_v4  ;;  %v629_v17 = vrot.slane %v573_v7, 7 }
  0x43   : > { %v2098_v20 = vpack.i.bf16 %v872_v16, %v870_v15  ;;  %v2498_v21 = vsel %vm615_vm0, 0.0, %v628_v8  ;;  %v845_v22 = vsel %vm827_vm1, %v843_v12, %v844_v13  ;;  %v846_v23 = vrot.slane %v689_v57, 2 }
  0x44   : > { %2094 = vrot.lane.b32.xlu1 %v2093_v14, %s2185_s9  ;;  %v2507_v25 = vsel %vm615_vm0, %v628_v8, %v629_v17  ;;  %v690_v26 = vsel %vm615_vm0, %v629_v17, 0.0  ;;  %v737_v27 = vrot.slane %v2498_v21, 1  ;;  %v848_v28 = vrot.slane %v2498_v21, 2 }
  0x45   : > { %v738_v29 = vrot.slane %v2507_v25, 1  ;;  %v740_v32 = vrot.slane %v690_v26, 1  ;;  %v847_v33 = vsel %vm827_vm1, %v844_v13, %v846_v23  ;;  %v849_v34 = vrot.slane %v2507_v25, 2 }
  0x46   : > { %2099 = vrot.lane.b32.xlu0 %v2098_v20, %s2184_s25  ;;  %v2108_v35 = vpack.i.bf16 %v847_v33, %v845_v22  ;;  %v851_v36 = vrot.slane %v690_v26, 2  ;;  %v1853_v39 = vunpack.c.l.bf16 %v1852_v24  ;;  %v1854_v40 = vunpack.c.h.bf16 %v1852_v24 }
  0x47   : > { %v739_v42 = vsel %vm716_vm2, %v737_v27, %v738_v29  ;;  %v741_v43 = vsel %vm716_vm2, %v738_v29, %v740_v32  ;;  %v850_v44 = vsel %vm827_vm1, %v848_v28, %v849_v34  ;;  %v1889_v57 = vunpack.c.l.bf16 %v1888_v41 }
  0x48   : > { %v2103_v48 = vpack.i.bf16 %v741_v43, %v739_v42  ;;  %v852_v50 = vsel %vm827_vm1, %v849_v34, %v851_v36  ;;  %v487_v51 = vmul.f32 %v1853_v39, %v2282_v0  ;;  %v488_v53 = vmul.f32 %v1854_v40, %v2282_v0 }
  0x49   : > { %v1890_v58 = vunpack.c.h.bf16 %v1888_v41  ;;  %v2113_v61 = vpack.i.bf16 %v852_v50, %v850_v44  ;;  %v499_v1 = vstv %s473_s18  ;;  %v586_v2 = vmul.f32 %v1889_v57, %v2282_v0 }
  0x4a   : > { %2104 = vrot.lane.b32.xlu1 %v2103_v48, %s2185_s9  ;;  %2109 = vrot.lane.b32.xlu0 %v2108_v35, %s2184_s25  ;;  %v495_v62 = vadd.f32 %v2291_v9, %v487_v51  ;;  %v496_v63 = vadd.f32 %v2291_v9, %v488_v53  ;;  %v1033_v4 = vsel %vm1031_vm3, %v2138_v45, 0  ;;  %v2550_v10 = vsel %vm1031_vm3, %v2140_v54, 0 }
  0x4b   : > { %v587_v3 = vmul.f32 %v1890_v58, %v2282_v0  ;;  %1990 = vmatpush3.bf16.msra.mxu1 %v1033_v4  ;;  %1929 = vmatpush3.bf16.msra.mxu0 %v1033_v4  ;;  %v588_v11 = vadd.f32 %v2291_v9, %v586_v2  ;;  %v2555_v0 = vsel %vm1031_vm3, %v2141_v60, 0  ;;  %v592_v15 = vstv %s476_s15 }
  0x4c   : > { %v497_v7 = vmax.f32 %v495_v62, 0.0  ;;  %v498_v8 = vmax.f32 %v496_v63, 0.0  ;;  %1989 = vmatprep.subr.bf16.mxu1 %v2139_v59  ;;  %1930 = vmatprep.subr.bf16.mxu0 %v2139_v59 }
  0x4d   : > { %v589_v12 = vadd.f32 %v2291_v9, %v587_v3  ;;  %v590_v16 = vmax.f32 %v588_v11, 0.0 }
  0x4e   : > { %2114 = vrot.lane.b32.xlu1 %v2113_v61, %s2184_s25  ;;  %v500_v13 = vmul.f32 %v499_v1, %v497_v7  ;;  %v501_v14 = vmul.f32 %v499_v1, %v498_v8 }
  0x4f   : > { %v591_v17 = vmax.f32 %v589_v12, 0.0  ;;  %1991 = vmatpush3.bf16.msra.mxu1 %v2139_v59  ;;  %1931 = vmatpush3.bf16.msra.mxu0 %v2139_v59  ;;  %v593_v23 = vmul.f32 %v592_v15, %v590_v16 }
  0x50   : > { %v616_v20 = vrot.slane %v500_v13, 7  ;;  %v617_v22 = vrot.slane %v501_v14, 7  ;;  %1994 = vmatprep.subr.msk.bf16.mxu1 %vm1031_vm3, %v2140_v54  ;;  %1995 = vmatprep.subr.msk.bf16.mxu0 %vm1031_vm3, %v2141_v60 }
  0x51   : > { %v594_v24 = vmul.f32 %v592_v15, %v591_v17  ;;  %v643_v36 = vrot.slane %v593_v23, 7 }
  0x52   : > { %v2561_v9 = vsel %vm615_vm0, %v616_v20, %v617_v22  ;;  %v2564_v26 = vsel %vm615_vm0, 0.0, %v616_v20  ;;  %v686_v27 = vsel %vm615_vm0, %v617_v22, 0.0 }
  0x53   : > { %v717_v28 = vrot.slane %v2564_v26, 1  ;;  %v718_v29 = vrot.slane %v2561_v9, 1  ;;  %v720_v32 = vrot.slane %v686_v27, 1  ;;  %v828_v33 = vrot.slane %v2564_v26, 2 }
  0x54   : > { %v829_v34 = vrot.slane %v2561_v9, 2  ;;  %v831_v35 = vrot.slane %v686_v27, 2  ;;  %v644_v39 = vrot.slane %v594_v24, 7  ;;  %v2579_v50 = vsel %vm615_vm0, 0.0, %v643_v36 }
  0x55   : > { %v719_v40 = vsel %vm716_vm2, %v717_v28, %v718_v29  ;;  %v721_v41 = vsel %vm716_vm2, %v718_v29, %v720_v32  ;;  %v762_v54 = vrot.slane %v2579_v50, 1  ;;  %v873_v58 = vrot.slane %v2579_v50, 2 }
  0x56   : > { %v2118_v42 = vpack.i.bf16 %v721_v41, %v719_v40  ;;  %v830_v43 = vsel %vm827_vm1, %v828_v33, %v829_v34  ;;  %v832_v44 = vsel %vm827_vm1, %v829_v34, %v831_v35  ;;  %v2576_v45 = vsel %vm615_vm0, %v643_v36, %v644_v39 }
  0x57   : > { %v2123_v48 = vpack.i.bf16 %v832_v44, %v830_v43  ;;  %v695_v51 = vsel %vm615_vm0, %v644_v39, 0.0  ;;  %v763_v53 = vrot.slane %v2576_v45, 1  ;;  %v874_v59 = vrot.slane %v2576_v45, 2  ;;  %v2142_v44 = vld [vmem:[%s2830_s5] sm:$0xff]  }
  0x58   : > { %2119 = vrot.lane.b32.xlu0 %v2118_v42, %s2185_s9  ;;  %v765_v57 = vrot.slane %v695_v51, 1  ;;  %v876_v60 = vrot.slane %v695_v51, 2 }
  0x59   : > { %2124 = vrot.lane.b32.xlu1 %v2123_v48, %s2184_s25  ;;  %v764_v61 = vsel %vm716_vm2, %v762_v54, %v763_v53  ;;  %v875_v63 = vsel %vm827_vm1, %v873_v58, %v874_v59 }
  0x5a   : > { %v766_v62 = vsel %vm716_vm2, %v763_v53, %v765_v57  ;;  %v877_v2 = vsel %vm827_vm1, %v874_v59, %v876_v60 }
  0x5b   : > { %v2128_v1 = vpack.i.bf16 %v766_v62, %v764_v61  ;;  %v2133_v3 = vpack.i.bf16 %v877_v2, %v875_v63 }
  0x5d   : > { %2129 = vrot.lane.b32.xlu0 %v2128_v1, %s2185_s9  ;;  %2134 = vrot.lane.b32.xlu1 %v2133_v3, %s2184_s25 }
  0x98   : > { %v2050_v4 = vpop.permute.xlu1 %2049 }
  0x99   : > { %v2052_v7 = vunpack.i.h.bf16 %v2050_v4  ;;  %v2051_v8 = vunpack.i.l.bf16 %v2050_v4  ;;  %v2040_v11 = vpop.permute.xlu0 %2039 }
  0x9a   : > { %v2042_v12 = vunpack.i.h.bf16 %v2040_v11  ;;  %v2041_v13 = vunpack.i.l.bf16 %v2040_v11 }
  0x9c   : > { %v950_v14 = vsel %vm938_vm4, %v2315_v46, %v2042_v12  ;;  %v949_v15 = vsel %vm938_vm4, %v2318_v47, %v2041_v13 }
  0x9d   : > { %v2045_v16 = vpop.permute.xlu0 %2044  ;;  %v970_v17 = vsel %vm959_vm5, %v949_v15, %v2051_v8  ;;  %v971_v20 = vsel %vm959_vm5, %v950_v14, %v2052_v7 }
  0x9e   : > { %v2055_v22 = vpop.permute.xlu1 %2054  ;;  %v2600_v23 = vpack.c.bf16 %v971_v20, %v970_v17  ;;  %v2047_v24 = vunpack.i.h.bf16 %v2045_v16  ;;  %v2046_v27 = vunpack.i.l.bf16 %v2045_v16 }
  0x9f   : > { %v2057_v34 = vunpack.i.h.bf16 %v2055_v22  ;;  %v2056_v35 = vunpack.i.l.bf16 %v2055_v22 }
  0xa0   : > { %1940 = vmatprep.mubr.msk.bf16.mxu1 %vm1006_vm6, %v2600_v23  ;;  %v952_v47 = vsel %vm938_vm4, %v2322_v49, %v2047_v24  ;;  %v951_v33 = vsel %vm938_vm4, %v2331_v56, %v2046_v27 }
  0xa1   : > { %v2060_v28 = vpop.permute.xlu0 %2059  ;;  %v941_v54 = vsel %vm938_vm4, %v2345_v6, %v2056_v35  ;;  %v942_v57 = vsel %vm938_vm4, %v2342_v5, %v2057_v34 }
  0xa2   : > { %v2062_v29 = vunpack.i.h.bf16 %v2060_v28  ;;  %v2061_v46 = vunpack.i.l.bf16 %v2060_v28  ;;  %v2065_v32 = vpop.permute.xlu1 %2064 }
  0xa3   : > { %v2067_v40 = vunpack.i.h.bf16 %v2065_v32  ;;  %v2066_v41 = vunpack.i.l.bf16 %v2065_v32 }
  0xa4   : > { %v972_v36 = vsel %vm959_vm5, %v951_v33, %v2061_v46  ;;  %v973_v39 = vsel %vm959_vm5, %v952_v47, %v2062_v29 }
  0xa5   : > { %v2610_v42 = vpack.c.bf16 %v973_v39, %v972_v36  ;;  %v2070_v43 = vpop.permute.xlu0 %2069  ;;  %v944_v58 = vsel %vm938_vm4, %v2357_v18, %v2067_v40  ;;  %v943_v59 = vsel %vm938_vm4, %v2360_v19, %v2066_v41  ;;  %v2143_v18 = vld [vmem:[%s2830_s5 + $0x18] sm:$0xff]  }
  0xa6   : > { %v2072_v48 = vunpack.i.h.bf16 %v2070_v43  ;;  %v2071_v49 = vunpack.i.l.bf16 %v2070_v43  ;;  %v2075_v51 = vpop.permute.xlu1 %2074 }
  0xa7   : > { %v2077_v53 = vunpack.i.h.bf16 %v2075_v51  ;;  %v2076_v56 = vunpack.i.l.bf16 %v2075_v51  ;;  %1941 = vmatmul.mubr.msk.bf16.vlgmr.msra.gmra.mxu1 %vm1006_vm6, %v2610_v42 }
  0xa8   : > { %v962_v60 = vsel %vm959_vm5, %v941_v54, %v2071_v49  ;;  %v963_v61 = vsel %vm959_vm5, %v942_v57, %v2072_v48  ;;  %1949 = vmatpush3.bf16.msra.mxu1 %v2550_v10 }
  0xa9   : > { %v964_v62 = vsel %vm959_vm5, %v943_v59, %v2076_v56  ;;  %v965_v63 = vsel %vm959_vm5, %v944_v58, %v2077_v53  ;;  %v2630_v6 = vpack.c.bf16 %v963_v61, %v962_v60  ;;  %1950 = vmatprep.subr.bf16.mxu1 %v2142_v44 }
  0xaa   : > { %v2632_v5 = vpack.c.bf16 %v965_v63, %v964_v62 }
  0xab   : > { %1932 = vmatprep.mubr.msk.bf16.mxu0 %vm1006_vm6, %v2630_v6 }
  0xac   : > { %1933 = vmatmul.mubr.msk.bf16.vlgmr.msra.gmra.mxu0 %vm1006_vm6, %v2632_v5  ;;  %1951 = vmatpush3.bf16.msra.mxu1 %v2142_v44 }
  0xad   : > { %1969 = vmatpush3.bf16.msra.mxu0 %v2555_v0 }
  0xae   : > { %1970 = vmatprep.subr.bf16.mxu0 %v2143_v18 }
  0xb0   : > { %v2080_v19 = vpop.permute.xlu0 %2079 }
  0xb1   : > { %1971 = vmatpush3.bf16.msra.mxu0 %v2143_v18  ;;  %v2082_v10 = vunpack.i.h.bf16 %v2080_v19  ;;  %v2081_v1 = vunpack.i.l.bf16 %v2080_v19 }
  0xb2   : > { %v2085_v2 = vpop.permute.xlu1 %2084 }
  0xb3   : > { %v954_v8 = vsel %vm938_vm4, %v2434_v30, %v2082_v10  ;;  %v953_v11 = vsel %vm938_vm4, %v2437_v31, %v2081_v1  ;;  %v2087_v12 = vunpack.i.h.bf16 %v2085_v2  ;;  %v2086_v13 = vunpack.i.l.bf16 %v2085_v2 }
  0xb4   : > { %v2090_v3 = vpop.permute.xlu0 %2089 }
  0xb5   : > { %v2092_v4 = vunpack.i.h.bf16 %v2090_v3  ;;  %v2091_v7 = vunpack.i.l.bf16 %v2090_v3  ;;  %v956_v24 = vsel %vm938_vm4, %v2443_v37, %v2087_v12  ;;  %v955_v30 = vsel %vm938_vm4, %v2446_v38, %v2086_v13 }
  0xb6   : > { %v2095_v14 = vpop.permute.xlu1 %2094 }
  0xb7   : > { %v974_v0 = vsel %vm959_vm5, %v953_v11, %v2091_v7  ;;  %v975_v15 = vsel %vm959_vm5, %v954_v8, %v2092_v4  ;;  %v2097_v27 = vunpack.i.h.bf16 %v2095_v14  ;;  %v2096_v31 = vunpack.i.l.bf16 %v2095_v14 }
  0xb8   : > { %v2648_v16 = vpack.c.bf16 %v975_v15, %v974_v0  ;;  %v2100_v17 = vpop.permute.xlu0 %2099 }
  0xb9   : > { %v2102_v20 = vunpack.i.h.bf16 %v2100_v17  ;;  %v2101_v22 = vunpack.i.l.bf16 %v2100_v17  ;;  %v946_v37 = vsel %vm938_vm4, %v2461_v52, %v2097_v27  ;;  %v945_v38 = vsel %vm938_vm4, %v2466_v55, %v2096_v31 }
  0xba   : > { %1944 = vmatprep.mubr.msk.bf16.mxu1 %vm1006_vm6, %v2648_v16 }
  0xbb   : > { %v976_v28 = vsel %vm959_vm5, %v955_v30, %v2101_v22  ;;  %v977_v29 = vsel %vm959_vm5, %v956_v24, %v2102_v20 }
  0xbc   : > { %v988_v46 = vpack.c.bf16 %v977_v29, %v976_v28  ;;  %v2105_v32 = vpop.permute.xlu1 %2104  ;;  %v2110_v47 = vpop.permute.xlu0 %2109 }
  0xbd   : > { %v2112_v33 = vunpack.i.h.bf16 %v2110_v47  ;;  %v2111_v34 = vunpack.i.l.bf16 %v2110_v47  ;;  %v2107_v35 = vunpack.i.h.bf16 %v2105_v32  ;;  %v2106_v36 = vunpack.i.l.bf16 %v2105_v32 }
  0xbe   : > { %1945 = vmatmul.mubr.msk.bf16.gmra.mxu1 %vm1006_vm6, %v988_v46 }
  0xbf   : > { %v966_v39 = vsel %vm959_vm5, %v945_v38, %v2111_v34  ;;  %v967_v40 = vsel %vm959_vm5, %v946_v37, %v2112_v33  ;;  %v948_v49 = vsel %vm938_vm4, %v2507_v25, %v2107_v35  ;;  %v947_v52 = vsel %vm938_vm4, %v2498_v21, %v2106_v36 }
  0xc0   : > { %v983_v41 = vpack.c.bf16 %v967_v40, %v966_v39  ;;  %v2115_v43 = vpop.permute.xlu1 %2114 }
  0xc1   : > { %v2117_v44 = vunpack.i.h.bf16 %v2115_v43  ;;  %v2116_v48 = vunpack.i.l.bf16 %v2115_v43 }
  0xc2   : > { %1936 = vmatprep.mubr.msk.bf16.mxu0 %vm1006_vm6, %v983_v41 }
  0xc3   : > { %v968_v55 = vsel %vm959_vm5, %v947_v52, %v2116_v48  ;;  %v969_v51 = vsel %vm959_vm5, %v948_v49, %v2117_v44 }
  0xc4   : > { %v984_v53 = vpack.c.bf16 %v969_v51, %v968_v55 }
  0xc6   : > { %1937 = vmatmul.mubr.msk.bf16.gmra.mxu0 %vm1006_vm6, %v984_v53 }
  0xc7   : > { %1972 = vmatprep.mubr.msk.bf16.mxu0 %vm1006_vm6, %v2632_v5 }
  0xca   : > { %v2120_v56 = vpop.permute.xlu0 %2119 }
  0xcb   : > { %v2122_v54 = vunpack.i.h.bf16 %v2120_v56  ;;  %v2121_v57 = vunpack.i.l.bf16 %v2120_v56  ;;  %v2125_v58 = vpop.permute.xlu1 %2124 }
  0xcc   : > { %v2127_v25 = vunpack.i.h.bf16 %v2125_v58  ;;  %v2126_v59 = vunpack.i.l.bf16 %v2125_v58 }
  0xcd   : > { %v940_v21 = vsel %vm938_vm4, %v2561_v9, %v2122_v54  ;;  %v939_v60 = vsel %vm938_vm4, %v2564_v26, %v2121_v57 }
  0xce   : > { %v961_v61 = vsel %vm959_vm5, %v940_v21, %v2127_v25  ;;  %v960_v62 = vsel %vm959_vm5, %v939_v60, %v2126_v59  ;;  %1973 = vmatmul.mubr.msk.bf16.vlgmr.msra.gmra.mxu0 %vm1006_vm6, %v983_v41 }
  0xcf   : > { %v980_v63 = vpack.c.bf16 %v961_v61, %v960_v62  ;;  %1976 = vmatprep.mubr.msk.bf16.mxu0 %vm1006_vm6, %v984_v53  ;;  %v2130_v18 = vpop.permute.xlu0 %2129  ;;  %v2135_v1 = vpop.permute.xlu1 %2134 }
  0xd0   : > { %v2132_v19 = vunpack.i.h.bf16 %v2130_v18  ;;  %v2131_v10 = vunpack.i.l.bf16 %v2130_v18  ;;  %v2137_v2 = vunpack.i.h.bf16 %v2135_v1  ;;  %v2136_v9 = vunpack.i.l.bf16 %v2135_v1 }
  0xd1   : > { %1952 = vmatprep.mubr.msk.bf16.mxu1 %vm1006_vm6, %v980_v63 }
  0xd2   : > { %1953 = vmatmul.mubr.msk.bf16.vlgmr.msra.gmra.mxu1 %vm1006_vm6, %v2630_v6  ;;  %v958_v26 = vsel %vm938_vm4, %v2576_v45, %v2132_v19  ;;  %v957_v3 = vsel %vm938_vm4, %v2579_v50, %v2131_v10 }
  0xd3   : > { %1956 = vmatprep.mubr.msk.bf16.mxu1 %vm1006_vm6, %v2632_v5  ;;  %v979_v4 = vsel %vm959_vm5, %v958_v26, %v2137_v2  ;;  %v978_v7 = vsel %vm959_vm5, %v957_v3, %v2136_v9 }
  0xd4   : > { %v989_v8 = vpack.c.bf16 %v979_v4, %v978_v7 }
  0xd6   : > { %1977 = vmatmul.mubr.msk.bf16.gmra.mxu0 %vm1006_vm6, %v2600_v23 }
  0xd7   : > { %1980 = vmatprep.mubr.msk.bf16.mxu0 %vm1006_vm6, %v2610_v42 }
  0xda   : > { %1957 = vmatmul.mubr.msk.bf16.gmra.mxu1 %vm1006_vm6, %v983_v41 }
  0xdb   : > { %1960 = vmatprep.mubr.msk.bf16.mxu1 %vm1006_vm6, %v984_v53 }
  0xde   : > { %1981 = vmatmul.mubr.msk.bf16.gmra.mxu0 %vm1006_vm6, %v2648_v16 }
  0xdf   : > { %1984 = vmatprep.mubr.msk.bf16.mxu0 %vm1006_vm6, %v988_v46 }
  0xe2   : > { %1961 = vmatmul.mubr.msk.bf16.gmra.mxu1 %vm1006_vm6, %v2600_v23 }
  0xe3   : > { %1964 = vmatprep.mubr.msk.bf16.mxu1 %vm1006_vm6, %v2610_v42 }
  0xe6   : > { %1985 = vmatmul.mubr.msk.bf16.gmra.mxu0 %vm1006_vm6, %v989_v8 }
  0xea   : > { %1965 = vmatmul.mubr.msk.bf16.gmra.mxu1 %vm1006_vm6, %v2648_v16 }
 0x167   : > { %v2710_v45 = vpop.f32.mrf.mxu1 }
 0x169   : > { %v2712_v6 = vpop.f32.mrf.mxu1 }
 0x16b   : > { %v2714_v11 = vpop.f32.mrf.mxu1 }
 0x16c   : > { %v1934_v50 = vpop.f32.mrf.mxu0 }
 0x16d   : > { %v2716_v13 = vpop.f32.mrf.mxu1 }
 0x16e   : > { %v1069_v5 = vpop.f32.mrf.mxu0 }
 0x170   : > { %v1935_v12 = vpop.f32.mrf.mxu0 }
 0x172   : > { %v1072_v23 = vpop.f32.mrf.mxu0 }
 0x17e   : > { %v2718_v14 = vpop.f32.mrf.mxu1 }
 0x180   : > { %v2720_v0 = vpop.f32.mrf.mxu1 }
 0x182   : > { %v2722_v17 = vpop.f32.mrf.mxu1 }
 0x184   : > { %v2724_v24 = vpop.f32.mrf.mxu1 }
 0x186   : > { %v1938_v42 = vpop.f32.mrf.mxu0 }
 0x188   : > { %v1085_v15 = vpop.f32.mrf.mxu0 }
 0x18a   : > { %v1939_v16 = vpop.f32.mrf.mxu0 }
 0x18c   : > { %v1088_v20 = vpop.f32.mrf.mxu0 }
 0x18e   : > { %v1974_v22 = vpop.f32.mrf.mxu0 }
 0x190   : > { %v1297_v30 = vpop.f32.mrf.mxu0 }
 0x192   : > { %v1954_v27 = vpop.f32.mrf.mxu1  ;;  %v1975_v31 = vpop.f32.mrf.mxu0 }
 0x193   : > { %v1190_v28 = vadd.f32 %v1954_v27, %v1934_v50 }
 0x194   : > { %v1181_v29 = vpop.f32.mrf.mxu1  ;;  %v1300_v46 = vpop.f32.mrf.mxu0 }
 0x195   : > { %v1182_v32 = vadd.f32 %v1181_v29, %v1069_v5  ;;  %v1362_v47 = vadd.f32 %v1974_v22, %v1190_v28 }
 0x196   : > { %v1955_v33 = vpop.f32.mrf.mxu1  ;;  %v1978_v34 = vpop.f32.mrf.mxu0 }
 0x197   : > { %v1837_v37 = vpack.c.bf16 %v1362_v47, %v1362_v47  ;;  %v1193_v38 = vadd.f32 %v1955_v33, %v1935_v12  ;;  %v1360_v35 = vadd.f32 %v1297_v30, %v1182_v32  ;;  %v1416_v49 = vmul.f32 %v1362_v47, %v1362_v47 }
 0x198   : > { %v1184_v36 = vpop.f32.mrf.mxu1  ;;  %v1313_v39 = vpop.f32.mrf.mxu0  ;;  %v1380_v18 = vsel %vm1376_vm8, %v1362_v47, 0.0 }
 0x199   : > { %1537 = vst.msk [vmem:[%s2731_s19 + $0x8] sm:$0xf] %vm1534_vm7, %v1837_v37  ;;  %v1185_v40 = vadd.f32 %v1184_v36, %v1072_v23  ;;  %v1363_v41 = vadd.f32 %v1975_v31, %v1193_v38  ;;  %v1835_v43 = vpack.c.bf16 %v1360_v35, %v1360_v35  ;;  %v1414_v51 = vmul.f32 %v1360_v35, %v1360_v35 }
 0x19a   : > { %v1958_v44 = vpop.f32.mrf.mxu1  ;;  %v1979_v48 = vpop.f32.mrf.mxu0  ;;  %v1377_v57 = vsel %vm1376_vm8, %v1360_v35, 0.0  ;;  %v1433_v19 = vsel %vm1376_vm8, %v1416_v49, 0.0 }
 0x19b   : > { %v1838_v52 = vpack.c.bf16 %v1363_v41, %v1363_v41  ;;  %v1206_v55 = vadd.f32 %v1958_v44, %v1938_v42  ;;  %1535 = vst.msk [vmem:[%s2731_s19] sm:$0xf] %vm1534_vm7, %v1835_v43  ;;  %v1361_v53 = vadd.f32 %v1300_v46, %v1185_v40  ;;  %v1417_v59 = vmul.f32 %v1363_v41, %v1363_v41 }
 0x19c   : > { %v1197_v56 = vpop.f32.mrf.mxu1  ;;  %v1316_v54 = vpop.f32.mrf.mxu0  ;;  %v1430_v2 = vsel %vm1376_vm8, %v1414_v51, 0.0  ;;  %v1382_v8 = vsel %vm1376_vm8, %v1363_v41, 0.0 }
 0x19d   : > { %1538 = vst.msk [vmem:[%s2731_s19 + $0xc] sm:$0xf] %vm1534_vm7, %v1838_v52  ;;  %v1198_v58 = vadd.f32 %v1197_v56, %v1085_v15  ;;  %v1366_v25 = vadd.f32 %v1978_v34, %v1206_v55  ;;  %v1378_v21 = vsel %vm1376_vm8, %v1361_v53, 0.0  ;;  %v1415_v60 = vmul.f32 %v1361_v53, %v1361_v53 }
 0x19e   : > { %v1836_v61 = vpack.c.bf16 %v1361_v53, %v1361_v53  ;;  %v1959_v62 = vpop.f32.mrf.mxu1  ;;  %v1982_v63 = vpop.f32.mrf.mxu0  ;;  %v1379_v10 = vadd.f32 %v1378_v21, %v1377_v57  ;;  %v1435_v23 = vsel %vm1376_vm8, %v1417_v59, 0.0 }
 0x19f   : > { %v1841_v1 = vpack.c.bf16 %v1366_v25, %v1366_v25  ;;  %v1431_v9 = vsel %vm1376_vm8, %v1415_v60, 0.0  ;;  %v1209_v26 = vadd.f32 %v1959_v62, %v1939_v16  ;;  %v1364_v3 = vadd.f32 %v1313_v39, %v1198_v58 }
 0x1a0   : > { %1536 = vst.msk [vmem:[%s2731_s19 + $0x4] sm:$0xf] %vm1534_vm7, %v1836_v61  ;;  %v1200_v4 = vpop.f32.mrf.mxu1  ;;  %v1329_v7 = vpop.f32.mrf.mxu0  ;;  %v1381_v50 = vadd.f32 %v1380_v18, %v1379_v10  ;;  %v1432_v5 = vadd.f32 %v1431_v9, %v1430_v2  ;;  %v1420_v46 = vmul.f32 %v1366_v25, %v1366_v25  ;;  %v1388_v51 = vsel %vm1376_vm8, %v1366_v25, 0.0 }
 0x1a1   : > { %1541 = vst.msk [vmem:[%s2731_s19 + $0x18] sm:$0xf] %vm1534_vm7, %v1841_v1  ;;  %v1201_v12 = vadd.f32 %v1200_v4, %v1088_v20  ;;  %v1418_v42 = vmul.f32 %v1364_v3, %v1364_v3  ;;  %v1839_v15 = vpack.c.bf16 %v1364_v3, %v1364_v3  ;;  %v1367_v22 = vadd.f32 %v1979_v48, %v1209_v26 }
 0x1a2   : > { %v1962_v30 = vpop.f32.mrf.mxu1  ;;  %v1983_v27 = vpop.f32.mrf.mxu0  ;;  %v1434_v31 = vadd.f32 %v1433_v19, %v1432_v5  ;;  %v1383_v16 = vadd.f32 %v1382_v8, %v1381_v50  ;;  %v1384_v32 = vsel %vm1376_vm8, %v1364_v3, 0.0  ;;  %v1441_v60 = vsel %vm1376_vm8, %v1420_v46, 0.0 }
 0x1a3   : > { %v1222_v28 = vadd.f32 %v1962_v30, %v2710_v45  ;;  %v1365_v29 = vadd.f32 %v1316_v54, %v1201_v12  ;;  %v1437_v47 = vsel %vm1376_vm8, %v1418_v42, 0.0  ;;  %1539 = vst.msk [vmem:[%s2731_s19 + $0x10] sm:$0xf] %vm1534_vm7, %v1839_v15  ;;  %v1842_v20 = vpack.c.bf16 %v1367_v22, %v1367_v22 }
 0x1a4   : > { %v1213_v33 = vpop.f32.mrf.mxu1  ;;  %v1332_v34 = vpop.f32.mrf.mxu0  ;;  %v1385_v37 = vadd.f32 %v1384_v32, %v1383_v16  ;;  %v1436_v38 = vadd.f32 %v1435_v23, %v1434_v31  ;;  %v1421_v39 = vmul.f32 %v1367_v22, %v1367_v22  ;;  %v1390_v61 = vsel %vm1376_vm8, %v1367_v22, 0.0 }
 0x1a5   : > { %v1386_v35 = vsel %vm1376_vm8, %v1365_v29, 0.0  ;;  %v1419_v36 = vmul.f32 %v1365_v29, %v1365_v29  ;;  %1542 = vst.msk [vmem:[%s2731_s19 + $0x1c] sm:$0xf] %vm1534_vm7, %v1842_v20  ;;  %v1840_v45 = vpack.c.bf16 %v1365_v29, %v1365_v29  ;;  %v1214_v40 = vadd.f32 %v1213_v33, %v2712_v6 }
 0x1a6   : > { %v1370_v41 = vadd.f32 %v1982_v63, %v1222_v28  ;;  %v1963_v43 = vpop.f32.mrf.mxu1  ;;  %v1986_v44 = vpop.f32.mrf.mxu0  ;;  %v1438_v48 = vadd.f32 %v1437_v47, %v1436_v38  ;;  %v1387_v49 = vadd.f32 %v1386_v35, %v1385_v37  ;;  %v1443_v63 = vsel %vm1376_vm8, %v1421_v39, 0.0 }
 0x1a7   : > { %v1439_v52 = vsel %vm1376_vm8, %v1419_v36, 0.0  ;;  %v1225_v55 = vadd.f32 %v1963_v43, %v2714_v11  ;;  %1540 = vst.msk [vmem:[%s2731_s19 + $0x14] sm:$0xf] %vm1534_vm7, %v1840_v45  ;;  %v1368_v56 = vadd.f32 %v1329_v7, %v1214_v40 }
 0x1a8   : > { %v1845_v53 = vpack.c.bf16 %v1370_v41, %v1370_v41  ;;  %v1216_v54 = vpop.f32.mrf.mxu1  ;;  %v1389_v57 = vadd.f32 %v1388_v51, %v1387_v49  ;;  %v1440_v6 = vadd.f32 %v1439_v52, %v1438_v48  ;;  %v1345_v21 = vpop.f32.mrf.mxu0  ;;  %v1424_v19 = vmul.f32 %v1370_v41, %v1370_v41 }
 0x1a9   : > { %v1217_v58 = vadd.f32 %v1216_v54, %v2716_v13  ;;  %v1371_v59 = vadd.f32 %v1983_v27, %v1225_v55  ;;  %v1422_v11 = vmul.f32 %v1368_v56, %v1368_v56  ;;  %v1843_v25 = vpack.c.bf16 %v1368_v56, %v1368_v56 }
 0x1aa   : > { %1545 = vst.msk [vmem:[%s2731_s19 + $0x28] sm:$0xf] %vm1534_vm7, %v1845_v53  ;;  %v1966_v62 = vpop.f32.mrf.mxu1  ;;  %v1442_v18 = vadd.f32 %v1441_v60, %v1440_v6  ;;  %v1391_v10 = vadd.f32 %v1390_v61, %v1389_v57  ;;  %v1392_v1 = vsel %vm1376_vm8, %v1368_v56, 0.0  ;;  %v1987_v50 = vpop.f32.mrf.mxu0  ;;  %v1396_v31 = vsel %vm1376_vm8, %v1370_v41, 0.0 }
 0x1ab   : > { %1543 = vst.msk [vmem:[%s2731_s19 + $0x20] sm:$0xf] %vm1534_vm7, %v1843_v25  ;;  %v1846_v13 = vpack.c.bf16 %v1371_v59, %v1371_v59  ;;  %v1238_v2 = vadd.f32 %v1966_v62, %v2718_v14  ;;  %v1369_v9 = vadd.f32 %v1332_v34, %v1217_v58  ;;  %v1445_v7 = vsel %vm1376_vm8, %v1422_v11, 0.0 }
 0x1ac   : > { %v1229_v26 = vpop.f32.mrf.mxu1  ;;  %v1393_v3 = vadd.f32 %v1392_v1, %v1391_v10  ;;  %v1444_v4 = vadd.f32 %v1443_v63, %v1442_v18  ;;  %v1425_v16 = vmul.f32 %v1371_v59, %v1371_v59  ;;  %v1449_v46 = vsel %vm1376_vm8, %v1424_v19, 0.0  ;;  %v1348_v33 = vpop.f32.mrf.mxu0 }
 0x1ad   : > { %v1230_v8 = vadd.f32 %v1229_v26, %v2720_v0  ;;  %1546 = vst.msk [vmem:[%s2731_s19 + $0x2c] sm:$0xf] %vm1534_vm7, %v1846_v13  ;;  %v1394_v5 = vsel %vm1376_vm8, %v1369_v9, 0.0  ;;  %v1423_v12 = vmul.f32 %v1369_v9, %v1369_v9  ;;  %v1844_v23 = vpack.c.bf16 %v1369_v9, %v1369_v9 }
 0x1ae   : > { %v1374_v42 = vadd.f32 %v1986_v44, %v1238_v2  ;;  %v1967_v15 = vpop.f32.mrf.mxu1  ;;  %v1446_v14 = vadd.f32 %v1445_v7, %v1444_v4  ;;  %v1395_v22 = vadd.f32 %v1394_v5, %v1393_v3  ;;  %v1398_v32 = vsel %vm1376_vm8, %v1371_v59, 0.0 }
 0x1af   : > { %v1241_v30 = vadd.f32 %v1967_v15, %v2722_v17  ;;  %v1372_v27 = vadd.f32 %v1345_v21, %v1230_v8  ;;  %v1447_v0 = vsel %vm1376_vm8, %v1423_v12, 0.0  ;;  %1544 = vst.msk [vmem:[%s2731_s19 + $0x24] sm:$0xf] %vm1534_vm7, %v1844_v23  ;;  %v1451_v39 = vsel %vm1376_vm8, %v1425_v16, 0.0 }
 0x1b0   : > { %v1849_v28 = vpack.c.bf16 %v1374_v42, %v1374_v42  ;;  %v1232_v29 = vpop.f32.mrf.mxu1  ;;  %v1397_v47 = vadd.f32 %v1396_v31, %v1395_v22  ;;  %v1448_v20 = vadd.f32 %v1447_v0, %v1446_v14  ;;  %v1428_v43 = vmul.f32 %v1374_v42, %v1374_v42 }
 0x1b1   : > { %v1426_v17 = vmul.f32 %v1372_v27, %v1372_v27  ;;  %v1847_v34 = vpack.c.bf16 %v1372_v27, %v1372_v27  ;;  %v1233_v37 = vadd.f32 %v1232_v29, %v2724_v24  ;;  %v1375_v38 = vadd.f32 %v1987_v50, %v1241_v30 }
 0x1b2   : > { %1549 = vst.msk [vmem:[%s2731_s19 + $0x38] sm:$0xf] %vm1534_vm7, %v1849_v28  ;;  %v1450_v35 = vadd.f32 %v1449_v46, %v1448_v20  ;;  %v1399_v36 = vadd.f32 %v1398_v32, %v1397_v47  ;;  %v1400_v45 = vsel %vm1376_vm8, %v1372_v27, 0.0  ;;  %v1404_v56 = vsel %vm1376_vm8, %v1374_v42, 0.0 }
 0x1b3   : > { %1547 = vst.msk [vmem:[%s2731_s19 + $0x30] sm:$0xf] %vm1534_vm7, %v1847_v34  ;;  %v1850_v40 = vpack.c.bf16 %v1375_v38, %v1375_v38  ;;  %v1373_v41 = vadd.f32 %v1348_v33, %v1233_v37  ;;  %v1453_v49 = vsel %vm1376_vm8, %v1426_v17, 0.0  ;;  %v1429_v54 = vmul.f32 %v1375_v38, %v1375_v38 }
 0x1b4   : > { %v1401_v44 = vadd.f32 %v1400_v45, %v1399_v36  ;;  %v1452_v48 = vadd.f32 %v1451_v39, %v1450_v35  ;;  %v1457_v59 = vsel %vm1376_vm8, %v1428_v43, 0.0  ;;  %v1406_v21 = vsel %vm1376_vm8, %v1375_v38, 0.0 }
 0x1b5   : > { %1550 = vst.msk [vmem:[%s2731_s19 + $0x3c] sm:$0xf] %vm1534_vm7, %v1850_v40  ;;  %v1402_v24 = vsel %vm1376_vm8, %v1373_v41, 0.0  ;;  %v1427_v52 = vmul.f32 %v1373_v41, %v1373_v41  ;;  %v1848_v55 = vpack.c.bf16 %v1373_v41, %v1373_v41  ;;  %v1459_v11 = vsel %vm1376_vm8, %v1429_v54, 0.0 }
 0x1b6   : > { %v1454_v51 = vadd.f32 %v1453_v49, %v1452_v48  ;;  %v1403_v53 = vadd.f32 %v1402_v24, %v1401_v44 }
 0x1b7   : > { %v1455_v57 = vsel %vm1376_vm8, %v1427_v52, 0.0  ;;  %1548 = vst.msk [vmem:[%s2731_s19 + $0x34] sm:$0xf] %vm1534_vm7, %v1848_v55 }
 0x1b8   : > { %v1405_v6 = vadd.f32 %v1404_v56, %v1403_v53  ;;  %v1456_v58 = vadd.f32 %v1455_v57, %v1454_v51 }
 0x1ba   : > { %v1407_v60 = vadd.f32 %v1406_v21, %v1405_v6  ;;  %v1458_v61 = vadd.f32 %v1457_v59, %v1456_v58 }
 0x1bc   : > { %v1408_v25 = vrot.slane %v1407_v60, 4  ;;  %v1460_v62 = vadd.f32 %v1459_v11, %v1458_v61 }
 0x1be   : > { %v1409_v63 = vadd.f32 %v1408_v25, %v1407_v60  ;;  %v1461_v18 = vrot.slane %v1460_v62, 4 }
 0x1c0   : > { %v1410_v19 = vrot.slane %v1409_v63, 2  ;;  %v1462_v10 = vadd.f32 %v1461_v18, %v1460_v62 }
 0x1c2   : > { %v1411_v1 = vadd.f32 %v1410_v19, %v1409_v63  ;;  %v1463_v13 = vrot.slane %v1462_v10, 2 }
 0x1c4   : > { %v1412_v2 = vrot.slane %v1411_v1, 1  ;;  %v1464_v9 = vadd.f32 %v1463_v13, %v1462_v10 }
 0x1c6   : > { %v1465_v26 = vrot.slane %v1464_v9, 1  ;;  %v1413_v3 = vadd.f32 %v1412_v2, %v1411_v1 }
 0x1c8   : > { %v1466_v4 = vadd.f32 %v1465_v26, %v1464_v9 }
 0x1ca   : > { %v1467_v7 = vsel %vm615_vm0, %v1413_v3, %v1466_v4 }
 0x1cb   : > { %1469 = vst.msk [vmem:[%s467_s24] sm:$0x3] %vm1468_vm9, %v1467_v7 }
 0x1cc PF: > { %s18_s28 = sadd.s32 1, %s2182_s28   ;;  %s2834_s24 = smov %s2174_s26 }
 0x1cd   : > { %p15_p12 = scmp.ge.s32.totalorder %s18_s28, 6   ;;  %s2835_s25 = smov %s2178_s27 }
 0x1ce   : > { %s2836_s26 = smov %s2839_s29  ;;  %s2837_s27 = smov %s2843_s30 }
 0x1cf   :  { %17 = sbr.rel (!%p15_p12) target bundleno = 3 (0x3), region = 94 }

</bundles_post_ra>
